<compile_context>
chip_gen: v5e
topology: v5e:2x2
jax: 0.10.0
libtpu: 0.0.40
codegen_flags: <defaults>
</compile_context>

<pallas_src>
import math
from functools import partial

import jax
import jax.numpy as jnp
from jax import lax
from jax.experimental import pallas as pl
from jax.experimental.pallas import tpu as pltpu


# ---------------------------------------------------------------------------
# Per-generation tile / VMEM configuration
# ---------------------------------------------------------------------------
_CFG = None


def _device_cfg():
    """Generation-tuned matmul tile caps + scoped-VMEM limit.

    v6e gets the largest tiles (128 MiB physical VMEM; needs ~650 FLOP/byte to
    be MXU-bound); v7x is capped lower (64 MiB VMEM/TC) and keeps bm/bn small
    enough that nm*nn >= 2 on more layers so both TensorCores get grid blocks;
    v5e keeps bn=128 for its 128x128 MXUs but uses large M/K tiles.
    """
    global _CFG
    if _CFG is not None:
        return _CFG
    kind = ""
    try:
        kind = jax.devices()[0].device_kind.lower()
    except Exception:
        kind = ""
    if ("v5 lite" in kind) or ("v5e" in kind) or ("v5lite" in kind):
        cfg = dict(bm=512, bn=128, bk=1024, vmem=80 * 1024 * 1024)
    elif "v7" in kind:
        cfg = dict(bm=512, bn=512, bk=1024, vmem=44 * 1024 * 1024)
    elif "v6" in kind:
        cfg = dict(bm=1024, bn=1024, bk=1024, vmem=96 * 1024 * 1024)
    else:
        cfg = dict(bm=512, bn=256, bk=512, vmem=64 * 1024 * 1024)
    _CFG = cfg
    return cfg


def _pick_div_tile(n, cap):
    """Largest multiple of 128 dividing n that is <= cap; else n itself
    (single full-extent tile -> never pads the operand)."""
    if n <= cap:
        return n
    best = 0
    d = 128
    while d <= cap:
        if n % d == 0:
            best = d
        d += 128
    return best if best > 0 else n


def _row_tile(rows, bytes_per_row, target_bytes=4 << 20):
    """Row tile sized by a byte budget (>=2 MiB blocks reach ~85% of the HBM
    roofline; tiny blocks are per-grid-step-overhead dominated)."""
    if rows <= 512:
        return rows
    r = target_bytes // max(int(bytes_per_row), 1)
    r = max(512, min(8192, r))
    r = (r // 8) * 8
    return rows if r >= rows else r


# ---------------------------------------------------------------------------
# Pallas kernel 1: tiled bf16 matmul (f32 acc) + per-channel BN partial stats
#                  + optional fused per-K-column affine+ReLU on the A operand
# ---------------------------------------------------------------------------
def _mm_kernel(*refs, fuse, ragged, bm, m_true):
    if fuse:
        a_ref, b_ref, s_ref, t_ref, o_ref, sum_ref, sq_ref, acc_ref = refs
    else:
        a_ref, b_ref, o_ref, sum_ref, sq_ref, acc_ref = refs

    k = pl.program_id(2)

    @pl.when(k == 0)
    def _():
        acc_ref[...] = jnp.zeros_like(acc_ref)

    a = a_ref[...]
    if fuse:
        # Previous conv's BatchNorm apply + ReLU, fused into the consumer
        # matmul (per-K-column scale/shift); cast back to bf16 for the MXU.
        a = jnp.maximum(a.astype(jnp.float32) * s_ref[...] + t_ref[...], 0.0)
        a = a.astype(jnp.bfloat16)
    acc_ref[...] += jnp.dot(a, b_ref[...], preferred_element_type=jnp.float32)

    @pl.when(k == pl.num_programs(2) - 1)
    def _():
        acc = acc_ref[...]
        o_ref[...] = acc.astype(o_ref.dtype)
        if ragged:
            # Ragged last M tile: rows past the true M contain garbage; they
            # are dropped by the masked output store, but MUST be excluded
            # from the BatchNorm statistic sums.
            rows = (lax.broadcasted_iota(jnp.int32, acc.shape, 0)
                    + pl.program_id(0) * bm)
            acc = jnp.where(rows < m_true, acc, 0.0)
        sum_ref[...] = jnp.sum(acc, axis=0, keepdims=True)[None]
        sq_ref[...] = jnp.sum(acc * acc, axis=0, keepdims=True)[None]


def matmul_stats_pallas(a, b, scale=None, shift=None):
    """(M,K)@(K,N): bf16 MXU inputs, f32 accumulation, bf16 output, plus
    per-output-channel (sum, sum-of-squares) in f32 for train-mode BatchNorm.
    If scale/shift (shape (K,)) are given, relu(a*scale+shift) is applied to
    the A tiles inside the kernel before the MXU (fused BN apply + ReLU)."""
    M, K = a.shape
    K2, N = b.shape
    assert K == K2
    a = a.astype(jnp.bfloat16)
    b = b.astype(jnp.bfloat16)

    cfg = _device_cfg()
    bm = M if M <= cfg["bm"] else cfg["bm"]          # ragged last tile masked
    bk = _pick_div_tile(K, cfg["bk"])
    bn = _pick_div_tile(N, cfg["bn"])
    nm = pl.cdiv(M, bm)
    nn = N // bn
    nk = K // bk
    ragged = (M % bm) != 0

    fuse = scale is not None
    in_specs = [pl.BlockSpec((bm, bk), lambda i, j, k: (i, k)),
                pl.BlockSpec((bk, bn), lambda i, j, k: (k, j))]
    operands = [a, b]
    if fuse:
        in_specs += [pl.BlockSpec((1, bk), lambda i, j, k: (0, k)),
                     pl.BlockSpec((1, bk), lambda i, j, k: (0, k))]
        operands += [scale.astype(jnp.float32).reshape(1, K),
                     shift.astype(jnp.float32).reshape(1, K)]

    out, sum_p, sq_p = pl.pallas_call(
        partial(_mm_kernel, fuse=fuse, ragged=ragged, bm=bm, m_true=M),
        out_shape=(jax.ShapeDtypeStruct((M, N), jnp.bfloat16),
                   jax.ShapeDtypeStruct((nm, 1, N), jnp.float32),
                   jax.ShapeDtypeStruct((nm, 1, N), jnp.float32)),
        grid_spec=pltpu.PrefetchScalarGridSpec(
            num_scalar_prefetch=0,
            grid=(nm, nn, nk),
            in_specs=in_specs,
            out_specs=[pl.BlockSpec((bm, bn), lambda i, j, k: (i, j)),
                       pl.BlockSpec((1, 1, bn), lambda i, j, k: (i, 0, j)),
                       pl.BlockSpec((1, 1, bn), lambda i, j, k: (i, 0, j))],
            scratch_shapes=[pltpu.VMEM((bm, bn), jnp.float32)],
        ),
        compiler_params=pltpu.CompilerParams(
            dimension_semantics=("parallel", "parallel", "arbitrary"),
            vmem_limit_bytes=cfg["vmem"]),
    )(*operands)

    csum = jnp.sum(sum_p[:, 0, :], axis=0)
    csq = jnp.sum(sq_p[:, 0, :], axis=0)
    return out, csum, csq


# ---------------------------------------------------------------------------
# Pallas kernel 2: row-tiled per-channel affine (BatchNorm apply) + ReLU
# ---------------------------------------------------------------------------
def _affine_kernel(x_ref, s_ref, b_ref, o_ref, *, relu):
    y = x_ref[...].astype(jnp.float32) * s_ref[...] + b_ref[...]
    if relu:
        y = jnp.maximum(y, 0.0)
    o_ref[...] = y.astype(o_ref.dtype)


def affine_pallas(x, scale, shift, relu=True):
    """y = x*scale + shift (+ ReLU); x: (M, C) -> bf16 (M, C).  No padding;
    ragged last tile rows are dropped by the masked store."""
    M, C = x.shape
    bm = _row_tile(M, 4 * C)                       # bf16 read + bf16 write
    return pl.pallas_call(
        partial(_affine_kernel, relu=relu),
        out_shape=jax.ShapeDtypeStruct((M, C), jnp.bfloat16),
        grid=(pl.cdiv(M, bm),),
        in_specs=[pl.BlockSpec((bm, C), lambda i: (i, 0)),
                  pl.BlockSpec((1, C), lambda i: (0, 0)),
                  pl.BlockSpec((1, C), lambda i: (0, 0))],
        out_specs=pl.BlockSpec((bm, C), lambda i: (i, 0)),
        compiler_params=pltpu.CompilerParams(
            dimension_semantics=("parallel",),
            vmem_limit_bytes=_device_cfg()["vmem"]),
    )(x, scale.astype(jnp.float32).reshape(1, C),
      shift.astype(jnp.float32).reshape(1, C))


# ---------------------------------------------------------------------------
# Pallas kernel 3: fused bottleneck tail
#   relu( (y3*scale3 + shift3) * eca_gate  +  (res*res_scale + res_shift) )
# ---------------------------------------------------------------------------
def _tail_kernel(y_ref, r_ref, s_ref, b_ref, rs_ref, rb_ref, e_ref, o_ref):
    y = y_ref[...].astype(jnp.float32)
    r = r_ref[...].astype(jnp.float32)
    bn3 = y * s_ref[...] + b_ref[...]
    res = r * rs_ref[...] + rb_ref[...]
    o_ref[...] = jnp.maximum(bn3 * e_ref[...] + res, 0.0).astype(o_ref.dtype)


def tail_pallas(y3, res, scale3, shift3, rscale, rshift, gate):
    """y3, res: (N, R, C) bf16; scale/shift: (C,); gate: (N, C)."""
    N, R, C = y3.shape
    br = _row_tile(R, 6 * C)                       # 2 reads + 1 write, bf16
    s3 = scale3.astype(jnp.float32).reshape(1, 1, C)
    b3 = shift3.astype(jnp.float32).reshape(1, 1, C)
    rs = rscale.astype(jnp.float32).reshape(1, 1, C)
    rb = rshift.astype(jnp.float32).reshape(1, 1, C)
    e = gate.astype(jnp.float32).reshape(N, 1, C)
    return pl.pallas_call(
        _tail_kernel,
        out_shape=jax.ShapeDtypeStruct((N, R, C), jnp.bfloat16),
        grid=(N, pl.cdiv(R, br)),
        in_specs=[pl.BlockSpec((1, br, C), lambda n, t: (n, t, 0)),
                  pl.BlockSpec((1, br, C), lambda n, t: (n, t, 0)),
                  pl.BlockSpec((1, 1, C), lambda n, t: (0, 0, 0)),
                  pl.BlockSpec((1, 1, C), lambda n, t: (0, 0, 0)),
                  pl.BlockSpec((1, 1, C), lambda n, t: (0, 0, 0)),
                  pl.BlockSpec((1, 1, C), lambda n, t: (0, 0, 0)),
                  pl.BlockSpec((1, 1, C), lambda n, t: (n, 0, 0))],
        out_specs=pl.BlockSpec((1, br, C), lambda n, t: (n, t, 0)),
        compiler_params=pltpu.CompilerParams(
            dimension_semantics=("parallel", "parallel"),
            vmem_limit_bytes=_device_cfg()["vmem"]),
    )(y3, res, s3, b3, rs, rb, e)


# ---------------------------------------------------------------------------
# Glue ops (im2col, pooling, BN scale/shift, ECA conv1d) in plain JAX
# ---------------------------------------------------------------------------
def conv3d(x, w2d, ksize, stride, padding, scale=None, shift=None):
    """x: (N,D,H,W,Cin) bf16; w2d: (kd*kh*kw*Cin, Cout) bf16, rows ordered
    (kd,kh,kw,cin).  Optional fused relu(x*scale+shift) on the matmul's A
    operand (only legal for 1x1x1 convs: the im2col zero padding of kxkxk
    convs must represent *post*-BN zeros).  Returns (y, chan_sum, chan_sumsq)."""
    kd, kh, kw = ksize
    sd, sh, sw = stride
    pd, ph, pw = padding
    N, D, H, W, C = x.shape
    Do = (D + 2 * pd - kd) // sd + 1
    Ho = (H + 2 * ph - kh) // sh + 1
    Wo = (W + 2 * pw - kw) // sw + 1
    if ksize == (1, 1, 1) and padding == (0, 0, 0):
        # TODO(synk): the stride-2 downsample slice is an XLA gather/copy; it
        # could instead be folded into the matmul's index_map.
        A = x[:, ::sd, ::sh, ::sw, :].reshape(-1, C)
    else:
        assert scale is None and shift is None
        # TODO(synk): im2col is still materialized in HBM by XLA (27x
        # activation inflation for 3x3x3 convs).  A direct Pallas conv that
        # folds the taps into the K grid axis / uses in-kernel window DMAs
        # from an ANY-space input would remove this — largest remaining cost.
        xp = jnp.pad(x, ((0, 0), (pd, pd), (ph, ph), (pw, pw), (0, 0)))
        cols = []
        for i in range(kd):
            for j in range(kh):
                for k in range(kw):
                    cols.append(xp[:, i:i + (Do - 1) * sd + 1:sd,
                                   j:j + (Ho - 1) * sh + 1:sh,
                                   k:k + (Wo - 1) * sw + 1:sw, :])
        A = jnp.stack(cols, axis=4).reshape(N * Do * Ho * Wo, kd * kh * kw * C)
    y2d, csum, csq = matmul_stats_pallas(A, w2d, scale, shift)
    return y2d.reshape(N, Do, Ho, Wo, -1), csum, csq


def bn_scale_shift(csum, csq, count, gamma, beta, eps=1e-5):
    # training-mode BatchNorm (batch statistics, biased variance)
    mean = csum / count
    var = jnp.maximum(csq / count - mean * mean, 0.0)
    scale = gamma * lax.rsqrt(var + eps)
    shift = beta - mean * scale
    return scale, shift


def maxpool3d(x):
    # MaxPool3d(kernel=3, stride=2, padding=1); -inf padding for max.
    init = jnp.asarray(-jnp.inf, dtype=x.dtype)
    return lax.reduce_window(x, init, lax.max,
                             (1, 3, 3, 3, 1), (1, 2, 2, 2, 1),
                             ((0, 0), (1, 1), (1, 1), (1, 1), (0, 0)))


def eca_gate(pooled, w3):
    # pooled: (N, C) f32 — 1D conv (k=3, zero pad) across channels + sigmoid
    yp = jnp.pad(pooled, ((0, 0), (1, 1)))
    z = w3[0] * yp[:, :-2] + w3[1] * yp[:, 1:-1] + w3[2] * yp[:, 2:]
    return jax.nn.sigmoid(z)


# ---------------------------------------------------------------------------
# Model forward
# ---------------------------------------------------------------------------
@partial(jax.jit, static_argnames=("stride",))
def bottleneck_forward(x, p, stride):
    N = x.shape[0]

    # conv1 (1x1) on the already-activated block input
    y1, s1, q1 = conv3d(x, p['w1'], (1, 1, 1), (1, 1, 1), (0, 0, 0))
    _, D1, H1, W1, C1 = y1.shape
    sc1, sh1 = bn_scale_shift(s1, q1, N * D1 * H1 * W1, *p['bn1'])
    # bn1 + ReLU cannot be fused into conv2's A path (3x3x3 has zero padding);
    # standalone row-tiled BN-apply pass.
    o1 = affine_pallas(y1.reshape(-1, C1), sc1, sh1, relu=True)
    o1 = o1.reshape(N, D1, H1, W1, C1)

    y2, s2, q2 = conv3d(o1, p['w2'], (3, 3, 3), (stride,) * 3, (1, 1, 1))
    _, D2, H2, W2, C2 = y2.shape
    sc2, sh2 = bn_scale_shift(s2, q2, N * D2 * H2 * W2, *p['bn2'])

    # conv3 (1x1): bn2 + ReLU fused into the matmul's A path (o2 is never
    # materialized in HBM).
    y3, s3, q3 = conv3d(y2, p['w3'], (1, 1, 1), (1, 1, 1), (0, 0, 0),
                        scale=sc2, shift=sh2)
    _, D3, H3, W3, C3 = y3.shape
    R = D3 * H3 * W3
    sc3, sh3 = bn_scale_shift(s3, q3, N * R, *p['bn3'])

    # ECA gate: per-sample channel mean of bn3(y3) = sc3*mean(y3) + sh3.
    # TODO(synk): emit per-sample row sums from the conv3 matmul (sample-
    # aligned M tiles) to avoid this extra f32 read of y3.
    pool_y3 = jnp.mean(y3.astype(jnp.float32), axis=(1, 2, 3))
    gate = eca_gate(pool_y3 * sc3[None, :] + sh3[None, :], p['eca_w'])

    if 'dw' in p:
        yd, sd_, qd = conv3d(x, p['dw'], (1, 1, 1), (stride,) * 3, (0, 0, 0))
        rsc, rsh = bn_scale_shift(sd_, qd, N * R, *p['dbn'])
        res = yd.reshape(N, R, C3)
    else:
        res = x.reshape(N, R, C3)
        rsc = jnp.ones((C3,), jnp.float32)
        rsh = jnp.zeros((C3,), jnp.float32)

    out = tail_pallas(y3.reshape(N, R, C3), res, sc3, sh3, rsc, rsh, gate)
    return out.reshape(N, D3, H3, W3, C3)


@jax.jit
def stem_forward(images_ncdhw, conv1_w, gamma, beta):
    x = jnp.transpose(images_ncdhw, (0, 2, 3, 4, 1)).astype(jnp.bfloat16)
    y, cs, cq = conv3d(x, conv1_w, (7, 7, 7), (2, 2, 2), (3, 3, 3))
    N, D, H, W, C = y.shape
    sc, sh = bn_scale_shift(cs, cq, N * D * H * W, gamma, beta)
    o = affine_pallas(y.reshape(-1, C), sc, sh, relu=True).reshape(N, D, H, W, C)
    return maxpool3d(o)


@jax.jit
def head_forward(x, fc_w, fc_b):
    feat = jnp.mean(x.astype(jnp.float32), axis=(1, 2, 3))  # AdaptiveAvgPool3d(1)
    # Linear(2048, 1): negligible compute, stays in XLA.
    return feat @ fc_w + fc_b[None, :]


def resnet50pah_forward(params, images_ncdhw):
    x = stem_forward(images_ncdhw, params['conv1_w'], *params['bn1'])
    for layer in params['layers']:
        for blk, stride in layer:
            x = bottleneck_forward(x, blk, stride)
    return head_forward(x, params['fc_w'], params['fc_b'])   # (N, 1)


# ---------------------------------------------------------------------------
# Deterministic parameter construction (shapes from the module __init__)
# ---------------------------------------------------------------------------
def _conv_weight(key, cout, cin, kd, kh, kw):
    fan_out = cout * kd * kh * kw                      # kaiming_normal_(fan_out)
    std = math.sqrt(2.0 / fan_out)
    w = std * jax.random.normal(key, (cout, cin, kd, kh, kw), jnp.float32)
    # im2col matmul layout: rows (kd, kh, kw, cin), cols cout; pre-cast bf16.
    # TODO(synk): pad Cout=64 weights (stem / layer1) to 128 lanes so the
    # matmul output stores stay lane-dense instead of masked vst.
    w2d = jnp.transpose(w, (2, 3, 4, 1, 0)).reshape(kd * kh * kw * cin, cout)
    return w2d.astype(jnp.bfloat16)


def build_params(seed=0):
    root = jax.random.PRNGKey(seed)
    ctr = [0]

    def nk():
        ctr[0] += 1
        return jax.random.fold_in(root, ctr[0])

    params = {}
    params['conv1_w'] = _conv_weight(nk(), 64, 1, 7, 7, 7)
    params['bn1'] = (jnp.ones(64, jnp.float32), jnp.zeros(64, jnp.float32))

    layers = []
    in_planes = 64
    # ResNet-101 (Bottleneck): layers [3, 4, 23, 3], planes [64, 128, 256, 512]
    for planes, blocks, stride0 in [(64, 3, 1), (128, 4, 2), (256, 23, 2), (512, 3, 2)]:
        layer = []
        for b in range(blocks):
            s = stride0 if b == 0 else 1
            blk = {
                'w1': _conv_weight(nk(), planes, in_planes, 1, 1, 1),
                'bn1': (jnp.ones(planes, jnp.float32), jnp.zeros(planes, jnp.float32)),
                'w2': _conv_weight(nk(), planes, planes, 3, 3, 3),
                'bn2': (jnp.ones(planes, jnp.float32), jnp.zeros(planes, jnp.float32)),
                'w3': _conv_weight(nk(), planes * 4, planes, 1, 1, 1),
                'bn3': (jnp.ones(planes * 4, jnp.float32), jnp.zeros(planes * 4, jnp.float32)),
                'eca_w': jax.random.uniform(nk(), (3,), jnp.float32,
                                            -1.0 / math.sqrt(3.0), 1.0 / math.sqrt(3.0)),
            }
            if b == 0 and (s != 1 or in_planes != planes * 4):
                blk['dw'] = _conv_weight(nk(), planes * 4, in_planes, 1, 1, 1)
                blk['dbn'] = (jnp.ones(planes * 4, jnp.float32),
                              jnp.zeros(planes * 4, jnp.float32))
            layer.append((blk, s))
            in_planes = planes * 4
        layers.append(layer)
    params['layers'] = layers

    bound = 1.0 / math.sqrt(2048.0)                    # Linear(2048, 1)
    params['fc_w'] = jax.random.uniform(nk(), (2048, 1), jnp.float32, -bound, bound)
    params['fc_b'] = jax.random.uniform(nk(), (1,), jnp.float32, -bound, bound)
    return params


if __name__ == "__main__":
    params = build_params(0)
    key = jax.random.PRNGKey(0)
    # PyTorch-style NCDHW input: batch=2, 1 input channel, D=8, H=W=16
    images = jax.random.normal(key, (2, 1, 8, 16, 16), jnp.float32)
    out = resnet50pah_forward(params, images)
    out = jax.block_until_ready(out)
    assert out.shape == (2, 1)
    assert bool(jnp.all(jnp.isfinite(out)))
    print("KERNEL_OK")
</pallas_src>

<mosaic_0001>
module attributes {stable_mosaic.version = 11 : i64} {
  func.func @_mm_kernel(%arg0: i32, %arg1: i32, %arg2: i32, %arg3: memref<512x343xbf16, #tpu.memory_space<vmem>>, %arg4: memref<343x64xbf16, #tpu.memory_space<vmem>>, %arg5: memref<512x64xbf16, #tpu.memory_space<vmem>>, %arg6: memref<1x1x64xf32, #tpu.memory_space<vmem>>, %arg7: memref<1x1x64xf32, #tpu.memory_space<vmem>>, %arg8: memref<512x64xf32, #tpu.memory_space<vmem>>) attributes {dimension_semantics = [#tpu.dimension_semantics<parallel>, #tpu.dimension_semantics<parallel>, #tpu.dimension_semantics<arbitrary>], iteration_bounds = array<i64: 1, 1, 1>, scalar_prefetch = 0 : i64, scratch_operands = 1 : i64, tpu.core_type = #tpu.core_type<tc>, window_params = [{transform_indices = @transform_0, window_bounds = array<i64: 512, 343>}, {transform_indices = @transform_1, window_bounds = array<i64: 343, 64>}, {transform_indices = @transform_2, window_bounds = array<i64: 512, 64>}, {transform_indices = @transform_3, window_bounds = array<i64: 1, 1, 64>}, {transform_indices = @transform_4, window_bounds = array<i64: 1, 1, 64>}]} {
    %c0_i32 = arith.constant 0 : i32
    %0 = arith.cmpi eq, %arg2, %c0_i32 : i32
    %1 = arith.extui %0 : i1 to i32
    %c0_i32_0 = arith.constant 0 : i32
    %2 = arith.cmpi ne, %1, %c0_i32_0 : i32
    scf.if %2 {
      %cst_10 = arith.constant 0.000000e+00 : f32
      %12 = vector.broadcast %cst_10 : f32 to vector<512x64xf32>
      %c0_11 = arith.constant 0 : index
      %c0_12 = arith.constant 0 : index
      %13 = vector.load %arg8[%c0_11, %c0_12] : memref<512x64xf32, #tpu.memory_space<vmem>>, vector<512x64xf32>
      tpu.vector_store %arg8[%c0_11, %c0_12], %12 {strides = array<i32>} : memref<512x64xf32, #tpu.memory_space<vmem>>, vector<512x64xf32>,
    } else {
    }
    %c0 = arith.constant 0 : index
    %c0_1 = arith.constant 0 : index
    %3 = vector.load %arg3[%c0, %c0_1] : memref<512x343xbf16, #tpu.memory_space<vmem>>, vector<512x343xbf16>
    %c0_2 = arith.constant 0 : index
    %c0_3 = arith.constant 0 : index
    %4 = vector.load %arg8[%c0_2, %c0_3] : memref<512x64xf32, #tpu.memory_space<vmem>>, vector<512x64xf32>
    %c0_4 = arith.constant 0 : index
    %c0_5 = arith.constant 0 : index
    %5 = vector.load %arg4[%c0_4, %c0_5] : memref<343x64xbf16, #tpu.memory_space<vmem>>, vector<343x64xbf16>
    %cst = arith.constant dense<0.000000e+00> : vector<512x64xf32>
    %6 = tpu.matmul %3, %5, %cst {dimension_numbers = #tpu.dot_dimension_numbers<[1], [0], [0], [1], [0, 0, 1, 1], [], []>} : vector<512x343xbf16>, vector<343x64xbf16>, vector<512x64xf32> -> vector<512x64xf32>
    %7 = arith.addf %4, %6 : vector<512x64xf32>
    %c0_6 = arith.constant 0 : index
    %c0_7 = arith.constant 0 : index
    %8 = vector.load %arg8[%c0_6, %c0_7] : memref<512x64xf32, #tpu.memory_space<vmem>>, vector<512x64xf32>
    tpu.vector_store %arg8[%c0_6, %c0_7], %7 {strides = array<i32>} : memref<512x64xf32, #tpu.memory_space<vmem>>, vector<512x64xf32>,
    %c0_i32_8 = arith.constant 0 : i32
    %9 = arith.cmpi eq, %arg2, %c0_i32_8 : i32
    %10 = arith.extui %9 : i1 to i32
    %c0_i32_9 = arith.constant 0 : i32
    %11 = arith.cmpi ne, %10, %c0_i32_9 : i32
    scf.if %11 {
      %c0_10 = arith.constant 0 : index
      %c0_11 = arith.constant 0 : index
      %12 = vector.load %arg8[%c0_10, %c0_11] : memref<512x64xf32, #tpu.memory_space<vmem>>, vector<512x64xf32>
      %13 = arith.truncf %12 : vector<512x64xf32> to vector<512x64xbf16>
      %c0_12 = arith.constant 0 : index
      %c0_13 = arith.constant 0 : index
      %14 = vector.load %arg5[%c0_12, %c0_13] : memref<512x64xbf16, #tpu.memory_space<vmem>>, vector<512x64xbf16>
      tpu.vector_store %arg5[%c0_12, %c0_13], %13 {strides = array<i32>} : memref<512x64xbf16, #tpu.memory_space<vmem>>, vector<512x64xbf16>,
      %cst_14 = arith.constant dense<0.000000e+00> : vector<64xf32>
      %15 = vector.multi_reduction <add>, %12, %cst_14 [0] : vector<512x64xf32> to vector<64xf32>
      %16 = vector.shape_cast %15 : vector<64xf32> to vector<1x64xf32>
      %17 = vector.shape_cast %16 : vector<1x64xf32> to vector<1x1x64xf32>
      %c0_15 = arith.constant 0 : index
      %c0_16 = arith.constant 0 : index
      %c0_17 = arith.constant 0 : index
      %18 = vector.load %arg6[%c0_15, %c0_16, %c0_17] : memref<1x1x64xf32, #tpu.memory_space<vmem>>, vector<1x1x64xf32>
      tpu.vector_store %arg6[%c0_15, %c0_16, %c0_17], %17 {strides = array<i32>} : memref<1x1x64xf32, #tpu.memory_space<vmem>>, vector<1x1x64xf32>,
      %19 = arith.mulf %12, %12 : vector<512x64xf32>
      %cst_18 = arith.constant dense<0.000000e+00> : vector<64xf32>
      %20 = vector.multi_reduction <add>, %19, %cst_18 [0] : vector<512x64xf32> to vector<64xf32>
      %21 = vector.shape_cast %20 : vector<64xf32> to vector<1x64xf32>
      %22 = vector.shape_cast %21 : vector<1x64xf32> to vector<1x1x64xf32>
      %c0_19 = arith.constant 0 : index
      %c0_20 = arith.constant 0 : index
      %c0_21 = arith.constant 0 : index
      %23 = vector.load %arg7[%c0_19, %c0_20, %c0_21] : memref<1x1x64xf32, #tpu.memory_space<vmem>>, vector<1x1x64xf32>
      tpu.vector_store %arg7[%c0_19, %c0_20, %c0_21], %22 {strides = array<i32>} : memref<1x1x64xf32, #tpu.memory_space<vmem>>, vector<1x1x64xf32>,
    } else {
    }
    return
  }
  func.func @transform_0(%arg0: i32, %arg1: i32, %arg2: i32) -> (i32, i32) {
    %c0_i32 = arith.constant 0 : i32
    return %arg0, %arg2 : i32, i32
  }
  func.func @transform_1(%arg0: i32, %arg1: i32, %arg2: i32) -> (i32, i32) {
    %c0_i32 = arith.constant 0 : i32
    return %arg2, %arg1 : i32, i32
  }
  func.func @transform_2(%arg0: i32, %arg1: i32, %arg2: i32) -> (i32, i32) {
    %c0_i32 = arith.constant 0 : i32
    return %arg0, %arg1 : i32, i32
  }
  func.func @transform_3(%arg0: i32, %arg1: i32, %arg2: i32) -> (i32, i32, i32) {
    %c0_i32 = arith.constant 0 : i32
    %c0_i32_0 = arith.constant 0 : i32
    return %arg0, %c0_i32, %arg1 : i32, i32, i32
  }
  func.func @transform_4(%arg0: i32, %arg1: i32, %arg2: i32) -> (i32, i32, i32) {
    %c0_i32 = arith.constant 0 : i32
    %c0_i32_0 = arith.constant 0 : i32
    return %arg0, %c0_i32, %arg1 : i32, i32, i32
  }
}

module attributes {stable_mosaic.version = 11 : i64} {
  func.func @_affine_kernel(%arg0: i32, %arg1: memref<512x64xbf16, #tpu.memory_space<vmem>>, %arg2: memref<1x64xf32, #tpu.memory_space<vmem>>, %arg3: memref<1x64xf32, #tpu.memory_space<vmem>>, %arg4: memref<512x64xbf16, #tpu.memory_space<vmem>>) attributes {dimension_semantics = [#tpu.dimension_semantics<parallel>], iteration_bounds = array<i64: 1>, scalar_prefetch = 0 : i64, scratch_operands = 0 : i64, tpu.core_type = #tpu.core_type<tc>, window_params = [{transform_indices = @transform_0, window_bounds = array<i64: 512, 64>}, {pipeline_mode = #tpu.pipeline_mode<synchronous>, transform_indices = @transform_1, window_bounds = array<i64: 1, 64>}, {pipeline_mode = #tpu.pipeline_mode<synchronous>, transform_indices = @transform_2, window_bounds = array<i64: 1, 64>}, {transform_indices = @transform_3, window_bounds = array<i64: 512, 64>}]} {
    %c0 = arith.constant 0 : index
    %c0_0 = arith.constant 0 : index
    %0 = vector.load %arg1[%c0, %c0_0] : memref<512x64xbf16, #tpu.memory_space<vmem>>, vector<512x64xbf16>
    %1 = arith.extf %0 : vector<512x64xbf16> to vector<512x64xf32>
    %c0_1 = arith.constant 0 : index
    %c0_2 = arith.constant 0 : index
    %2 = vector.load %arg2[%c0_1, %c0_2] : memref<1x64xf32, #tpu.memory_space<vmem>>, vector<1x64xf32>
    %3 = vector.broadcast %2 : vector<1x64xf32> to vector<512x64xf32>
    %4 = arith.mulf %1, %3 : vector<512x64xf32>
    %c0_3 = arith.constant 0 : index
    %c0_4 = arith.constant 0 : index
    %5 = vector.load %arg3[%c0_3, %c0_4] : memref<1x64xf32, #tpu.memory_space<vmem>>, vector<1x64xf32>
    %6 = vector.broadcast %5 : vector<1x64xf32> to vector<512x64xf32>
    %7 = arith.addf %4, %6 : vector<512x64xf32>
    %cst = arith.constant 0.000000e+00 : f32
    %8 = vector.broadcast %cst : f32 to vector<512x64xf32>
    %9 = arith.maximumf %7, %8 : vector<512x64xf32>
    %10 = arith.truncf %9 : vector<512x64xf32> to vector<512x64xbf16>
    %c0_5 = arith.constant 0 : index
    %c0_6 = arith.constant 0 : index
    %11 = vector.load %arg4[%c0_5, %c0_6] : memref<512x64xbf16, #tpu.memory_space<vmem>>, vector<512x64xbf16>
    tpu.vector_store %arg4[%c0_5, %c0_6], %10 {strides = array<i32>} : memref<512x64xbf16, #tpu.memory_space<vmem>>, vector<512x64xbf16>,
    return
  }
  func.func @transform_0(%arg0: i32) -> (i32, i32) {
    %c0_i32 = arith.constant 0 : i32
    %c0_i32_0 = arith.constant 0 : i32
    return %arg0, %c0_i32 : i32, i32
  }
  func.func @transform_1(%arg0: i32) -> (i32, i32) {
    %c0_i32 = arith.constant 0 : i32
    %c0_i32_0 = arith.constant 0 : i32
    %c0_i32_1 = arith.constant 0 : i32
    return %c0_i32, %c0_i32_0 : i32, i32
  }
  func.func @transform_2(%arg0: i32) -> (i32, i32) {
    %c0_i32 = arith.constant 0 : i32
    %c0_i32_0 = arith.constant 0 : i32
    %c0_i32_1 = arith.constant 0 : i32
    return %c0_i32, %c0_i32_0 : i32, i32
  }
  func.func @transform_3(%arg0: i32) -> (i32, i32) {
    %c0_i32 = arith.constant 0 : i32
    %c0_i32_0 = arith.constant 0 : i32
    return %arg0, %c0_i32 : i32, i32
  }
}

</mosaic_0001>

<bundles_post_ra>
// kernel: stem_forward.3
= control target key start
LH: loop header
LB: loop body
LE: loop exit
PB: predicated region body
PF: predicated region fallthrough
CT: control target
= control target key end

     0   :  { %vm406_vm0 = vcmask 519168   ;;  %s1146_s0 = inlined_call_operand.vmem [shape: bf16[512,64], index: 0, kind: input, shape index: {}]   ;;  %s1147_s1 = inlined_call_operand.vmem [shape: f32[1,64], index: 1, kind: input, shape index: {}]   ;;  %s1148_s2 = inlined_call_operand.vmem [shape: f32[1,64], index: 2, kind: input, shape index: {}]   ;;  %s1149_s3 = inlined_call_operand.vmem [shape: bf16[512,64], index: 3, kind: output, shape index: {}]  }
   0x1   :  { %v476_v0 = vld [vmem:[%s1146_s0] sm:$0xff]   ;;  %v603_v5 = vld [vmem:[%s1146_s0 + $0x8] sm:$0xff]   ;;  %v604_v8 = vld [vmem:[%s1146_s0 + $0x10] sm:$0xff]  }
   0x2   :  { %v662_v1 = vld [vmem:[%s1147_s1] ss:$0 sm:$0xff]  ;;  %v477_v2 = vunpack.c.l.bf16 %v476_v0  ;;  %v478_v4 = vunpack.c.h.bf16 %v476_v0  ;;  %v481_v6 = vunpack.c.l.bf16 %v603_v5  ;;  %v482_v7 = vunpack.c.h.bf16 %v603_v5  ;;  %v605_v9 = vld [vmem:[%s1146_s0 + $0x18] sm:$0xff]   ;;  %v607_v39 = vld [vmem:[%s1146_s0 + $0x28] sm:$0xff]  }
   0x3   :  { %v667_v3 = vld [vmem:[%s1148_s2] ss:$0 sm:$0xff]  ;;  %v485_v12 = vunpack.c.l.bf16 %v604_v8  ;;  %v486_v13 = vunpack.c.h.bf16 %v604_v8  ;;  %v489_v16 = vunpack.c.l.bf16 %v605_v9  ;;  %v490_v17 = vunpack.c.h.bf16 %v605_v9  ;;  %v608_v44 = vld [vmem:[%s1146_s0 + $0x30] sm:$0xff]   ;;  %v609_v49 = vld [vmem:[%s1146_s0 + $0x38] sm:$0xff]  }
   0x4   :  { %v146_v10 = vmul.f32 %v662_v1, %v477_v2  ;;  %v147_v11 = vmul.f32 %v662_v1, %v478_v4  ;;  %v148_v14 = vmul.f32 %v662_v1, %v481_v6  ;;  %v149_v15 = vmul.f32 %v662_v1, %v482_v7  ;;  %v606_v34 = vld [vmem:[%s1146_s0 + $0x20] sm:$0xff]  }
   0x5   :  { %v150_v20 = vmul.f32 %v662_v1, %v485_v12  ;;  %v151_v21 = vmul.f32 %v662_v1, %v486_v13  ;;  %v152_v24 = vmul.f32 %v662_v1, %v489_v16  ;;  %v153_v25 = vmul.f32 %v662_v1, %v490_v17  ;;  %v610_v16 = vld [vmem:[%s1146_s0 + $0x40] sm:$0xff]  }
   0x6   :  { %v214_v18 = vadd.f32 %v667_v3, %v146_v10  ;;  %v215_v19 = vadd.f32 %v667_v3, %v147_v11  ;;  %v216_v22 = vadd.f32 %v667_v3, %v148_v14  ;;  %v217_v23 = vadd.f32 %v667_v3, %v149_v15 }
   0x7   :  { %v218_v28 = vadd.f32 %v667_v3, %v150_v20  ;;  %v219_v29 = vadd.f32 %v667_v3, %v151_v21  ;;  %v220_v32 = vadd.f32 %v667_v3, %v152_v24  ;;  %v221_v33 = vadd.f32 %v667_v3, %v153_v25  ;;  %v611_v21 = vld [vmem:[%s1146_s0 + $0x48] sm:$0xff]  }
   0x8   :  { %v278_v26 = vmax.f32 %v214_v18, 0.0  ;;  %v279_v27 = vmax.f32 %v215_v19, 0.0  ;;  %v280_v30 = vmax.f32 %v216_v22, 0.0  ;;  %v281_v31 = vmax.f32 %v217_v23, 0.0 }
   0x9   :  { %v282_v37 = vmax.f32 %v218_v28, 0.0  ;;  %v283_v38 = vmax.f32 %v219_v29, 0.0  ;;  %v284_v42 = vmax.f32 %v220_v32, 0.0  ;;  %v285_v43 = vmax.f32 %v221_v33, 0.0 }
   0xa   :  { %v342_v35 = vpack.c.bf16 %v278_v26, %v278_v26  ;;  %v343_v36 = vpack.c.bf16 %v279_v27, %v279_v27  ;;  %v344_v40 = vpack.c.bf16 %v280_v30, %v280_v30  ;;  %v345_v41 = vpack.c.bf16 %v281_v31, %v281_v31  ;;  %v612_v26 = vld [vmem:[%s1146_s0 + $0x50] sm:$0xff]   ;;  %v613_v31 = vld [vmem:[%s1146_s0 + $0x58] sm:$0xff]  }
   0xb   :  { %v346_v45 = vpack.c.bf16 %v282_v37, %v282_v37  ;;  %v347_v46 = vpack.c.bf16 %v283_v38, %v283_v38  ;;  %v493_v47 = vunpack.c.l.bf16 %v606_v34  ;;  %v494_v48 = vunpack.c.h.bf16 %v606_v34 }
   0xc   :  { %407 = vst.msk [vmem:[%s1149_s3] sm:$0xf] %vm406_vm0, %v342_v35  ;;  %v348_v50 = vpack.c.bf16 %v284_v42, %v284_v42  ;;  %v349_v51 = vpack.c.bf16 %v285_v43, %v285_v43  ;;  %v497_v52 = vunpack.c.l.bf16 %v607_v39  ;;  %v498_v53 = vunpack.c.h.bf16 %v607_v39 }
   0xd   :  { %408 = vst.msk [vmem:[%s1149_s3 + $0x4] sm:$0xf] %vm406_vm0, %v343_v36  ;;  %v154_v54 = vmul.f32 %v662_v1, %v493_v47  ;;  %v155_v55 = vmul.f32 %v662_v1, %v494_v48  ;;  %v501_v56 = vunpack.c.l.bf16 %v608_v44  ;;  %v502_v57 = vunpack.c.h.bf16 %v608_v44 }
   0xe   :  { %409 = vst.msk [vmem:[%s1149_s3 + $0x8] sm:$0xf] %vm406_vm0, %v344_v40  ;;  %v156_v58 = vmul.f32 %v662_v1, %v497_v52  ;;  %v157_v59 = vmul.f32 %v662_v1, %v498_v53  ;;  %v505_v60 = vunpack.c.l.bf16 %v609_v49  ;;  %v506_v61 = vunpack.c.h.bf16 %v609_v49 }
   0xf   :  { %410 = vst.msk [vmem:[%s1149_s3 + $0xc] sm:$0xf] %vm406_vm0, %v345_v41  ;;  %v222_v62 = vadd.f32 %v667_v3, %v154_v54  ;;  %v223_v63 = vadd.f32 %v667_v3, %v155_v55  ;;  %v158_v0 = vmul.f32 %v662_v1, %v501_v56  ;;  %v159_v2 = vmul.f32 %v662_v1, %v502_v57 }
  0x10   :  { %411 = vst.msk [vmem:[%s1149_s3 + $0x10] sm:$0xf] %vm406_vm0, %v346_v45  ;;  %v224_v4 = vadd.f32 %v667_v3, %v156_v58  ;;  %v225_v5 = vadd.f32 %v667_v3, %v157_v59  ;;  %v160_v6 = vmul.f32 %v662_v1, %v505_v60  ;;  %v161_v7 = vmul.f32 %v662_v1, %v506_v61  ;;  %v614_v60 = vld [vmem:[%s1146_s0 + $0x60] sm:$0xff]  }
  0x11   :  { %412 = vst.msk [vmem:[%s1149_s3 + $0x14] sm:$0xf] %vm406_vm0, %v347_v46  ;;  %v286_v8 = vmax.f32 %v222_v62, 0.0  ;;  %v287_v9 = vmax.f32 %v223_v63, 0.0  ;;  %v226_v10 = vadd.f32 %v667_v3, %v158_v0  ;;  %v227_v11 = vadd.f32 %v667_v3, %v159_v2  ;;  %v615_v2 = vld [vmem:[%s1146_s0 + $0x68] sm:$0xff]  }
  0x12   :  { %413 = vst.msk [vmem:[%s1149_s3 + $0x18] sm:$0xf] %vm406_vm0, %v348_v50  ;;  %v288_v12 = vmax.f32 %v224_v4, 0.0  ;;  %v289_v13 = vmax.f32 %v225_v5, 0.0  ;;  %v228_v14 = vadd.f32 %v667_v3, %v160_v6  ;;  %v229_v15 = vadd.f32 %v667_v3, %v161_v7 }
  0x13   :  { %414 = vst.msk [vmem:[%s1149_s3 + $0x1c] sm:$0xf] %vm406_vm0, %v349_v51  ;;  %v350_v17 = vpack.c.bf16 %v286_v8, %v286_v8  ;;  %v351_v18 = vpack.c.bf16 %v287_v9, %v287_v9  ;;  %v290_v19 = vmax.f32 %v226_v10, 0.0  ;;  %v291_v20 = vmax.f32 %v227_v11, 0.0  ;;  %v616_v8 = vld [vmem:[%s1146_s0 + $0x70] sm:$0xff]  }
  0x14   :  { %v352_v22 = vpack.c.bf16 %v288_v12, %v288_v12  ;;  %v353_v23 = vpack.c.bf16 %v289_v13, %v289_v13  ;;  %v292_v24 = vmax.f32 %v228_v14, 0.0  ;;  %v293_v25 = vmax.f32 %v229_v15, 0.0  ;;  %v617_v13 = vld [vmem:[%s1146_s0 + $0x78] sm:$0xff]  }
  0x15   :  { %415 = vst.msk [vmem:[%s1149_s3 + $0x20] sm:$0xf] %vm406_vm0, %v350_v17  ;;  %v354_v27 = vpack.c.bf16 %v290_v19, %v290_v19  ;;  %v355_v28 = vpack.c.bf16 %v291_v20, %v291_v20  ;;  %v509_v29 = vunpack.c.l.bf16 %v610_v16  ;;  %v510_v30 = vunpack.c.h.bf16 %v610_v16 }
  0x16   :  { %416 = vst.msk [vmem:[%s1149_s3 + $0x24] sm:$0xf] %vm406_vm0, %v351_v18  ;;  %v356_v32 = vpack.c.bf16 %v292_v24, %v292_v24  ;;  %v357_v33 = vpack.c.bf16 %v293_v25, %v293_v25  ;;  %v513_v34 = vunpack.c.l.bf16 %v611_v21  ;;  %v514_v35 = vunpack.c.h.bf16 %v611_v21 }
  0x17   :  { %417 = vst.msk [vmem:[%s1149_s3 + $0x28] sm:$0xf] %vm406_vm0, %v352_v22  ;;  %v162_v36 = vmul.f32 %v662_v1, %v509_v29  ;;  %v163_v37 = vmul.f32 %v662_v1, %v510_v30  ;;  %v517_v38 = vunpack.c.l.bf16 %v612_v26  ;;  %v518_v39 = vunpack.c.h.bf16 %v612_v26 }
  0x18   :  { %418 = vst.msk [vmem:[%s1149_s3 + $0x2c] sm:$0xf] %vm406_vm0, %v353_v23  ;;  %v164_v40 = vmul.f32 %v662_v1, %v513_v34  ;;  %v165_v41 = vmul.f32 %v662_v1, %v514_v35  ;;  %v521_v42 = vunpack.c.l.bf16 %v613_v31  ;;  %v522_v43 = vunpack.c.h.bf16 %v613_v31 }
  0x19   :  { %419 = vst.msk [vmem:[%s1149_s3 + $0x30] sm:$0xf] %vm406_vm0, %v354_v27  ;;  %v230_v44 = vadd.f32 %v667_v3, %v162_v36  ;;  %v231_v45 = vadd.f32 %v667_v3, %v163_v37  ;;  %v166_v46 = vmul.f32 %v662_v1, %v517_v38  ;;  %v167_v47 = vmul.f32 %v662_v1, %v518_v39 }
  0x1a   :  { %420 = vst.msk [vmem:[%s1149_s3 + $0x34] sm:$0xf] %vm406_vm0, %v355_v28  ;;  %v232_v48 = vadd.f32 %v667_v3, %v164_v40  ;;  %v233_v49 = vadd.f32 %v667_v3, %v165_v41  ;;  %v168_v50 = vmul.f32 %v662_v1, %v521_v42  ;;  %v169_v51 = vmul.f32 %v662_v1, %v522_v43  ;;  %v618_v42 = vld [vmem:[%s1146_s0 + $0x80] sm:$0xff]  }
  0x1b   :  { %421 = vst.msk [vmem:[%s1149_s3 + $0x38] sm:$0xf] %vm406_vm0, %v356_v32  ;;  %v294_v52 = vmax.f32 %v230_v44, 0.0  ;;  %v295_v53 = vmax.f32 %v231_v45, 0.0  ;;  %v234_v54 = vadd.f32 %v667_v3, %v166_v46  ;;  %v235_v55 = vadd.f32 %v667_v3, %v167_v47  ;;  %v619_v47 = vld [vmem:[%s1146_s0 + $0x88] sm:$0xff]  }
  0x1c   :  { %422 = vst.msk [vmem:[%s1149_s3 + $0x3c] sm:$0xf] %vm406_vm0, %v357_v33  ;;  %v296_v56 = vmax.f32 %v232_v48, 0.0  ;;  %v297_v57 = vmax.f32 %v233_v49, 0.0  ;;  %v236_v58 = vadd.f32 %v667_v3, %v168_v50  ;;  %v237_v59 = vadd.f32 %v667_v3, %v169_v51 }
  0x1d   :  { %v358_v61 = vpack.c.bf16 %v294_v52, %v294_v52  ;;  %v359_v62 = vpack.c.bf16 %v295_v53, %v295_v53  ;;  %v298_v63 = vmax.f32 %v234_v54, 0.0  ;;  %v299_v0 = vmax.f32 %v235_v55, 0.0  ;;  %v620_v52 = vld [vmem:[%s1146_s0 + $0x90] sm:$0xff]  }
  0x1e   :  { %v360_v4 = vpack.c.bf16 %v296_v56, %v296_v56  ;;  %v361_v5 = vpack.c.bf16 %v297_v57, %v297_v57  ;;  %v300_v6 = vmax.f32 %v236_v58, 0.0  ;;  %v301_v7 = vmax.f32 %v237_v59, 0.0  ;;  %v621_v57 = vld [vmem:[%s1146_s0 + $0x98] sm:$0xff]  }
  0x1f   :  { %423 = vst.msk [vmem:[%s1149_s3 + $0x40] sm:$0xf] %vm406_vm0, %v358_v61  ;;  %v362_v9 = vpack.c.bf16 %v298_v63, %v298_v63  ;;  %v363_v10 = vpack.c.bf16 %v299_v0, %v299_v0  ;;  %v525_v11 = vunpack.c.l.bf16 %v614_v60  ;;  %v526_v12 = vunpack.c.h.bf16 %v614_v60 }
  0x20   :  { %424 = vst.msk [vmem:[%s1149_s3 + $0x44] sm:$0xf] %vm406_vm0, %v359_v62  ;;  %v364_v14 = vpack.c.bf16 %v300_v6, %v300_v6  ;;  %v365_v15 = vpack.c.bf16 %v301_v7, %v301_v7  ;;  %v529_v16 = vunpack.c.l.bf16 %v615_v2  ;;  %v530_v17 = vunpack.c.h.bf16 %v615_v2 }
  0x21   :  { %425 = vst.msk [vmem:[%s1149_s3 + $0x48] sm:$0xf] %vm406_vm0, %v360_v4  ;;  %v170_v18 = vmul.f32 %v662_v1, %v525_v11  ;;  %v171_v19 = vmul.f32 %v662_v1, %v526_v12  ;;  %v533_v20 = vunpack.c.l.bf16 %v616_v8  ;;  %v534_v21 = vunpack.c.h.bf16 %v616_v8 }
  0x22   :  { %426 = vst.msk [vmem:[%s1149_s3 + $0x4c] sm:$0xf] %vm406_vm0, %v361_v5  ;;  %v172_v22 = vmul.f32 %v662_v1, %v529_v16  ;;  %v173_v23 = vmul.f32 %v662_v1, %v530_v17  ;;  %v537_v24 = vunpack.c.l.bf16 %v617_v13  ;;  %v538_v25 = vunpack.c.h.bf16 %v617_v13 }
  0x23   :  { %427 = vst.msk [vmem:[%s1149_s3 + $0x50] sm:$0xf] %vm406_vm0, %v362_v9  ;;  %v238_v26 = vadd.f32 %v667_v3, %v170_v18  ;;  %v239_v27 = vadd.f32 %v667_v3, %v171_v19  ;;  %v174_v28 = vmul.f32 %v662_v1, %v533_v20  ;;  %v175_v29 = vmul.f32 %v662_v1, %v534_v21 }
  0x24   :  { %428 = vst.msk [vmem:[%s1149_s3 + $0x54] sm:$0xf] %vm406_vm0, %v363_v10  ;;  %v240_v30 = vadd.f32 %v667_v3, %v172_v22  ;;  %v241_v31 = vadd.f32 %v667_v3, %v173_v23  ;;  %v176_v32 = vmul.f32 %v662_v1, %v537_v24  ;;  %v177_v33 = vmul.f32 %v662_v1, %v538_v25  ;;  %v622_v24 = vld [vmem:[%s1146_s0 + $0xa0] sm:$0xff]  }
  0x25   :  { %429 = vst.msk [vmem:[%s1149_s3 + $0x58] sm:$0xf] %vm406_vm0, %v364_v14  ;;  %v302_v34 = vmax.f32 %v238_v26, 0.0  ;;  %v303_v35 = vmax.f32 %v239_v27, 0.0  ;;  %v242_v36 = vadd.f32 %v667_v3, %v174_v28  ;;  %v243_v37 = vadd.f32 %v667_v3, %v175_v29  ;;  %v623_v29 = vld [vmem:[%s1146_s0 + $0xa8] sm:$0xff]  }
  0x26   :  { %430 = vst.msk [vmem:[%s1149_s3 + $0x5c] sm:$0xf] %vm406_vm0, %v365_v15  ;;  %v304_v38 = vmax.f32 %v240_v30, 0.0  ;;  %v305_v39 = vmax.f32 %v241_v31, 0.0  ;;  %v244_v40 = vadd.f32 %v667_v3, %v176_v32  ;;  %v245_v41 = vadd.f32 %v667_v3, %v177_v33 }
  0x27   :  { %v366_v43 = vpack.c.bf16 %v302_v34, %v302_v34  ;;  %v367_v44 = vpack.c.bf16 %v303_v35, %v303_v35  ;;  %v306_v45 = vmax.f32 %v242_v36, 0.0  ;;  %v307_v46 = vmax.f32 %v243_v37, 0.0  ;;  %v624_v34 = vld [vmem:[%s1146_s0 + $0xb0] sm:$0xff]  }
  0x28   :  { %v368_v48 = vpack.c.bf16 %v304_v38, %v304_v38  ;;  %v369_v49 = vpack.c.bf16 %v305_v39, %v305_v39  ;;  %v308_v50 = vmax.f32 %v244_v40, 0.0  ;;  %v309_v51 = vmax.f32 %v245_v41, 0.0  ;;  %v625_v39 = vld [vmem:[%s1146_s0 + $0xb8] sm:$0xff]  }
  0x29   :  { %431 = vst.msk [vmem:[%s1149_s3 + $0x60] sm:$0xf] %vm406_vm0, %v366_v43  ;;  %v370_v53 = vpack.c.bf16 %v306_v45, %v306_v45  ;;  %v371_v54 = vpack.c.bf16 %v307_v46, %v307_v46  ;;  %v541_v55 = vunpack.c.l.bf16 %v618_v42  ;;  %v542_v56 = vunpack.c.h.bf16 %v618_v42 }
  0x2a   :  { %432 = vst.msk [vmem:[%s1149_s3 + $0x64] sm:$0xf] %vm406_vm0, %v367_v44  ;;  %v372_v58 = vpack.c.bf16 %v308_v50, %v308_v50  ;;  %v373_v59 = vpack.c.bf16 %v309_v51, %v309_v51  ;;  %v545_v60 = vunpack.c.l.bf16 %v619_v47  ;;  %v546_v61 = vunpack.c.h.bf16 %v619_v47 }
  0x2b   :  { %433 = vst.msk [vmem:[%s1149_s3 + $0x68] sm:$0xf] %vm406_vm0, %v368_v48  ;;  %v178_v62 = vmul.f32 %v662_v1, %v541_v55  ;;  %v179_v63 = vmul.f32 %v662_v1, %v542_v56  ;;  %v549_v0 = vunpack.c.l.bf16 %v620_v52  ;;  %v550_v2 = vunpack.c.h.bf16 %v620_v52 }
  0x2c   :  { %434 = vst.msk [vmem:[%s1149_s3 + $0x6c] sm:$0xf] %vm406_vm0, %v369_v49  ;;  %v180_v4 = vmul.f32 %v662_v1, %v545_v60  ;;  %v181_v5 = vmul.f32 %v662_v1, %v546_v61  ;;  %v553_v6 = vunpack.c.l.bf16 %v621_v57  ;;  %v554_v7 = vunpack.c.h.bf16 %v621_v57 }
  0x2d   :  { %435 = vst.msk [vmem:[%s1149_s3 + $0x70] sm:$0xf] %vm406_vm0, %v370_v53  ;;  %v246_v8 = vadd.f32 %v667_v3, %v178_v62  ;;  %v247_v9 = vadd.f32 %v667_v3, %v179_v63  ;;  %v182_v10 = vmul.f32 %v662_v1, %v549_v0  ;;  %v183_v11 = vmul.f32 %v662_v1, %v550_v2 }
  0x2e   :  { %436 = vst.msk [vmem:[%s1149_s3 + $0x74] sm:$0xf] %vm406_vm0, %v371_v54  ;;  %v248_v12 = vadd.f32 %v667_v3, %v180_v4  ;;  %v249_v13 = vadd.f32 %v667_v3, %v181_v5  ;;  %v184_v14 = vmul.f32 %v662_v1, %v553_v6  ;;  %v185_v15 = vmul.f32 %v662_v1, %v554_v7  ;;  %v626_v6 = vld [vmem:[%s1146_s0 + $0xc0] sm:$0xff]  }
  0x2f   :  { %437 = vst.msk [vmem:[%s1149_s3 + $0x78] sm:$0xf] %vm406_vm0, %v372_v58  ;;  %v310_v16 = vmax.f32 %v246_v8, 0.0  ;;  %v311_v17 = vmax.f32 %v247_v9, 0.0  ;;  %v250_v18 = vadd.f32 %v667_v3, %v182_v10  ;;  %v251_v19 = vadd.f32 %v667_v3, %v183_v11  ;;  %v627_v11 = vld [vmem:[%s1146_s0 + $0xc8] sm:$0xff]  }
  0x30   :  { %438 = vst.msk [vmem:[%s1149_s3 + $0x7c] sm:$0xf] %vm406_vm0, %v373_v59  ;;  %v312_v20 = vmax.f32 %v248_v12, 0.0  ;;  %v313_v21 = vmax.f32 %v249_v13, 0.0  ;;  %v252_v22 = vadd.f32 %v667_v3, %v184_v14  ;;  %v253_v23 = vadd.f32 %v667_v3, %v185_v15 }
  0x31   :  { %v374_v25 = vpack.c.bf16 %v310_v16, %v310_v16  ;;  %v375_v26 = vpack.c.bf16 %v311_v17, %v311_v17  ;;  %v314_v27 = vmax.f32 %v250_v18, 0.0  ;;  %v315_v28 = vmax.f32 %v251_v19, 0.0  ;;  %v628_v16 = vld [vmem:[%s1146_s0 + $0xd0] sm:$0xff]  }
  0x32   :  { %v376_v30 = vpack.c.bf16 %v312_v20, %v312_v20  ;;  %v377_v31 = vpack.c.bf16 %v313_v21, %v313_v21  ;;  %v316_v32 = vmax.f32 %v252_v22, 0.0  ;;  %v317_v33 = vmax.f32 %v253_v23, 0.0  ;;  %v629_v21 = vld [vmem:[%s1146_s0 + $0xd8] sm:$0xff]  }
  0x33   :  { %439 = vst.msk [vmem:[%s1149_s3 + $0x80] sm:$0xf] %vm406_vm0, %v374_v25  ;;  %v378_v35 = vpack.c.bf16 %v314_v27, %v314_v27  ;;  %v379_v36 = vpack.c.bf16 %v315_v28, %v315_v28  ;;  %v557_v37 = vunpack.c.l.bf16 %v622_v24  ;;  %v558_v38 = vunpack.c.h.bf16 %v622_v24 }
  0x34   :  { %440 = vst.msk [vmem:[%s1149_s3 + $0x84] sm:$0xf] %vm406_vm0, %v375_v26  ;;  %v380_v40 = vpack.c.bf16 %v316_v32, %v316_v32  ;;  %v381_v41 = vpack.c.bf16 %v317_v33, %v317_v33  ;;  %v561_v42 = vunpack.c.l.bf16 %v623_v29  ;;  %v562_v43 = vunpack.c.h.bf16 %v623_v29 }
  0x35   :  { %441 = vst.msk [vmem:[%s1149_s3 + $0x88] sm:$0xf] %vm406_vm0, %v376_v30  ;;  %v186_v44 = vmul.f32 %v662_v1, %v557_v37  ;;  %v187_v45 = vmul.f32 %v662_v1, %v558_v38  ;;  %v565_v46 = vunpack.c.l.bf16 %v624_v34  ;;  %v566_v47 = vunpack.c.h.bf16 %v624_v34 }
  0x36   :  { %442 = vst.msk [vmem:[%s1149_s3 + $0x8c] sm:$0xf] %vm406_vm0, %v377_v31  ;;  %v188_v48 = vmul.f32 %v662_v1, %v561_v42  ;;  %v189_v49 = vmul.f32 %v662_v1, %v562_v43  ;;  %v569_v50 = vunpack.c.l.bf16 %v625_v39  ;;  %v570_v51 = vunpack.c.h.bf16 %v625_v39 }
  0x37   :  { %443 = vst.msk [vmem:[%s1149_s3 + $0x90] sm:$0xf] %vm406_vm0, %v378_v35  ;;  %v254_v52 = vadd.f32 %v667_v3, %v186_v44  ;;  %v255_v53 = vadd.f32 %v667_v3, %v187_v45  ;;  %v190_v54 = vmul.f32 %v662_v1, %v565_v46  ;;  %v191_v55 = vmul.f32 %v662_v1, %v566_v47 }
  0x38   :  { %444 = vst.msk [vmem:[%s1149_s3 + $0x94] sm:$0xf] %vm406_vm0, %v379_v36  ;;  %v256_v56 = vadd.f32 %v667_v3, %v188_v48  ;;  %v257_v57 = vadd.f32 %v667_v3, %v189_v49  ;;  %v192_v58 = vmul.f32 %v662_v1, %v569_v50  ;;  %v193_v59 = vmul.f32 %v662_v1, %v570_v51  ;;  %v630_v50 = vld [vmem:[%s1146_s0 + $0xe0] sm:$0xff]  }
  0x39   :  { %445 = vst.msk [vmem:[%s1149_s3 + $0x98] sm:$0xf] %vm406_vm0, %v380_v40  ;;  %v318_v60 = vmax.f32 %v254_v52, 0.0  ;;  %v319_v61 = vmax.f32 %v255_v53, 0.0  ;;  %v258_v62 = vadd.f32 %v667_v3, %v190_v54  ;;  %v259_v63 = vadd.f32 %v667_v3, %v191_v55  ;;  %v631_v55 = vld [vmem:[%s1146_s0 + $0xe8] sm:$0xff]  }
  0x3a   :  { %446 = vst.msk [vmem:[%s1149_s3 + $0x9c] sm:$0xf] %vm406_vm0, %v381_v41  ;;  %v320_v0 = vmax.f32 %v256_v56, 0.0  ;;  %v321_v2 = vmax.f32 %v257_v57, 0.0  ;;  %v260_v4 = vadd.f32 %v667_v3, %v192_v58  ;;  %v261_v5 = vadd.f32 %v667_v3, %v193_v59 }
  0x3b   :  { %v382_v7 = vpack.c.bf16 %v318_v60, %v318_v60  ;;  %v383_v8 = vpack.c.bf16 %v319_v61, %v319_v61  ;;  %v322_v9 = vmax.f32 %v258_v62, 0.0  ;;  %v323_v10 = vmax.f32 %v259_v63, 0.0  ;;  %v632_v60 = vld [vmem:[%s1146_s0 + $0xf0] sm:$0xff]  }
  0x3c   :  { %v384_v12 = vpack.c.bf16 %v320_v0, %v320_v0  ;;  %v385_v13 = vpack.c.bf16 %v321_v2, %v321_v2  ;;  %v324_v14 = vmax.f32 %v260_v4, 0.0  ;;  %v325_v15 = vmax.f32 %v261_v5, 0.0  ;;  %v633_v2 = vld [vmem:[%s1146_s0 + $0xf8] sm:$0xff]  }
  0x3d   :  { %447 = vst.msk [vmem:[%s1149_s3 + $0xa0] sm:$0xf] %vm406_vm0, %v382_v7  ;;  %v386_v17 = vpack.c.bf16 %v322_v9, %v322_v9  ;;  %v387_v18 = vpack.c.bf16 %v323_v10, %v323_v10  ;;  %v573_v19 = vunpack.c.l.bf16 %v626_v6  ;;  %v574_v20 = vunpack.c.h.bf16 %v626_v6 }
  0x3e   :  { %448 = vst.msk [vmem:[%s1149_s3 + $0xa4] sm:$0xf] %vm406_vm0, %v383_v8  ;;  %v388_v22 = vpack.c.bf16 %v324_v14, %v324_v14  ;;  %v389_v23 = vpack.c.bf16 %v325_v15, %v325_v15  ;;  %v577_v24 = vunpack.c.l.bf16 %v627_v11  ;;  %v578_v25 = vunpack.c.h.bf16 %v627_v11 }
  0x3f   :  { %449 = vst.msk [vmem:[%s1149_s3 + $0xa8] sm:$0xf] %vm406_vm0, %v384_v12  ;;  %v194_v26 = vmul.f32 %v662_v1, %v573_v19  ;;  %v195_v27 = vmul.f32 %v662_v1, %v574_v20  ;;  %v581_v28 = vunpack.c.l.bf16 %v628_v16  ;;  %v582_v29 = vunpack.c.h.bf16 %v628_v16 }
  0x40   :  { %450 = vst.msk [vmem:[%s1149_s3 + $0xac] sm:$0xf] %vm406_vm0, %v385_v13  ;;  %v196_v30 = vmul.f32 %v662_v1, %v577_v24  ;;  %v197_v31 = vmul.f32 %v662_v1, %v578_v25  ;;  %v585_v32 = vunpack.c.l.bf16 %v629_v21  ;;  %v586_v33 = vunpack.c.h.bf16 %v629_v21 }
  0x41   :  { %451 = vst.msk [vmem:[%s1149_s3 + $0xb0] sm:$0xf] %vm406_vm0, %v386_v17  ;;  %v262_v34 = vadd.f32 %v667_v3, %v194_v26  ;;  %v263_v35 = vadd.f32 %v667_v3, %v195_v27  ;;  %v198_v36 = vmul.f32 %v662_v1, %v581_v28  ;;  %v199_v37 = vmul.f32 %v662_v1, %v582_v29 }
  0x42   :  { %452 = vst.msk [vmem:[%s1149_s3 + $0xb4] sm:$0xf] %vm406_vm0, %v387_v18  ;;  %v264_v38 = vadd.f32 %v667_v3, %v196_v30  ;;  %v265_v39 = vadd.f32 %v667_v3, %v197_v31  ;;  %v200_v40 = vmul.f32 %v662_v1, %v585_v32  ;;  %v201_v41 = vmul.f32 %v662_v1, %v586_v33 }
  0x43   :  { %453 = vst.msk [vmem:[%s1149_s3 + $0xb8] sm:$0xf] %vm406_vm0, %v388_v22  ;;  %v326_v42 = vmax.f32 %v262_v34, 0.0  ;;  %v327_v43 = vmax.f32 %v263_v35, 0.0  ;;  %v266_v44 = vadd.f32 %v667_v3, %v198_v36  ;;  %v267_v45 = vadd.f32 %v667_v3, %v199_v37 }
  0x44   :  { %454 = vst.msk [vmem:[%s1149_s3 + $0xbc] sm:$0xf] %vm406_vm0, %v389_v23  ;;  %v328_v46 = vmax.f32 %v264_v38, 0.0  ;;  %v329_v47 = vmax.f32 %v265_v39, 0.0  ;;  %v268_v48 = vadd.f32 %v667_v3, %v200_v40  ;;  %v269_v49 = vadd.f32 %v667_v3, %v201_v41 }
  0x45   :  { %v390_v51 = vpack.c.bf16 %v326_v42, %v326_v42  ;;  %v391_v52 = vpack.c.bf16 %v327_v43, %v327_v43  ;;  %v330_v53 = vmax.f32 %v266_v44, 0.0  ;;  %v331_v54 = vmax.f32 %v267_v45, 0.0 }
  0x46   :  { %v392_v56 = vpack.c.bf16 %v328_v46, %v328_v46  ;;  %v393_v57 = vpack.c.bf16 %v329_v47, %v329_v47  ;;  %v332_v58 = vmax.f32 %v268_v48, 0.0  ;;  %v333_v59 = vmax.f32 %v269_v49, 0.0 }
  0x47   :  { %455 = vst.msk [vmem:[%s1149_s3 + $0xc0] sm:$0xf] %vm406_vm0, %v390_v51  ;;  %v394_v61 = vpack.c.bf16 %v330_v53, %v330_v53  ;;  %v395_v62 = vpack.c.bf16 %v331_v54, %v331_v54  ;;  %v589_v63 = vunpack.c.l.bf16 %v630_v50  ;;  %v590_v0 = vunpack.c.h.bf16 %v630_v50 }
  0x48   :  { %456 = vst.msk [vmem:[%s1149_s3 + $0xc4] sm:$0xf] %vm406_vm0, %v391_v52  ;;  %v396_v4 = vpack.c.bf16 %v332_v58, %v332_v58  ;;  %v397_v5 = vpack.c.bf16 %v333_v59, %v333_v59  ;;  %v593_v6 = vunpack.c.l.bf16 %v631_v55  ;;  %v594_v7 = vunpack.c.h.bf16 %v631_v55 }
  0x49   :  { %457 = vst.msk [vmem:[%s1149_s3 + $0xc8] sm:$0xf] %vm406_vm0, %v392_v56  ;;  %v202_v8 = vmul.f32 %v662_v1, %v589_v63  ;;  %v203_v9 = vmul.f32 %v662_v1, %v590_v0  ;;  %v597_v10 = vunpack.c.l.bf16 %v632_v60  ;;  %v598_v11 = vunpack.c.h.bf16 %v632_v60 }
  0x4a   :  { %458 = vst.msk [vmem:[%s1149_s3 + $0xcc] sm:$0xf] %vm406_vm0, %v393_v57  ;;  %v204_v12 = vmul.f32 %v662_v1, %v593_v6  ;;  %v205_v13 = vmul.f32 %v662_v1, %v594_v7  ;;  %v601_v14 = vunpack.c.l.bf16 %v633_v2  ;;  %v602_v15 = vunpack.c.h.bf16 %v633_v2 }
  0x4b   :  { %459 = vst.msk [vmem:[%s1149_s3 + $0xd0] sm:$0xf] %vm406_vm0, %v394_v61  ;;  %v270_v16 = vadd.f32 %v667_v3, %v202_v8  ;;  %v271_v17 = vadd.f32 %v667_v3, %v203_v9  ;;  %v206_v18 = vmul.f32 %v662_v1, %v597_v10  ;;  %v207_v19 = vmul.f32 %v662_v1, %v598_v11 }
  0x4c   :  { %460 = vst.msk [vmem:[%s1149_s3 + $0xd4] sm:$0xf] %vm406_vm0, %v395_v62  ;;  %v272_v20 = vadd.f32 %v667_v3, %v204_v12  ;;  %v273_v21 = vadd.f32 %v667_v3, %v205_v13  ;;  %v208_v22 = vmul.f32 %v662_v1, %v601_v14  ;;  %v209_v23 = vmul.f32 %v662_v1, %v602_v15 }
  0x4d   :  { %461 = vst.msk [vmem:[%s1149_s3 + $0xd8] sm:$0xf] %vm406_vm0, %v396_v4  ;;  %v334_v24 = vmax.f32 %v270_v16, 0.0  ;;  %v335_v25 = vmax.f32 %v271_v17, 0.0  ;;  %v274_v26 = vadd.f32 %v667_v3, %v206_v18  ;;  %v275_v27 = vadd.f32 %v667_v3, %v207_v19 }
  0x4e   :  { %462 = vst.msk [vmem:[%s1149_s3 + $0xdc] sm:$0xf] %vm406_vm0, %v397_v5  ;;  %v336_v28 = vmax.f32 %v272_v20, 0.0  ;;  %v337_v29 = vmax.f32 %v273_v21, 0.0  ;;  %v276_v1 = vadd.f32 %v667_v3, %v208_v22  ;;  %v277_v30 = vadd.f32 %v667_v3, %v209_v23 }
  0x4f   :  { %v398_v31 = vpack.c.bf16 %v334_v24, %v334_v24  ;;  %v399_v32 = vpack.c.bf16 %v335_v25, %v335_v25  ;;  %v338_v33 = vmax.f32 %v274_v26, 0.0  ;;  %v339_v34 = vmax.f32 %v275_v27, 0.0 }
  0x50   :  { %v400_v35 = vpack.c.bf16 %v336_v28, %v336_v28  ;;  %v401_v36 = vpack.c.bf16 %v337_v29, %v337_v29  ;;  %v340_v37 = vmax.f32 %v276_v1, 0.0  ;;  %v341_v38 = vmax.f32 %v277_v30, 0.0 }
  0x51   :  { %463 = vst.msk [vmem:[%s1149_s3 + $0xe0] sm:$0xf] %vm406_vm0, %v398_v31  ;;  %v402_v39 = vpack.c.bf16 %v338_v33, %v338_v33  ;;  %v403_v3 = vpack.c.bf16 %v339_v34, %v339_v34 }
  0x52   :  { %464 = vst.msk [vmem:[%s1149_s3 + $0xe4] sm:$0xf] %vm406_vm0, %v399_v32  ;;  %v404_v40 = vpack.c.bf16 %v340_v37, %v340_v37  ;;  %v405_v41 = vpack.c.bf16 %v341_v38, %v341_v38 }
  0x53   :  { %465 = vst.msk [vmem:[%s1149_s3 + $0xe8] sm:$0xf] %vm406_vm0, %v400_v35 }
  0x54   :  { %466 = vst.msk [vmem:[%s1149_s3 + $0xec] sm:$0xf] %vm406_vm0, %v401_v36 }
  0x55   :  { %467 = vst.msk [vmem:[%s1149_s3 + $0xf0] sm:$0xf] %vm406_vm0, %v402_v39 }
  0x56   :  { %468 = vst.msk [vmem:[%s1149_s3 + $0xf4] sm:$0xf] %vm406_vm0, %v403_v3 }
  0x57   :  { %469 = vst.msk [vmem:[%s1149_s3 + $0xf8] sm:$0xf] %vm406_vm0, %v404_v40 }
  0x58   :  { %470 = vst.msk [vmem:[%s1149_s3 + $0xfc] sm:$0xf] %vm406_vm0, %v405_v41 }

// kernel: stem_forward.2
= control target key start
LH: loop header
LB: loop body
LE: loop exit
PB: predicated region body
PF: predicated region fallthrough
CT: control target
= control target key end

     0   :  { %vm1025_vm0 = vcmask 1042432   ;;  %vm1026_vm1 = vcmask 1043456   ;;  %v2850_v2 = vmov 65535   ;;  %vm928_vm2 = vcmask 711680   ;;  %s4414_s1 = inlined_call_operand.vmem [shape: bf16[343,64], index: 1, kind: input, shape index: {}]   ;;  %s4415_s0 = inlined_call_operand.vmem [shape: bf16[512,343], index: 0, kind: input, shape index: {}]   ;;  %s4416_s2 = inlined_call_operand.vmem [shape: bf16[512,64], index: 2, kind: output, shape index: {0}]   ;;  %s4417_s3 = inlined_call_operand.vmem [shape: f32[1,1,64], index: 3, kind: output, shape index: {1}]   ;;  %s4418_s4 = inlined_call_operand.vmem [shape: f32[1,1,64], index: 4, kind: output, shape index: {2}]  }
   0x1   :  { %v2812_v0 = vld [vmem:[%s4414_s1 + $0x38] sm:$0xff]  ;;  %v1027_v3 = vsel %vm1025_vm0, 4294967295, %v2850_v2  ;;  %v318_v4 = vld [vmem:[%s4414_s1 + $0xa8] sm:$0xf]  ;;  %v2811_v5 = vld [vmem:[%s4414_s1 + $0x30] sm:$0xff]  ;;  %vm19_vm3 = vcmask 523264  }
   0x2   :  { %v2883_v1 = vld [vmem:[%s4414_s1 + $0x78] sm:$0xff]  ;;  %1032 = vmatpush.bf16.msra.mxu0 %v2812_v0  ;;  %2826 = vmatpush.bf16.msra.mxu3 %v2812_v0  ;;  %v884_v6 = vunpack.c.l.b16 %v318_v4  ;;  %v2895_v7 = vld [vmem:[%s4414_s1 + $0x70] sm:$0xff]  ;;  %v1028_v8 = vsel %vm1026_vm1, %v1027_v3, 0  ;;  %v2810_v11 = vld [vmem:[%s4414_s1 + $0x28] sm:$0xff]  ;;  %vm1799_vm4 = vcmask 519168   ;;  %vm1997_vm5 = vcmask 516096  }
   0x3   :  { %1201 = vmatpush.bf16.msra.mxu1 %v2883_v1  ;;  %v2818_v12 = vld [vmem:[%s4414_s1 + $0x68] sm:$0xff]  ;;  %v2910_v13 = vld [vmem:[%s4414_s1 + $0xa0] sm:$0xff]  ;;  %v2922_v16 = vld [vmem:[%s4414_s1 + $0x98] sm:$0xff] }
   0x4   :  { %v906_v9 = vpack.c.b16 %v884_v6, %v884_v6  ;;  %v2809_v14 = vld [vmem:[%s4414_s1 + $0x20] sm:$0xff]  ;;  %v2808_v17 = vld [vmem:[%s4414_s1 + $0x18] sm:$0xff]  ;;  %v2934_v19 = vld [vmem:[%s4414_s1 + $0x90] sm:$0xff] }
   0x5   :  { %v2817_v15 = vld [vmem:[%s4414_s1 + $0x60] sm:$0xff]  ;;  %v2816_v18 = vld [vmem:[%s4414_s1 + $0x58] sm:$0xff]  ;;  %v2807_v20 = vld [vmem:[%s4414_s1 + $0x10] sm:$0xff] }
   0x6   :  { %1033 = vmatpush.bf16.msra.mxu0 %v2811_v5  ;;  %2827 = vmatpush.bf16.msra.mxu3 %v2811_v5  ;;  %v2897_v10 = vand.u32 %v1028_v8, %v906_v9  ;;  %v2815_v21 = vld [vmem:[%s4414_s1 + $0x50] sm:$0xff]  ;;  %v2946_v22 = vld [vmem:[%s4414_s1 + $0x88] sm:$0xff]  ;;  %v2958_v25 = vld [vmem:[%s4414_s1 + $0x80] sm:$0xff] }
   0x7   :  { %1202 = vmatpush.bf16.msra.mxu1 %v2895_v7  ;;  %v2806_v23 = vld [vmem:[%s4414_s1 + $0x8] sm:$0xff]  ;;  %v2711_v27 = vld [vmem:[%s4415_s0 + $0x10] sm:$0xf0]  ;;  %v2805_v28 = vld [vmem:[%s4414_s1] sm:$0xff] }
   0x8   :  { %1372 = vmatpush.bf16.msra.mxu2 %v2897_v10  ;;  %v2814_v24 = vld [vmem:[%s4414_s1 + $0x48] sm:$0xff]  ;;  %v2211_v29 = vld [vmem:[%s4415_s0] sm:$0xf]  ;;  %v2709_v35 = vld [vmem:[%s4415_s0 + $0x4] sm:$0xf] }
   0x9   :  { %v2219_v26 = vld [vmem:[%s4415_s0 + $0x8] sm:$0xf]  ;;  %v2710_v30 = vld [vmem:[%s4415_s0 + $0x8] sm:$0xf0]  ;;  %v2499_v31 = vld [vmem:[%s4415_s0 + $0x240] sm:$0xf] }
   0xa   :  { %1034 = vmatpush.bf16.msra.mxu0 %v2810_v11  ;;  %2828 = vmatpush.bf16.msra.mxu3 %v2810_v11  ;;  %v2782_v32 = vld [vmem:[%s4415_s0 + $0x248] sm:$0xf0]  ;;  %v2220_v33 = vor.u32 %v2711_v27, %v2219_v26  ;;  %v2813_v34 = vld [vmem:[%s4414_s1 + $0x40] sm:$0xff]  ;;  %v2213_v36 = vld [vmem:[%s4415_s0 + $0xc] sm:$0xf0]  ;;  %v2212_v37 = vor.u32 %v2710_v30, %v2211_v29 }
   0xb   :  { %1203 = vmatpush.bf16.msra.mxu1 %v2818_v12  ;;  %v2500_v38 = vor.u32 %v2782_v32, %v2499_v31  ;;  %v2216_v39 = vor.u32 %v2709_v35, %v2213_v36  ;;  %v2231_v40 = vld [vmem:[%s4415_s0 + $0x20] sm:$0xf]  ;;  %v2714_v41 = vld [vmem:[%s4415_s0 + $0x28] sm:$0xf0]  ;;  %v2223_v42 = vld [vmem:[%s4415_s0 + $0x18] sm:$0xf] }
   0xc   :  { %1373 = vmatpush.bf16.msra.mxu2 %v2910_v13  ;;  %v2713_v43 = vld [vmem:[%s4415_s0 + $0x20] sm:$0xf0]  ;;  %v2511_v44 = vld [vmem:[%s4415_s0 + $0x258] sm:$0xf]  ;;  %v2232_v46 = vor.u32 %v2714_v41, %v2231_v40  ;;  %v2712_v47 = vld [vmem:[%s4415_s0 + $0x1c] sm:$0xf] }
   0xd   :  { %v2785_v45 = vld [vmem:[%s4415_s0 + $0x260] sm:$0xf0]  ;;  %v2225_v48 = vld [vmem:[%s4415_s0 + $0x24] sm:$0xf0]  ;;  %v2224_v49 = vor.u32 %v2713_v43, %v2223_v42  ;;  %v2243_v52 = vld [vmem:[%s4415_s0 + $0x38] sm:$0xf] }
   0xe   :  { %1035 = vmatpush.bf16.msra.mxu0 %v2809_v14  ;;  %2829 = vmatpush.bf16.msra.mxu3 %v2809_v14  ;;  %v2512_v50 = vor.u32 %v2785_v45, %v2511_v44  ;;  %v2228_v51 = vor.u32 %v2712_v47, %v2225_v48  ;;  %v2717_v53 = vld [vmem:[%s4415_s0 + $0x40] sm:$0xf0]  ;;  %v2235_v54 = vld [vmem:[%s4415_s0 + $0x30] sm:$0xf]  ;;  %v2716_v55 = vld [vmem:[%s4415_s0 + $0x38] sm:$0xf0] }
   0xf   :  { %1204 = vmatpush.bf16.msra.mxu1 %v2817_v15  ;;  %v2523_v56 = vld [vmem:[%s4415_s0 + $0x270] sm:$0xf]  ;;  %v2788_v57 = vld [vmem:[%s4415_s0 + $0x278] sm:$0xf0]  ;;  %v2244_v58 = vor.u32 %v2717_v53, %v2243_v52  ;;  %v2715_v59 = vld [vmem:[%s4415_s0 + $0x34] sm:$0xf]  ;;  %v2236_v61 = vor.u32 %v2716_v55, %v2235_v54 }
  0x10   :  { %1374 = vmatpush.bf16.msra.mxu2 %v2922_v16  ;;  %v2237_v60 = vld [vmem:[%s4415_s0 + $0x3c] sm:$0xf0]  ;;  %v2524_v62 = vor.u32 %v2788_v57, %v2523_v56  ;;  %v2255_v0 = vld [vmem:[%s4415_s0 + $0x50] sm:$0xf]  ;;  %v2247_v2 = vld [vmem:[%s4415_s0 + $0x48] sm:$0xf] }
  0x11   :  { %v2240_v63 = vor.u32 %v2715_v59, %v2237_v60  ;;  %v2719_v3 = vld [vmem:[%s4415_s0 + $0x50] sm:$0xf0]  ;;  %v2535_v4 = vld [vmem:[%s4415_s0 + $0x288] sm:$0xf]  ;;  %v2249_v8 = vld [vmem:[%s4415_s0 + $0x54] sm:$0xf0] }
  0x12   :  { %1036 = vmatpush.bf16.msra.mxu0 %v2808_v17  ;;  %2830 = vmatpush.bf16.msra.mxu3 %v2808_v17  ;;  %v2791_v5 = vld [vmem:[%s4415_s0 + $0x290] sm:$0xf0]  ;;  %v2248_v9 = vor.u32 %v2719_v3, %v2247_v2  ;;  %v2259_v14 = vld [vmem:[%s4415_s0 + $0x60] sm:$0xf]  ;;  %v2794_v17 = vld [vmem:[%s4415_s0 + $0x2a8] sm:$0xf0] }
  0x13   :  { %1205 = vmatpush.bf16.msra.mxu1 %v2816_v18  ;;  %v2271_v26 = vld [vmem:[%s4415_s0 + $0x78] sm:$0xf]  ;;  %v2725_v27 = vld [vmem:[%s4415_s0 + $0x80] sm:$0xf0]  ;;  %v2724_v31 = vld [vmem:[%s4415_s0 + $0x7c] sm:$0xf] }
  0x14   :  { %1375 = vmatpush.bf16.msra.mxu2 %v2934_v19  ;;  %v2797_v29 = vld [vmem:[%s4415_s0 + $0x2c0] sm:$0xf0]  ;;  %v2273_v32 = vld [vmem:[%s4415_s0 + $0x84] sm:$0xf0]  ;;  %v2291_v36 = vld [vmem:[%s4415_s0 + $0x98] sm:$0xf] }
  0x15   :  { %v2276_v35 = vor.u32 %v2724_v31, %v2273_v32  ;;  %v2571_v40 = vld [vmem:[%s4415_s0 + $0x2d0] sm:$0xf]  ;;  %v2800_v41 = vld [vmem:[%s4415_s0 + $0x2d8] sm:$0xf0]  ;;  %v2727_v43 = vld [vmem:[%s4415_s0 + $0x94] sm:$0xf] }
  0x16   :  { %1037 = vmatpush.bf16.msra.mxu0 %v2807_v20  ;;  %2831 = vmatpush.bf16.msra.mxu3 %v2807_v20  ;;  %v2261_v20 = vld [vmem:[%s4415_s0 + $0x6c] sm:$0xf0]  ;;  %v2285_v44 = vld [vmem:[%s4415_s0 + $0x9c] sm:$0xf0]  ;;  %v2851_v47 = vmov 0.0  }
  0x17   :  { %1206 = vmatpush.bf16.msra.mxu1 %v2815_v21  ;;  %20 = vst.msk [vmem:[#allocation2] sm:$0xff] %vm19_vm3, %v2851_v47  ;;  %v2288_v48 = vor.u32 %v2727_v43, %v2285_v44  ;;  %v2731_v52 = vld [vmem:[%s4415_s0 + $0xb0] sm:$0xf0]  ;;  %v2583_v53 = vld [vmem:[%s4415_s0 + $0x2e8] sm:$0xf] }
  0x18   :  { %1376 = vmatpush.bf16.msra.mxu2 %v2946_v22  ;;  %21 = vst.msk [vmem:[#allocation2 + $0x8] sm:$0xff] %vm19_vm3, %v2851_v47  ;;  %v2803_v54 = vld [vmem:[%s4415_s0 + $0x2f0] sm:$0xf0]  ;;  %v2730_v56 = vld [vmem:[%s4415_s0 + $0xac] sm:$0xf] }
  0x19   :  { %22 = vst.msk [vmem:[#allocation2 + $0x10] sm:$0xff] %vm19_vm3, %v2851_v47  ;;  %v2297_v57 = vld [vmem:[%s4415_s0 + $0xb4] sm:$0xf0]  ;;  %v2584_v59 = vor.u32 %v2803_v54, %v2583_v53  ;;  %v2734_v2 = vld [vmem:[%s4415_s0 + $0xc8] sm:$0xf0] }
  0x1a   :  { %1038 = vmatpush.bf16.msra.mxu0 %v2806_v23  ;;  %2832 = vmatpush.bf16.msra.mxu3 %v2806_v23  ;;  %23 = vst.msk [vmem:[#allocation2 + $0x18] sm:$0xff] %vm19_vm3, %v2851_v47  ;;  %v2300_v60 = vor.u32 %v2730_v56, %v2297_v57  ;;  %v2740_v56 = vld [vmem:[%s4415_s0 + $0xf8] sm:$0xf0] }
  0x1b   :  { %1207 = vmatpush.bf16.msra.mxu1 %v2814_v24  ;;  %24 = vst.msk [vmem:[#allocation2 + $0x20] sm:$0xff] %vm19_vm3, %v2851_v47 }
  0x1c   :  { %1377 = vmatpush.bf16.msra.mxu2 %v2958_v25  ;;  %25 = vst.msk [vmem:[#allocation2 + $0x28] sm:$0xff] %vm19_vm3, %v2851_v47 }
  0x1d   :  { %26 = vst.msk [vmem:[#allocation2 + $0x30] sm:$0xff] %vm19_vm3, %v2851_v47 }
  0x1e   :  { %1039 = vmatpush.bf16.msra.mxu0 %v2805_v28  ;;  %2833 = vmatpush.bf16.msra.mxu3 %v2805_v28  ;;  %v2559_v28 = vld [vmem:[%s4415_s0 + $0x2b8] sm:$0xf]  ;;  %27 = vst.msk [vmem:[#allocation2 + $0x38] sm:$0xff] %vm19_vm3, %v2851_v47 }
  0x1f   :  { %2677 = vmatmul.msk.bf16.vlgmr.msra.gmra.mxu2 %vm928_vm2, %v2220_v33  ;;  %1208 = vmatpush.bf16.msra.mxu1 %v2813_v34  ;;  %v2272_v33 = vor.u32 %v2725_v27, %v2271_v26  ;;  %28 = vst.msk [vmem:[#allocation2 + $0x40] sm:$0xff] %vm19_vm3, %v2851_v47  ;;  %v2736_v27 = vld [vmem:[%s4415_s0 + $0xdc] sm:$0xf]  ;;  %v213_v44 = vld [vmem:[#allocation2 + $0x8] sm:$0xff] }
  0x20   :  { %29 = vst.msk [vmem:[#allocation2 + $0x48] sm:$0xff] %vm19_vm3, %v2851_v47 }
  0x21   :  { %1040 = vmatmul.bf16.vlgmr.msra.gmra.mxu0 %v2212_v37  ;;  %1160 = vmatmul.bf16.vlgmr.msra.gmra.mxu3 %v2500_v38  ;;  %v2729_v37 = vld [vmem:[%s4415_s0 + $0xa0] sm:$0xf0]  ;;  %v2283_v38 = vld [vmem:[%s4415_s0 + $0x90] sm:$0xf]  ;;  %30 = vst.msk [vmem:[#allocation2 + $0x50] sm:$0xff] %vm19_vm3, %v2851_v47  ;;  %v215_v53 = vld [vmem:[#allocation2 + $0x18] sm:$0xff] }
  0x22   :  { %2834 = vmatpush.bf16.msrb.mxu3 %v2883_v1  ;;  %1209 = vmatmul.bf16.vlgmr.msra.gmra.mxu1 %v2216_v39  ;;  %v2720_v1 = vld [vmem:[%s4415_s0 + $0x58] sm:$0xf0]  ;;  %v2292_v42 = vor.u32 %v2729_v37, %v2291_v36  ;;  %31 = vst.msk [vmem:[#allocation2 + $0x58] sm:$0xff] %vm19_vm3, %v2851_v47 }
  0x23   :  { %v2256_v6 = vor.u32 %v2720_v1, %v2255_v0  ;;  %v2728_v39 = vld [vmem:[%s4415_s0 + $0x98] sm:$0xf0]  ;;  %32 = vst.msk [vmem:[#allocation2 + $0x60] sm:$0xff] %vm19_vm3, %v2851_v47  ;;  %v2501_v0 = vld [vmem:[%s4415_s0 + $0x24c] sm:$0xf0] }
  0x24   :  { %v2284_v45 = vor.u32 %v2728_v39, %v2283_v38  ;;  %33 = vst.msk [vmem:[#allocation2 + $0x68] sm:$0xff] %vm19_vm3, %v2851_v47  ;;  %v2307_v1 = vld [vmem:[%s4415_s0 + $0xc0] sm:$0xf] }
  0x25   :  { %34 = vst.msk [vmem:[#allocation2 + $0x70] sm:$0xff] %vm19_vm3, %v2851_v47 }
  0x26   :  { %2835 = vmatpush.bf16.msrb.mxu3 %v2895_v7  ;;  %v2718_v7 = vld [vmem:[%s4415_s0 + $0x4c] sm:$0xf]  ;;  %35 = vst.msk [vmem:[#allocation2 + $0x78] sm:$0xff] %vm19_vm3, %v2851_v47 }
  0x27   :  { %v2252_v11 = vor.u32 %v2718_v7, %v2249_v8  ;;  %36 = vst.msk [vmem:[#allocation2 + $0x80] sm:$0xff] %vm19_vm3, %v2851_v47 }
  0x28   :  { %37 = vst.msk [vmem:[#allocation2 + $0x88] sm:$0xff] %vm19_vm3, %v2851_v47 }
  0x29   :  { %38 = vst.msk [vmem:[#allocation2 + $0x90] sm:$0xff] %vm19_vm3, %v2851_v47 }
  0x2a   :  { %2836 = vmatpush.bf16.msrb.mxu3 %v2818_v12  ;;  %v2267_v12 = vld [vmem:[%s4415_s0 + $0x68] sm:$0xf]  ;;  %39 = vst.msk [vmem:[#allocation2 + $0x98] sm:$0xff] %vm19_vm3, %v2851_v47 }
  0x2b   :  { %40 = vst.msk [vmem:[#allocation2 + $0xa0] sm:$0xff] %vm19_vm3, %v2851_v47 }
  0x2c   :  { %41 = vst.msk [vmem:[#allocation2 + $0xa8] sm:$0xff] %vm19_vm3, %v2851_v47 }
  0x2d   :  { %42 = vst.msk [vmem:[#allocation2 + $0xb0] sm:$0xff] %vm19_vm3, %v2851_v47 }
  0x2e   :  { %2837 = vmatpush.bf16.msrb.mxu3 %v2817_v15  ;;  %v2722_v15 = vld [vmem:[%s4415_s0 + $0x68] sm:$0xf0]  ;;  %43 = vst.msk [vmem:[#allocation2 + $0xb8] sm:$0xff] %vm19_vm3, %v2851_v47 }
  0x2f   :  { %2678 = vmatmul.msk.bf16.gmra.mxu2 %vm928_vm2, %v2232_v46  ;;  %v2572_v46 = vor.u32 %v2800_v41, %v2571_v40  ;;  %44 = vst.msk [vmem:[#allocation2 + $0xc0] sm:$0xff] %vm19_vm3, %v2851_v47 }
  0x30   :  { %45 = vst.msk [vmem:[#allocation2 + $0xc8] sm:$0xff] %vm19_vm3, %v2851_v47 }
  0x31   :  { %1045 = vmatmul.bf16.gmra.mxu0 %v2224_v49  ;;  %1165 = vmatmul.bf16.gmra.mxu3 %v2512_v50  ;;  %v2303_v49 = vld [vmem:[%s4415_s0 + $0xb0] sm:$0xf]  ;;  %v2732_v50 = vld [vmem:[%s4415_s0 + $0xb8] sm:$0xf0]  ;;  %46 = vst.msk [vmem:[#allocation2 + $0xd0] sm:$0xff] %vm19_vm3, %v2851_v47 }
  0x32   :  { %2838 = vmatpush.bf16.msrb.mxu3 %v2816_v18  ;;  %1214 = vmatmul.bf16.gmra.mxu1 %v2228_v51  ;;  %v2295_v51 = vld [vmem:[%s4415_s0 + $0xa8] sm:$0xf]  ;;  %v2304_v55 = vor.u32 %v2732_v50, %v2303_v49  ;;  %47 = vst.msk [vmem:[#allocation2 + $0xd8] sm:$0xff] %vm19_vm3, %v2851_v47  ;;  %v2741_v49 = vld [vmem:[%s4415_s0 + $0x100] sm:$0xf0]  ;;  %v214_v50 = vld [vmem:[#allocation2 + $0x10] sm:$0xff] }
  0x33   :  { %48 = vst.msk [vmem:[#allocation2 + $0xe0] sm:$0xff] %vm19_vm3, %v2851_v47 }
  0x34   :  { %49 = vst.msk [vmem:[#allocation2 + $0xe8] sm:$0xff] %vm19_vm3, %v2851_v47 }
  0x35   :  { %50 = vst.msk [vmem:[#allocation2 + $0xf0] sm:$0xff] %vm19_vm3, %v2851_v47 }
  0x36   :  { %2839 = vmatpush.bf16.msrb.mxu3 %v2815_v21  ;;  %v2260_v21 = vor.u32 %v2722_v15, %v2259_v14  ;;  %51 = vst.msk [vmem:[#allocation2 + $0xf8] sm:$0xff] %vm19_vm3, %v2851_v47 }
  0x37   :  { %52 = vst.msk [vmem:[#allocation2 + $0x100] sm:$0xff] %vm19_vm3, %v2851_v47 }
  0x38   :  { %53 = vst.msk [vmem:[#allocation2 + $0x108] sm:$0xff] %vm19_vm3, %v2851_v47 }
  0x39   :  { %54 = vst.msk [vmem:[#allocation2 + $0x110] sm:$0xff] %vm19_vm3, %v2851_v47 }
  0x3a   :  { %2840 = vmatpush.bf16.msrb.mxu3 %v2814_v24  ;;  %v2279_v24 = vld [vmem:[%s4415_s0 + $0x80] sm:$0xf]  ;;  %55 = vst.msk [vmem:[#allocation2 + $0x118] sm:$0xff] %vm19_vm3, %v2851_v47 }
  0x3b   :  { %56 = vst.msk [vmem:[#allocation2 + $0x120] sm:$0xff] %vm19_vm3, %v2851_v47 }
  0x3c   :  { %57 = vst.msk [vmem:[#allocation2 + $0x128] sm:$0xff] %vm19_vm3, %v2851_v47 }
  0x3d   :  { %58 = vst.msk [vmem:[#allocation2 + $0x130] sm:$0xff] %vm19_vm3, %v2851_v47 }
  0x3e   :  { %2841 = vmatpush.bf16.msrb.mxu3 %v2813_v34  ;;  %v2560_v34 = vor.u32 %v2797_v29, %v2559_v28  ;;  %59 = vst.msk [vmem:[#allocation2 + $0x138] sm:$0xff] %vm19_vm3, %v2851_v47  ;;  %v2321_v28 = vld [vmem:[%s4415_s0 + $0xe4] sm:$0xf0] }
  0x3f   :  { %2679 = vmatmul.msk.bf16.gmra.mxu2 %vm928_vm2, %v2244_v58  ;;  %v2296_v58 = vor.u32 %v2731_v52, %v2295_v51  ;;  %60 = vst.msk [vmem:[#allocation2 + $0x140] sm:$0xff] %vm19_vm3, %v2851_v47  ;;  %v2787_v51 = vld [vmem:[%s4415_s0 + $0x274] sm:$0xf]  ;;  %v2525_v52 = vld [vmem:[%s4415_s0 + $0x27c] sm:$0xf0] }
  0x40   :  { %61 = vst.msk [vmem:[#allocation2 + $0x148] sm:$0xff] %vm19_vm3, %v2851_v47 }
  0x41   :  { %1050 = vmatmul.bf16.gmra.mxu0 %v2236_v61  ;;  %1170 = vmatmul.bf16.gmra.mxu3 %v2524_v62  ;;  %v2315_v61 = vld [vmem:[%s4415_s0 + $0xc8] sm:$0xf]  ;;  %v2735_v62 = vld [vmem:[%s4415_s0 + $0xd0] sm:$0xf0]  ;;  %62 = vst.msk [vmem:[#allocation2 + $0x150] sm:$0xff] %vm19_vm3, %v2851_v47 }
  0x42   :  { %2842 = vmatpush.bf16.msra.mxu3 %v2897_v10  ;;  %1219 = vmatmul.bf16.gmra.mxu1 %v2240_v63  ;;  %v2536_v10 = vor.u32 %v2791_v5, %v2535_v4  ;;  %v2781_v63 = vld [vmem:[%s4415_s0 + $0x244] sm:$0xf]  ;;  %v2316_v3 = vor.u32 %v2735_v62, %v2315_v61  ;;  %v2309_v5 = vld [vmem:[%s4415_s0 + $0xcc] sm:$0xf0]  ;;  %63 = vst.msk [vmem:[#allocation2 + $0x158] sm:$0xff] %vm19_vm3, %v2851_v47 }
  0x43   :  { %v2733_v4 = vld [vmem:[%s4415_s0 + $0xc4] sm:$0xf]  ;;  %v2504_v7 = vor.u32 %v2781_v63, %v2501_v0  ;;  %64 = vst.msk [vmem:[#allocation2 + $0x160] sm:$0xff] %vm19_vm3, %v2851_v47  ;;  %v2333_v61 = vld [vmem:[%s4415_s0 + $0xfc] sm:$0xf0] }
  0x44   :  { %65 = vst.msk [vmem:[#allocation2 + $0x168] sm:$0xff] %vm19_vm3, %v2851_v47 }
  0x45   :  { %66 = vst.msk [vmem:[#allocation2 + $0x170] sm:$0xff] %vm19_vm3, %v2851_v47 }
  0x46   :  { %2843 = vmatpush.bf16.msra.mxu3 %v2910_v13  ;;  %v2723_v13 = vld [vmem:[%s4415_s0 + $0x70] sm:$0xf0]  ;;  %67 = vst.msk [vmem:[#allocation2 + $0x178] sm:$0xff] %vm19_vm3, %v2851_v47 }
  0x47   :  { %v2268_v18 = vor.u32 %v2723_v13, %v2267_v12  ;;  %v212_v12 = vld [vmem:[#allocation2] sm:$0xff]  ;;  %68 = vst.msk [vmem:[#allocation2 + $0x180] sm:$0xff] %vm19_vm3, %v2851_v47 }
  0x48   :  { %69 = vst.msk [vmem:[#allocation2 + $0x188] sm:$0xff] %vm19_vm3, %v2851_v47 }
  0x49   :  { %70 = vst.msk [vmem:[#allocation2 + $0x190] sm:$0xff] %vm19_vm3, %v2851_v47 }
  0x4a   :  { %2844 = vmatpush.bf16.msra.mxu3 %v2922_v16  ;;  %v2547_v16 = vld [vmem:[%s4415_s0 + $0x2a0] sm:$0xf]  ;;  %71 = vst.msk [vmem:[#allocation2 + $0x198] sm:$0xff] %vm19_vm3, %v2851_v47 }
  0x4b   :  { %72 = vst.msk [vmem:[#allocation2 + $0x1a0] sm:$0xff] %vm19_vm3, %v2851_v47 }
  0x4c   :  { %73 = vst.msk [vmem:[#allocation2 + $0x1a8] sm:$0xff] %vm19_vm3, %v2851_v47 }
  0x4d   :  { %74 = vst.msk [vmem:[#allocation2 + $0x1b0] sm:$0xff] %vm19_vm3, %v2851_v47 }
  0x4e   :  { %2845 = vmatpush.bf16.msra.mxu3 %v2934_v19  ;;  %v2721_v19 = vld [vmem:[%s4415_s0 + $0x64] sm:$0xf]  ;;  %75 = vst.msk [vmem:[#allocation2 + $0x1b8] sm:$0xff] %vm19_vm3, %v2851_v47 }
  0x4f   :  { %2680 = vmatmul.msk.bf16.gmra.mxu2 %vm928_vm2, %v2256_v6  ;;  %v2264_v23 = vor.u32 %v2721_v19, %v2261_v20  ;;  %v2308_v6 = vor.u32 %v2734_v2, %v2307_v1  ;;  %v2327_v19 = vld [vmem:[%s4415_s0 + $0xe0] sm:$0xf]  ;;  %v2738_v20 = vld [vmem:[%s4415_s0 + $0xe8] sm:$0xf0]  ;;  %76 = vst.msk [vmem:[#allocation2 + $0x1c0] sm:$0xff] %vm19_vm3, %v2851_v47  ;;  %v2528_v2 = vor.u32 %v2787_v51, %v2525_v52 }
  0x50   :  { %v2328_v26 = vor.u32 %v2738_v20, %v2327_v19  ;;  %77 = vst.msk [vmem:[#allocation2 + $0x1c8] sm:$0xff] %vm19_vm3, %v2851_v47 }
  0x51   :  { %1055 = vmatmul.bf16.gmra.mxu0 %v2248_v9  ;;  %1175 = vmatmul.bf16.gmra.mxu3 %v2536_v10  ;;  %v2312_v9 = vor.u32 %v2733_v4, %v2309_v5  ;;  %78 = vst.msk [vmem:[#allocation2 + $0x1d0] sm:$0xff] %vm19_vm3, %v2851_v47 }
  0x52   :  { %2846 = vmatpush.bf16.msra.mxu3 %v2946_v22  ;;  %1224 = vmatmul.bf16.gmra.mxu1 %v2252_v11  ;;  %v2548_v22 = vor.u32 %v2794_v17, %v2547_v16  ;;  %79 = vst.msk [vmem:[#allocation2 + $0x1d8] sm:$0xff] %vm19_vm3, %v2851_v47 }
  0x53   :  { %80 = vst.msk [vmem:[#allocation2 + $0x1e0] sm:$0xff] %vm19_vm3, %v2851_v47 }
  0x54   :  { %81 = vst.msk [vmem:[#allocation2 + $0x1e8] sm:$0xff] %vm19_vm3, %v2851_v47 }
  0x55   :  { %82 = vst.msk [vmem:[#allocation2 + $0x1f0] sm:$0xff] %vm19_vm3, %v2851_v47 }
  0x56   :  { %2847 = vmatpush.bf16.msra.mxu3 %v2958_v25  ;;  %v2726_v25 = vld [vmem:[%s4415_s0 + $0x88] sm:$0xf0]  ;;  %83 = vst.msk [vmem:[#allocation2 + $0x1f8] sm:$0xff] %vm19_vm3, %v2851_v47 }
  0x57   :  { %v2280_v30 = vor.u32 %v2726_v25, %v2279_v24  ;;  %v2319_v24 = vld [vmem:[%s4415_s0 + $0xd8] sm:$0xf]  ;;  %v2737_v25 = vld [vmem:[%s4415_s0 + $0xe0] sm:$0xf0] }
  0x5f   :  { %2681 = vmatmul.msk.bf16.gmra.mxu2 %vm928_vm2, %v2268_v18 }
  0x61   :  { %1060 = vmatmul.bf16.gmra.mxu0 %v2260_v21  ;;  %1180 = vmatmul.bf16.gmra.mxu3 %v2548_v22  ;;  %v2784_v21 = vld [vmem:[%s4415_s0 + $0x25c] sm:$0xf]  ;;  %v2513_v22 = vld [vmem:[%s4415_s0 + $0x264] sm:$0xf0] }
  0x62   :  { %1229 = vmatmul.bf16.gmra.mxu1 %v2264_v23  ;;  %v2516_v31 = vor.u32 %v2784_v21, %v2513_v22 }
  0x6f   :  { %2682 = vmatmul.msk.bf16.gmra.mxu2 %vm928_vm2, %v2280_v30  ;;  %v2320_v30 = vor.u32 %v2737_v25, %v2319_v24 }
  0x71   :  { %1065 = vmatmul.bf16.gmra.mxu0 %v2272_v33  ;;  %1185 = vmatmul.bf16.gmra.mxu3 %v2560_v34  ;;  %v2324_v34 = vor.u32 %v2736_v27, %v2321_v28 }
  0x72   :  { %1234 = vmatmul.bf16.gmra.mxu1 %v2276_v35 }
  0x7f   :  { %2683 = vmatmul.msk.bf16.gmra.mxu2 %vm928_vm2, %v2292_v42 }
  0x81   :  { %1070 = vmatmul.bf16.gmra.mxu0 %v2284_v45  ;;  %1190 = vmatmul.bf16.gmra.mxu3 %v2572_v46 }
  0x82   :  { %1239 = vmatmul.bf16.gmra.mxu1 %v2288_v48  ;;  %v2339_v48 = vld [vmem:[%s4415_s0 + $0xf8] sm:$0xf] }
  0x8f   :  { %2684 = vmatmul.msk.bf16.gmra.mxu2 %vm928_vm2, %v2304_v55  ;;  %v2331_v55 = vld [vmem:[%s4415_s0 + $0xf0] sm:$0xf] }
  0x90   :  { %v2332_v1 = vor.u32 %v2740_v56, %v2331_v55 }
  0x91   :  { %1075 = vmatmul.bf16.gmra.mxu0 %v2296_v58  ;;  %1195 = vmatmul.bf16.gmra.mxu3 %v2584_v59  ;;  %v2340_v59 = vor.u32 %v2741_v49, %v2339_v48  ;;  %v2345_v49 = vld [vmem:[%s4415_s0 + $0x114] sm:$0xf0] }
  0x92   :  { %1244 = vmatmul.bf16.gmra.mxu1 %v2300_v60  ;;  %v2739_v60 = vld [vmem:[%s4415_s0 + $0xf4] sm:$0xf] }
  0x93   :  { %v2336_v4 = vor.u32 %v2739_v60, %v2333_v61 }
  0x9e   :  { %v1041_v8 = vpop.f32.mrf.mxu0 }
  0x9f   :  { %2685 = vmatmul.msk.bf16.gmra.mxu2 %vm928_vm2, %v2316_v3  ;;  %v1210_v10 = vpop.f32.mrf.mxu1 }
  0xa0   :  { %v1211_v11 = vadd.f32 %v1210_v10, %v1041_v8 }
  0xa1   :  { %1080 = vmatmul.bf16.gmra.mxu0 %v2308_v6  ;;  %1329 = vmatmul.bf16.vlgmr.msrb.gmra.mxu3 %v2504_v7  ;;  %v216_v7 = vld [vmem:[#allocation2 + $0x20] sm:$0xff] }
  0xa2   :  { %v1379_v13 = vpop.f32.mrf.mxu2  ;;  %1249 = vmatmul.bf16.gmra.mxu1 %v2312_v9 }
  0xa3   :  { %v1380_v14 = vadd.f32 %v1379_v13, %v1211_v11 }
  0xa4   :  { %v3280_v15 = vpop.f32.mrf.mxu3 }
  0xa5   :  { %v1539_v16 = vadd.f32 %v1380_v14, %v212_v12 }
  0xa6   :  { %v1043_v17 = vpop.f32.mrf.mxu0 }
  0xa7   :  { %1604 = vst.msk [vmem:[#allocation2] sm:$0xff] %vm19_vm3, %v1539_v16  ;;  %v1212_v18 = vpop.f32.mrf.mxu1  ;;  %v2351_v16 = vld [vmem:[%s4415_s0 + $0x110] sm:$0xf] }
  0xa8   :  { %v1213_v38 = vadd.f32 %v1212_v18, %v1043_v17 }
  0xaa   :  { %v1381_v23 = vpop.f32.mrf.mxu2 }
  0xab   :  { %v1382_v42 = vadd.f32 %v1381_v23, %v1213_v38  ;;  %v2744_v23 = vld [vmem:[%s4415_s0 + $0x118] sm:$0xf0] }
  0xac   :  { %v3321_v29 = vpop.f32.mrf.mxu3  ;;  %v2352_v48 = vor.u32 %v2744_v23, %v2351_v16  ;;  %v2793_v23 = vld [vmem:[%s4415_s0 + $0x2a4] sm:$0xf] }
  0xad   :  { %v1540_v57 = vadd.f32 %v1382_v42, %v213_v44  ;;  %v2742_v44 = vld [vmem:[%s4415_s0 + $0x10c] sm:$0xf] }
  0xae   :  { %v3325_v32 = vld [vmem:[#allocation2] sm:$0xff]  ;;  %v1046_v33 = vpop.f32.mrf.mxu0  ;;  %v2348_v60 = vor.u32 %v2742_v44, %v2345_v49 }
  0xaf   :  { %v1735_v35 = vpack.c.bf16 %v3325_v32, %v3325_v32  ;;  %2686 = vmatmul.msk.bf16.gmra.mxu2 %vm928_vm2, %v2328_v26  ;;  %v1215_v36 = vpop.f32.mrf.mxu1  ;;  %1605 = vst.msk [vmem:[#allocation2 + $0x8] sm:$0xff] %vm19_vm3, %v1540_v57  ;;  %v1999_v47 = vmul.f32 %v3325_v32, %v3325_v32  ;;  %v1864_v12 = vsel %vm19_vm3, %v3325_v32, 0.0  ;;  %v2537_v32 = vld [vmem:[%s4415_s0 + $0x294] sm:$0xf0] }
  0xb0   :  { %v1216_v39 = vadd.f32 %v1215_v36, %v1046_v33 }
  0xb1   :  { %1800 = vst.msk [vmem:[%s4416_s2] sm:$0xf] %vm1799_vm4, %v1735_v35  ;;  %1085 = vmatmul.bf16.gmra.mxu0 %v2320_v30  ;;  %1334 = vmatmul.bf16.gmra.mxu3 %v2516_v31  ;;  %v2063_v17 = vsel %vm19_vm3, %v1999_v47, 0.0  ;;  %v2343_v30 = vld [vmem:[%s4415_s0 + $0x108] sm:$0xf] }
  0xb2   :  { %v1384_v37 = vpop.f32.mrf.mxu2  ;;  %1254 = vmatmul.bf16.gmra.mxu1 %v2324_v34  ;;  %v2790_v31 = vld [vmem:[%s4415_s0 + $0x28c] sm:$0xf] }
  0xb3   :  { %v1385_v45 = vadd.f32 %v1384_v37, %v1216_v39  ;;  %v2743_v37 = vld [vmem:[%s4415_s0 + $0x110] sm:$0xf0]  ;;  %v2540_v55 = vor.u32 %v2790_v31, %v2537_v32 }
  0xb4   :  { %v3346_v40 = vpop.f32.mrf.mxu3 }
  0xb5   :  { %v1541_v62 = vadd.f32 %v1385_v45, %v214_v50 }
  0xb6   :  { %v1048_v41 = vpop.f32.mrf.mxu0  ;;  %v1672_v13 = vld [vmem:[#allocation2 + $0x8] sm:$0xff] }
  0xb7   :  { %v1217_v43 = vpop.f32.mrf.mxu1  ;;  %1606 = vst.msk [vmem:[#allocation2 + $0x10] sm:$0xff] %vm19_vm3, %v1541_v62  ;;  %v1736_v18 = vpack.c.bf16 %v1672_v13, %v1672_v13  ;;  %v1865_v19 = vsel %vm19_vm3, %v1672_v13, 0.0  ;;  %v2000_v20 = vmul.f32 %v1672_v13, %v1672_v13 }
  0xb8   :  { %v1218_v46 = vadd.f32 %v1217_v43, %v1048_v41  ;;  %v1866_v24 = vadd.f32 %v1865_v19, %v1864_v12  ;;  %v2363_v19 = vld [vmem:[%s4415_s0 + $0x128] sm:$0xf] }
  0xb9   :  { %1801 = vst.msk [vmem:[%s4416_s2 + $0x4] sm:$0xf] %vm1799_vm4, %v1736_v18  ;;  %v2064_v33 = vsel %vm19_vm3, %v2000_v20, 0.0  ;;  %v2747_v20 = vld [vmem:[%s4415_s0 + $0x130] sm:$0xf0] }
  0xba   :  { %v1386_v54 = vpop.f32.mrf.mxu2  ;;  %v2065_v38 = vadd.f32 %v2064_v33, %v2063_v17  ;;  %v2364_v32 = vor.u32 %v2747_v20, %v2363_v19  ;;  %v2745_v33 = vld [vmem:[%s4415_s0 + $0x124] sm:$0xf] }
  0xbb   :  { %v1387_v58 = vadd.f32 %v1386_v54, %v1218_v46  ;;  %v217_v46 = vld [vmem:[#allocation2 + $0x28] sm:$0xff]  ;;  %v2344_v54 = vor.u32 %v2743_v37, %v2343_v30 }
  0xbc   :  { %v3388_v63 = vpop.f32.mrf.mxu3 }
  0xbd   :  { %v1542_v0 = vadd.f32 %v1387_v58, %v215_v53 }
  0xbe   :  { %v1051_v3 = vpop.f32.mrf.mxu0  ;;  %v1673_v21 = vld [vmem:[#allocation2 + $0x10] sm:$0xff] }
  0xbf   :  { %2687 = vmatmul.msk.bf16.gmra.mxu2 %vm928_vm2, %v2340_v59  ;;  %v1220_v5 = vpop.f32.mrf.mxu1  ;;  %1607 = vst.msk [vmem:[#allocation2 + $0x18] sm:$0xff] %vm19_vm3, %v1542_v0  ;;  %v1737_v25 = vpack.c.bf16 %v1673_v21, %v1673_v21  ;;  %v1867_v26 = vsel %vm19_vm3, %v1673_v21, 0.0  ;;  %v2001_v27 = vmul.f32 %v1673_v21, %v1673_v21 }
  0xc0   :  { %v1221_v6 = vadd.f32 %v1220_v5, %v1051_v3  ;;  %v1868_v39 = vadd.f32 %v1867_v26, %v1866_v24  ;;  %v2549_v24 = vld [vmem:[%s4415_s0 + $0x2ac] sm:$0xf0]  ;;  %v219_v26 = vld [vmem:[#allocation2 + $0x38] sm:$0xff] }
  0xc1   :  { %1090 = vmatmul.bf16.gmra.mxu0 %v2332_v1  ;;  %1339 = vmatmul.bf16.gmra.mxu3 %v2528_v2  ;;  %1802 = vst.msk [vmem:[%s4416_s2 + $0x8] sm:$0xf] %vm1799_vm4, %v1737_v25  ;;  %v2066_v41 = vsel %vm19_vm3, %v2001_v27, 0.0 }
  0xc2   :  { %v1389_v8 = vpop.f32.mrf.mxu2  ;;  %1259 = vmatmul.bf16.gmra.mxu1 %v2336_v4  ;;  %v2067_v50 = vadd.f32 %v2066_v41, %v2065_v38  ;;  %v2552_v38 = vor.u32 %v2793_v23, %v2549_v24 }
  0xc3   :  { %v1390_v9 = vadd.f32 %v1389_v8, %v1221_v6  ;;  %v218_v6 = vld [vmem:[#allocation2 + $0x30] sm:$0xff] }
  0xc4   :  { %v3400_v10 = vpop.f32.mrf.mxu3 }
  0xc5   :  { %v1543_v11 = vadd.f32 %v1390_v9, %v216_v7 }
  0xc6   :  { %v1053_v14 = vpop.f32.mrf.mxu0  ;;  %v1674_v28 = vld [vmem:[#allocation2 + $0x18] sm:$0xff] }
  0xc7   :  { %1608 = vst.msk [vmem:[#allocation2 + $0x20] sm:$0xff] %vm19_vm3, %v1543_v11  ;;  %v1222_v22 = vpop.f32.mrf.mxu1  ;;  %v1738_v34 = vpack.c.bf16 %v1674_v28, %v1674_v28  ;;  %v1869_v35 = vsel %vm19_vm3, %v1674_v28, 0.0  ;;  %v2002_v36 = vmul.f32 %v1674_v28, %v1674_v28  ;;  %v2746_v28 = vld [vmem:[%s4415_s0 + $0x128] sm:$0xf0] }
  0xc8   :  { %v1223_v42 = vadd.f32 %v1222_v22, %v1053_v14  ;;  %v1870_v51 = vadd.f32 %v1869_v35, %v1868_v39  ;;  %v2355_v22 = vld [vmem:[%s4415_s0 + $0x120] sm:$0xf] }
  0xc9   :  { %1803 = vst.msk [vmem:[%s4416_s2 + $0xc] sm:$0xf] %vm1799_vm4, %v1738_v34  ;;  %v2068_v45 = vsel %vm19_vm3, %v2002_v36, 0.0  ;;  %v2357_v34 = vld [vmem:[%s4415_s0 + $0x12c] sm:$0xf0]  ;;  %v2356_v37 = vor.u32 %v2746_v28, %v2355_v22 }
  0xca   :  { %v1391_v43 = vpop.f32.mrf.mxu2  ;;  %v2069_v56 = vadd.f32 %v2068_v45, %v2067_v50 }
  0xcb   :  { %v1392_v52 = vadd.f32 %v1391_v43, %v1223_v42  ;;  %v2360_v42 = vor.u32 %v2745_v33, %v2357_v34 }
  0xcc   :  { %v3448_v53 = vpop.f32.mrf.mxu3 }
  0xcd   :  { %v1544_v58 = vadd.f32 %v1392_v52, %v217_v46  ;;  %v220_v52 = vld [vmem:[#allocation2 + $0x40] sm:$0xff] }
  0xce   :  { %v1675_v57 = vld [vmem:[#allocation2 + $0x20] sm:$0xff]  ;;  %v1056_v59 = vpop.f32.mrf.mxu0 }
  0xcf   :  { %v1739_v61 = vpack.c.bf16 %v1675_v57, %v1675_v57  ;;  %v1871_v62 = vsel %vm19_vm3, %v1675_v57, 0.0  ;;  %v2003_v0 = vmul.f32 %v1675_v57, %v1675_v57  ;;  %2688 = vmatmul.msk.bf16.gmra.mxu2 %vm928_vm2, %v2352_v48  ;;  %v1225_v1 = vpop.f32.mrf.mxu1  ;;  %1609 = vst.msk [vmem:[#allocation2 + $0x28] sm:$0xff] %vm19_vm3, %v1544_v58 }
  0xd0   :  { %v1872_v2 = vadd.f32 %v1871_v62, %v1870_v51  ;;  %v1226_v3 = vadd.f32 %v1225_v1, %v1056_v59 }
  0xd1   :  { %1804 = vst.msk [vmem:[%s4416_s2 + $0x10] sm:$0xf] %vm1799_vm4, %v1739_v61  ;;  %v2070_v4 = vsel %vm19_vm3, %v2003_v0, 0.0  ;;  %1095 = vmatmul.bf16.gmra.mxu0 %v2344_v54  ;;  %1344 = vmatmul.bf16.gmra.mxu3 %v2540_v55 }
  0xd2   :  { %v2071_v5 = vadd.f32 %v2070_v4, %v2069_v56  ;;  %v1394_v7 = vpop.f32.mrf.mxu2  ;;  %1264 = vmatmul.bf16.gmra.mxu1 %v2348_v60  ;;  %v2750_v4 = vld [vmem:[%s4415_s0 + $0x148] sm:$0xf0] }
  0xd3   :  { %v1395_v8 = vadd.f32 %v1394_v7, %v1226_v3  ;;  %v2375_v3 = vld [vmem:[%s4415_s0 + $0x140] sm:$0xf]  ;;  %v2796_v7 = vld [vmem:[%s4415_s0 + $0x2bc] sm:$0xf] }
  0xd4   :  { %v3458_v47 = vpop.f32.mrf.mxu3 }
  0xd5   :  { %v1545_v9 = vadd.f32 %v1395_v8, %v218_v6  ;;  %v221_v6 = vld [vmem:[#allocation2 + $0x48] sm:$0xff] }
  0xd6   :  { %v1058_v11 = vpop.f32.mrf.mxu0  ;;  %v1676_v12 = vld [vmem:[#allocation2 + $0x28] sm:$0xff] }
  0xd7   :  { %1610 = vst.msk [vmem:[#allocation2 + $0x30] sm:$0xff] %vm19_vm3, %v1545_v9  ;;  %v1227_v13 = vpop.f32.mrf.mxu1  ;;  %v1740_v14 = vpack.c.bf16 %v1676_v12, %v1676_v12  ;;  %v1873_v16 = vsel %vm19_vm3, %v1676_v12, 0.0  ;;  %v2004_v17 = vmul.f32 %v1676_v12, %v1676_v12  ;;  %v2749_v12 = vld [vmem:[%s4415_s0 + $0x140] sm:$0xf0] }
  0xd8   :  { %v1228_v18 = vadd.f32 %v1227_v13, %v1058_v11  ;;  %v1874_v21 = vadd.f32 %v1873_v16, %v1872_v2  ;;  %v2367_v11 = vld [vmem:[%s4415_s0 + $0x138] sm:$0xf]  ;;  %v2561_v13 = vld [vmem:[%s4415_s0 + $0x2c4] sm:$0xf0]  ;;  %v2376_v16 = vor.u32 %v2750_v4, %v2375_v3  ;;  %v2381_v3 = vld [vmem:[%s4415_s0 + $0x15c] sm:$0xf0] }
  0xd9   :  { %1805 = vst.msk [vmem:[%s4416_s2 + $0x14] sm:$0xf] %vm1799_vm4, %v1740_v14  ;;  %v2072_v25 = vsel %vm19_vm3, %v2004_v17, 0.0  ;;  %v2748_v17 = vld [vmem:[%s4415_s0 + $0x13c] sm:$0xf]  ;;  %v2564_v22 = vor.u32 %v2796_v7, %v2561_v13 }
  0xda   :  { %v1396_v27 = vpop.f32.mrf.mxu2  ;;  %v2073_v30 = vadd.f32 %v2072_v25, %v2071_v5 }
  0xdb   :  { %v1397_v31 = vadd.f32 %v1396_v27, %v1228_v18  ;;  %v2369_v18 = vld [vmem:[%s4415_s0 + $0x144] sm:$0xf0] }
  0xdc   :  { %v3491_v35 = vpop.f32.mrf.mxu3  ;;  %v2372_v25 = vor.u32 %v2748_v17, %v2369_v18 }
  0xdd   :  { %v1546_v36 = vadd.f32 %v1397_v31, %v219_v26 }
  0xde   :  { %v1677_v39 = vld [vmem:[#allocation2 + $0x30] sm:$0xff]  ;;  %v1061_v41 = vpop.f32.mrf.mxu0 }
  0xdf   :  { %v1741_v43 = vpack.c.bf16 %v1677_v39, %v1677_v39  ;;  %v1875_v44 = vsel %vm19_vm3, %v1677_v39, 0.0  ;;  %v2005_v45 = vmul.f32 %v1677_v39, %v1677_v39  ;;  %1611 = vst.msk [vmem:[#allocation2 + $0x38] sm:$0xff] %vm19_vm3, %v1546_v36  ;;  %2689 = vmatmul.msk.bf16.gmra.mxu2 %vm928_vm2, %v2364_v32  ;;  %v1230_v46 = vpop.f32.mrf.mxu1  ;;  %v222_v36 = vld [vmem:[#allocation2 + $0x50] sm:$0xff] }
  0xe0   :  { %v1876_v48 = vadd.f32 %v1875_v44, %v1874_v21  ;;  %v1231_v49 = vadd.f32 %v1230_v46, %v1061_v41  ;;  %v2368_v21 = vor.u32 %v2749_v12, %v2367_v11 }
  0xe1   :  { %1806 = vst.msk [vmem:[%s4416_s2 + $0x18] sm:$0xf] %vm1799_vm4, %v1741_v43  ;;  %v2074_v50 = vsel %vm19_vm3, %v2005_v45, 0.0  ;;  %1100 = vmatmul.bf16.gmra.mxu0 %v2356_v37  ;;  %1349 = vmatmul.bf16.gmra.mxu3 %v2552_v38 }
  0xe2   :  { %v2075_v51 = vadd.f32 %v2074_v50, %v2073_v30  ;;  %v1399_v54 = vpop.f32.mrf.mxu2  ;;  %1269 = vmatmul.bf16.gmra.mxu1 %v2360_v42 }
  0xe3   :  { %v1400_v55 = vadd.f32 %v1399_v54, %v1231_v49 }
  0xe4   :  { %v3501_v56 = vpop.f32.mrf.mxu3 }
  0xe5   :  { %v1547_v57 = vadd.f32 %v1400_v55, %v220_v52  ;;  %v2753_v52 = vld [vmem:[%s4415_s0 + $0x160] sm:$0xf0]  ;;  %v223_v55 = vld [vmem:[#allocation2 + $0x58] sm:$0xff] }
  0xe6   :  { %v1678_v58 = vld [vmem:[#allocation2 + $0x38] sm:$0xff]  ;;  %v1063_v59 = vpop.f32.mrf.mxu0 }
  0xe7   :  { %v1742_v60 = vpack.c.bf16 %v1678_v58, %v1678_v58  ;;  %v1877_v61 = vsel %vm19_vm3, %v1678_v58, 0.0  ;;  %v2006_v62 = vmul.f32 %v1678_v58, %v1678_v58  ;;  %1612 = vst.msk [vmem:[#allocation2 + $0x40] sm:$0xff] %vm19_vm3, %v1547_v57  ;;  %v1232_v0 = vpop.f32.mrf.mxu1  ;;  %v2799_v57 = vld [vmem:[%s4415_s0 + $0x2d4] sm:$0xf] }
  0xe8   :  { %v1878_v1 = vadd.f32 %v1877_v61, %v1876_v48  ;;  %v1233_v2 = vadd.f32 %v1232_v0, %v1063_v59  ;;  %v2752_v61 = vld [vmem:[%s4415_s0 + $0x158] sm:$0xf0] }
  0xe9   :  { %1807 = vst.msk [vmem:[%s4416_s2 + $0x1c] sm:$0xf] %vm1799_vm4, %v1742_v60  ;;  %v2076_v5 = vsel %vm19_vm3, %v2006_v62, 0.0  ;;  %v2379_v60 = vld [vmem:[%s4415_s0 + $0x150] sm:$0xf] }
  0xea   :  { %v2077_v8 = vadd.f32 %v2076_v5, %v2075_v51  ;;  %v1401_v9 = vpop.f32.mrf.mxu2  ;;  %v2387_v51 = vld [vmem:[%s4415_s0 + $0x158] sm:$0xf]  ;;  %v2573_v62 = vld [vmem:[%s4415_s0 + $0x2dc] sm:$0xf0] }
  0xeb   :  { %v1402_v14 = vadd.f32 %v1401_v9, %v1233_v2  ;;  %v2751_v2 = vld [vmem:[%s4415_s0 + $0x154] sm:$0xf]  ;;  %v2576_v7 = vor.u32 %v2799_v57, %v2573_v62 }
  0xec   :  { %v3534_v19 = vpop.f32.mrf.mxu3  ;;  %v2384_v11 = vor.u32 %v2751_v2, %v2381_v3 }
  0xed   :  { %v1548_v20 = vadd.f32 %v1402_v14, %v221_v6  ;;  %v2380_v6 = vor.u32 %v2752_v61, %v2379_v60 }
  0xee   :  { %v1679_v23 = vld [vmem:[#allocation2 + $0x40] sm:$0xff]  ;;  %v1066_v24 = vpop.f32.mrf.mxu0 }
  0xef   :  { %v1743_v26 = vpack.c.bf16 %v1679_v23, %v1679_v23  ;;  %v1879_v27 = vsel %vm19_vm3, %v1679_v23, 0.0  ;;  %v2007_v28 = vmul.f32 %v1679_v23, %v1679_v23  ;;  %1613 = vst.msk [vmem:[#allocation2 + $0x48] sm:$0xff] %vm19_vm3, %v1548_v20  ;;  %2690 = vmatmul.msk.bf16.gmra.mxu2 %vm928_vm2, %v2376_v16  ;;  %v1235_v30 = vpop.f32.mrf.mxu1 }
  0xf0   :  { %v1880_v31 = vadd.f32 %v1879_v27, %v1878_v1  ;;  %v1236_v32 = vadd.f32 %v1235_v30, %v1066_v24  ;;  %v2388_v1 = vor.u32 %v2753_v52, %v2387_v51  ;;  %v2754_v52 = vld [vmem:[%s4415_s0 + $0x16c] sm:$0xf] }
  0xf1   :  { %1808 = vst.msk [vmem:[%s4416_s2 + $0x20] sm:$0xf] %vm1799_vm4, %v1743_v26  ;;  %v2078_v33 = vsel %vm19_vm3, %v2007_v28, 0.0  ;;  %1105 = vmatmul.bf16.gmra.mxu0 %v2368_v21  ;;  %1354 = vmatmul.bf16.gmra.mxu3 %v2564_v22  ;;  %v224_v22 = vld [vmem:[#allocation2 + $0x60] sm:$0xff] }
  0xf2   :  { %v2079_v34 = vadd.f32 %v2078_v33, %v2077_v8  ;;  %v1404_v37 = vpop.f32.mrf.mxu2  ;;  %1274 = vmatmul.bf16.gmra.mxu1 %v2372_v25 }
  0xf3   :  { %v1405_v38 = vadd.f32 %v1404_v37, %v1236_v32  ;;  %v2399_v37 = vld [vmem:[%s4415_s0 + $0x170] sm:$0xf] }
  0xf4   :  { %v3544_v39 = vpop.f32.mrf.mxu3 }
  0xf5   :  { %v1549_v41 = vadd.f32 %v1405_v38, %v222_v36  ;;  %v2756_v38 = vld [vmem:[%s4415_s0 + $0x178] sm:$0xf0] }
  0xf6   :  { %v1680_v42 = vld [vmem:[#allocation2 + $0x48] sm:$0xff]  ;;  %v1068_v43 = vpop.f32.mrf.mxu0  ;;  %v2400_v51 = vor.u32 %v2756_v38, %v2399_v37 }
  0xf7   :  { %v1744_v44 = vpack.c.bf16 %v1680_v42, %v1680_v42  ;;  %v1881_v45 = vsel %vm19_vm3, %v1680_v42, 0.0  ;;  %v2008_v46 = vmul.f32 %v1680_v42, %v1680_v42  ;;  %1614 = vst.msk [vmem:[#allocation2 + $0x50] sm:$0xff] %vm19_vm3, %v1549_v41  ;;  %v1237_v48 = vpop.f32.mrf.mxu1  ;;  %v225_v42 = vld [vmem:[#allocation2 + $0x68] sm:$0xff] }
  0xf8   :  { %v1882_v49 = vadd.f32 %v1881_v45, %v1880_v31  ;;  %v1238_v50 = vadd.f32 %v1237_v48, %v1068_v43  ;;  %v2802_v43 = vld [vmem:[%s4415_s0 + $0x2ec] sm:$0xf]  ;;  %v2755_v48 = vld [vmem:[%s4415_s0 + $0x170] sm:$0xf0] }
  0xf9   :  { %1809 = vst.msk [vmem:[%s4416_s2 + $0x24] sm:$0xf] %vm1799_vm4, %v1744_v44  ;;  %v2080_v54 = vsel %vm19_vm3, %v2008_v46, 0.0  ;;  %v2391_v46 = vld [vmem:[%s4415_s0 + $0x168] sm:$0xf] }
  0xfa   :  { %v2081_v58 = vadd.f32 %v2080_v54, %v2079_v34  ;;  %v1406_v59 = vpop.f32.mrf.mxu2  ;;  %v2393_v54 = vld [vmem:[%s4415_s0 + $0x174] sm:$0xf0]  ;;  %v2786_v37 = vld [vmem:[%s4415_s0 + $0x268] sm:$0xf0] }
  0xfb   :  { %v1407_v0 = vadd.f32 %v1406_v59, %v1238_v50  ;;  %v2396_v62 = vor.u32 %v2754_v52, %v2393_v54 }
  0xfc   :  { %v3577_v4 = vpop.f32.mrf.mxu3 }
  0xfd   :  { %v1550_v5 = vadd.f32 %v1407_v0, %v223_v55 }
  0xfe   :  { %v1681_v8 = vld [vmem:[#allocation2 + $0x50] sm:$0xff]  ;;  %v1071_v9 = vpop.f32.mrf.mxu0 }
  0xff   :  { %v1745_v12 = vpack.c.bf16 %v1681_v8, %v1681_v8  ;;  %v1883_v13 = vsel %vm19_vm3, %v1681_v8, 0.0  ;;  %v2009_v14 = vmul.f32 %v1681_v8, %v1681_v8  ;;  %1615 = vst.msk [vmem:[#allocation2 + $0x58] sm:$0xff] %vm19_vm3, %v1550_v5  ;;  %2691 = vmatmul.msk.bf16.gmra.mxu2 %vm928_vm2, %v2388_v1  ;;  %v1240_v16 = vpop.f32.mrf.mxu1 }
 0x100   :  { %v1884_v17 = vadd.f32 %v1883_v13, %v1882_v49  ;;  %v1241_v18 = vadd.f32 %v1240_v16, %v1071_v9  ;;  %v2585_v49 = vld [vmem:[%s4415_s0 + $0x2f4] sm:$0xf0]  ;;  %v226_v9 = vld [vmem:[#allocation2 + $0x70] sm:$0xff] }
 0x101   :  { %1810 = vst.msk [vmem:[%s4416_s2 + $0x28] sm:$0xf] %vm1799_vm4, %v1745_v12  ;;  %v2082_v20 = vsel %vm19_vm3, %v2009_v14, 0.0  ;;  %1110 = vmatmul.bf16.gmra.mxu0 %v2380_v6  ;;  %1359 = vmatmul.bf16.gmra.mxu3 %v2576_v7  ;;  %v2588_v59 = vor.u32 %v2802_v43, %v2585_v49  ;;  %v2405_v43 = vld [vmem:[%s4415_s0 + $0x18c] sm:$0xf0] }
 0x102   :  { %v2083_v21 = vadd.f32 %v2082_v20, %v2081_v58  ;;  %v1409_v23 = vpop.f32.mrf.mxu2  ;;  %1279 = vmatmul.bf16.gmra.mxu1 %v2384_v11  ;;  %v2392_v58 = vor.u32 %v2755_v48, %v2391_v46 }
 0x103   :  { %v1410_v24 = vadd.f32 %v1409_v23, %v1241_v18 }
 0x104   :  { %v3587_v25 = vpop.f32.mrf.mxu3 }
 0x105   :  { %v1551_v26 = vadd.f32 %v1410_v24, %v224_v22 }
 0x106   :  { %v1682_v27 = vld [vmem:[#allocation2 + $0x58] sm:$0xff]  ;;  %v1073_v28 = vpop.f32.mrf.mxu0 }
 0x107   :  { %v1746_v30 = vpack.c.bf16 %v1682_v27, %v1682_v27  ;;  %v1885_v31 = vsel %vm19_vm3, %v1682_v27, 0.0  ;;  %v2010_v32 = vmul.f32 %v1682_v27, %v1682_v27  ;;  %1616 = vst.msk [vmem:[#allocation2 + $0x60] sm:$0xff] %vm19_vm3, %v1551_v26  ;;  %v1242_v33 = vpop.f32.mrf.mxu1  ;;  %v2411_v26 = vld [vmem:[%s4415_s0 + $0x188] sm:$0xf]  ;;  %v2759_v27 = vld [vmem:[%s4415_s0 + $0x190] sm:$0xf0] }
 0x108   :  { %v1886_v34 = vadd.f32 %v1885_v31, %v1884_v17  ;;  %v1243_v36 = vadd.f32 %v1242_v33, %v1073_v28  ;;  %v2519_v31 = vld [vmem:[%s4415_s0 + $0x260] sm:$0xf] }
 0x109   :  { %1811 = vst.msk [vmem:[%s4416_s2 + $0x2c] sm:$0xf] %vm1799_vm4, %v1746_v30  ;;  %v2084_v41 = vsel %vm19_vm3, %v2010_v32, 0.0  ;;  %v227_v30 = vld [vmem:[#allocation2 + $0x78] sm:$0xff]  ;;  %v2520_v48 = vor.u32 %v2786_v37, %v2519_v31 }
 0x10a   :  { %v2085_v44 = vadd.f32 %v2084_v41, %v2083_v21  ;;  %v1411_v45 = vpop.f32.mrf.mxu2  ;;  %v2412_v41 = vor.u32 %v2759_v27, %v2411_v26  ;;  %v2415_v26 = vld [vmem:[%s4415_s0 + $0x198] sm:$0xf]  ;;  %v2761_v27 = vld [vmem:[%s4415_s0 + $0x1a0] sm:$0xf0] }
 0x10b   :  { %v1412_v50 = vadd.f32 %v1411_v45, %v1243_v36  ;;  %v2758_v36 = vld [vmem:[%s4415_s0 + $0x188] sm:$0xf0]  ;;  %v2416_v37 = vor.u32 %v2761_v27, %v2415_v26  ;;  %v2763_v26 = vld [vmem:[%s4415_s0 + $0x1b4] sm:$0xf]  ;;  %v2429_v27 = vld [vmem:[%s4415_s0 + $0x1bc] sm:$0xf0] }
 0x10c   :  { %v3620_v55 = vpop.f32.mrf.mxu3 }
 0x10d   :  { %v1552_v57 = vadd.f32 %v1412_v50, %v225_v42  ;;  %v2757_v42 = vld [vmem:[%s4415_s0 + $0x184] sm:$0xf] }
 0x10e   :  { %v1683_v60 = vld [vmem:[#allocation2 + $0x60] sm:$0xff]  ;;  %v1076_v61 = vpop.f32.mrf.mxu0 }
 0x10f   :  { %v1747_v0 = vpack.c.bf16 %v1683_v60, %v1683_v60  ;;  %v1887_v1 = vsel %vm19_vm3, %v1683_v60, 0.0  ;;  %v2011_v2 = vmul.f32 %v1683_v60, %v1683_v60  ;;  %1617 = vst.msk [vmem:[#allocation2 + $0x68] sm:$0xff] %vm19_vm3, %v1552_v57  ;;  %2692 = vmatmul.msk.bf16.gmra.mxu2 %vm928_vm2, %v2400_v51  ;;  %v1245_v3 = vpop.f32.mrf.mxu1  ;;  %v2408_v51 = vor.u32 %v2757_v42, %v2405_v43 }
 0x110   :  { %v1888_v5 = vadd.f32 %v1887_v1, %v1886_v34  ;;  %v1246_v6 = vadd.f32 %v1245_v3, %v1076_v61  ;;  %v2403_v34 = vld [vmem:[%s4415_s0 + $0x180] sm:$0xf] }
 0x111   :  { %1812 = vst.msk [vmem:[%s4416_s2 + $0x30] sm:$0xf] %vm1799_vm4, %v1747_v0  ;;  %v2086_v7 = vsel %vm19_vm3, %v2011_v2, 0.0  ;;  %1115 = vmatmul.bf16.gmra.mxu0 %v2392_v58  ;;  %1364 = vmatmul.bf16.gmra.mxu3 %v2588_v59  ;;  %v2404_v46 = vor.u32 %v2758_v36, %v2403_v34  ;;  %v228_v0 = vld [vmem:[#allocation2 + $0x80] sm:$0xff] }
 0x112   :  { %v2087_v8 = vadd.f32 %v2086_v7, %v2085_v44  ;;  %v1414_v11 = vpop.f32.mrf.mxu2  ;;  %1284 = vmatmul.bf16.gmra.mxu1 %v2396_v62 }
 0x113   :  { %v1415_v12 = vadd.f32 %v1414_v11, %v1246_v6 }
 0x114   :  { %v3630_v13 = vpop.f32.mrf.mxu3 }
 0x115   :  { %v1553_v14 = vadd.f32 %v1415_v12, %v226_v9 }
 0x116   :  { %v1684_v16 = vld [vmem:[#allocation2 + $0x68] sm:$0xff]  ;;  %v1078_v17 = vpop.f32.mrf.mxu0 }
 0x117   :  { %v1748_v18 = vpack.c.bf16 %v1684_v16, %v1684_v16  ;;  %v1889_v20 = vsel %vm19_vm3, %v1684_v16, 0.0  ;;  %v2012_v21 = vmul.f32 %v1684_v16, %v1684_v16  ;;  %1618 = vst.msk [vmem:[#allocation2 + $0x70] sm:$0xff] %vm19_vm3, %v1553_v14  ;;  %v1247_v22 = vpop.f32.mrf.mxu1 }
 0x118   :  { %v1890_v23 = vadd.f32 %v1889_v20, %v1888_v5  ;;  %v1248_v24 = vadd.f32 %v1247_v22, %v1078_v17  ;;  %v2423_v17 = vld [vmem:[%s4415_s0 + $0x1a0] sm:$0xf]  ;;  %v2531_v22 = vld [vmem:[%s4415_s0 + $0x278] sm:$0xf] }
 0x119   :  { %1813 = vst.msk [vmem:[%s4416_s2 + $0x34] sm:$0xf] %vm1799_vm4, %v1748_v18  ;;  %v2088_v28 = vsel %vm19_vm3, %v2012_v21, 0.0  ;;  %v2762_v18 = vld [vmem:[%s4415_s0 + $0x1a8] sm:$0xf0] }
 0x11a   :  { %v2089_v32 = vadd.f32 %v2088_v28, %v2087_v8  ;;  %v1416_v33 = vpop.f32.mrf.mxu2  ;;  %v229_v21 = vld [vmem:[#allocation2 + $0x88] sm:$0xff]  ;;  %v2789_v28 = vld [vmem:[%s4415_s0 + $0x280] sm:$0xf0]  ;;  %v2424_v31 = vor.u32 %v2762_v18, %v2423_v17 }
 0x11b   :  { %v1417_v38 = vadd.f32 %v1416_v33, %v1248_v24  ;;  %v2417_v33 = vld [vmem:[%s4415_s0 + $0x1a4] sm:$0xf0] }
 0x11c   :  { %v3663_v44 = vpop.f32.mrf.mxu3 }
 0x11d   :  { %v1554_v45 = vadd.f32 %v1417_v38, %v227_v30  ;;  %v2532_v38 = vor.u32 %v2789_v28, %v2531_v22  ;;  %v2792_v22 = vld [vmem:[%s4415_s0 + $0x298] sm:$0xf0] }
 0x11e   :  { %v1685_v49 = vld [vmem:[#allocation2 + $0x70] sm:$0xff]  ;;  %v1081_v50 = vpop.f32.mrf.mxu0 }
 0x11f   :  { %v1749_v52 = vpack.c.bf16 %v1685_v49, %v1685_v49  ;;  %v1891_v54 = vsel %vm19_vm3, %v1685_v49, 0.0  ;;  %v2013_v57 = vmul.f32 %v1685_v49, %v1685_v49  ;;  %1619 = vst.msk [vmem:[#allocation2 + $0x78] sm:$0xff] %vm19_vm3, %v1554_v45  ;;  %2693 = vmatmul.msk.bf16.gmra.mxu2 %vm928_vm2, %v2412_v41  ;;  %v1250_v58 = vpop.f32.mrf.mxu1 }
 0x120   :  { %v1892_v59 = vadd.f32 %v1891_v54, %v1890_v23  ;;  %v1251_v60 = vadd.f32 %v1250_v58, %v1081_v50 }
 0x121   :  { %1814 = vst.msk [vmem:[%s4416_s2 + $0x38] sm:$0xf] %vm1799_vm4, %v1749_v52  ;;  %v2090_v61 = vsel %vm19_vm3, %v2013_v57, 0.0  ;;  %1120 = vmatmul.bf16.gmra.mxu0 %v2404_v46  ;;  %2702 = vmatmul.msk.bf16.vlgmr.msra.gmra.mxu3 %vm928_vm2, %v2520_v48  ;;  %v230_v57 = vld [vmem:[#allocation2 + $0x90] sm:$0xff] }
 0x122   :  { %v2091_v62 = vadd.f32 %v2090_v61, %v2089_v32  ;;  %v1419_v1 = vpop.f32.mrf.mxu2  ;;  %1289 = vmatmul.bf16.gmra.mxu1 %v2408_v51  ;;  %v2760_v32 = vld [vmem:[%s4415_s0 + $0x19c] sm:$0xf] }
 0x123   :  { %v1420_v2 = vadd.f32 %v1419_v1, %v1251_v60  ;;  %v2420_v43 = vor.u32 %v2760_v32, %v2417_v33 }
 0x124   :  { %v3674_v3 = vpop.f32.mrf.mxu3 }
 0x125   :  { %v1555_v5 = vadd.f32 %v1420_v2, %v228_v0 }
 0x126   :  { %v1686_v6 = vld [vmem:[#allocation2 + $0x78] sm:$0xff]  ;;  %v1083_v7 = vpop.f32.mrf.mxu0 }
 0x127   :  { %v1750_v8 = vpack.c.bf16 %v1686_v6, %v1686_v6  ;;  %v1893_v9 = vsel %vm19_vm3, %v1686_v6, 0.0  ;;  %v2014_v11 = vmul.f32 %v1686_v6, %v1686_v6  ;;  %1620 = vst.msk [vmem:[#allocation2 + $0x80] sm:$0xff] %vm19_vm3, %v1555_v5  ;;  %v1252_v12 = vpop.f32.mrf.mxu1 }
 0x128   :  { %v1894_v14 = vadd.f32 %v1893_v9, %v1892_v59  ;;  %v1253_v16 = vadd.f32 %v1252_v12, %v1083_v7  ;;  %v2435_v9 = vld [vmem:[%s4415_s0 + $0x1b8] sm:$0xf] }
 0x129   :  { %1815 = vst.msk [vmem:[%s4416_s2 + $0x3c] sm:$0xf] %vm1799_vm4, %v1750_v8  ;;  %v2092_v20 = vsel %vm19_vm3, %v2014_v11, 0.0  ;;  %v2765_v11 = vld [vmem:[%s4415_s0 + $0x1c0] sm:$0xf0] }
 0x12a   :  { %v2093_v23 = vadd.f32 %v2092_v20, %v2091_v62  ;;  %v1421_v24 = vpop.f32.mrf.mxu2  ;;  %v2427_v20 = vld [vmem:[%s4415_s0 + $0x1b0] sm:$0xf] }
 0x12b   :  { %v1422_v30 = vadd.f32 %v1421_v24, %v1253_v16  ;;  %v2543_v16 = vld [vmem:[%s4415_s0 + $0x290] sm:$0xf]  ;;  %v2436_v24 = vor.u32 %v2765_v11, %v2435_v9  ;;  %v233_v9 = vld [vmem:[#allocation2 + $0xa8] sm:$0xff] }
 0x12c   :  { %v3707_v34 = vpop.f32.mrf.mxu3  ;;  %v2544_v32 = vor.u32 %v2792_v22, %v2543_v16  ;;  %v2555_v11 = vld [vmem:[%s4415_s0 + $0x2a8] sm:$0xf]  ;;  %v2766_v22 = vld [vmem:[%s4415_s0 + $0x1cc] sm:$0xf] }
 0x12d   :  { %v1556_v36 = vadd.f32 %v1422_v30, %v229_v21  ;;  %v2764_v21 = vld [vmem:[%s4415_s0 + $0x1b8] sm:$0xf0]  ;;  %v2439_v16 = vld [vmem:[%s4415_s0 + $0x1c8] sm:$0xf] }
 0x12e   :  { %v1687_v41 = vld [vmem:[#allocation2 + $0x80] sm:$0xff]  ;;  %v1086_v42 = vpop.f32.mrf.mxu0 }
 0x12f   :  { %v1751_v45 = vpack.c.bf16 %v1687_v41, %v1687_v41  ;;  %v1895_v46 = vsel %vm19_vm3, %v1687_v41, 0.0  ;;  %v2015_v48 = vmul.f32 %v1687_v41, %v1687_v41  ;;  %1621 = vst.msk [vmem:[#allocation2 + $0x88] sm:$0xff] %vm19_vm3, %v1556_v36  ;;  %2694 = vmatmul.msk.bf16.gmra.mxu2 %vm928_vm2, %v2424_v31  ;;  %v1255_v49 = vpop.f32.mrf.mxu1  ;;  %v2428_v31 = vor.u32 %v2764_v21, %v2427_v20 }
 0x130   :  { %v1896_v50 = vadd.f32 %v1895_v46, %v1894_v14  ;;  %v1256_v51 = vadd.f32 %v1255_v49, %v1086_v42  ;;  %v231_v14 = vld [vmem:[#allocation2 + $0x98] sm:$0xff] }
 0x131   :  { %1816 = vst.msk [vmem:[%s4416_s2 + $0x40] sm:$0xf] %vm1799_vm4, %v1751_v45  ;;  %v2094_v52 = vsel %vm19_vm3, %v2015_v48, 0.0  ;;  %1125 = vmatmul.bf16.gmra.mxu0 %v2416_v37  ;;  %2703 = vmatmul.msk.bf16.gmra.mxu3 %vm928_vm2, %v2532_v38  ;;  %v2432_v37 = vor.u32 %v2763_v26, %v2429_v27 }
 0x132   :  { %v2095_v54 = vadd.f32 %v2094_v52, %v2093_v23  ;;  %v1424_v58 = vpop.f32.mrf.mxu2  ;;  %1294 = vmatmul.bf16.gmra.mxu1 %v2420_v43 }
 0x133   :  { %v1425_v59 = vadd.f32 %v1424_v58, %v1256_v51 }
 0x134   :  { %v3718_v60 = vpop.f32.mrf.mxu3 }
 0x135   :  { %v1557_v61 = vadd.f32 %v1425_v59, %v230_v57 }
 0x136   :  { %v1688_v62 = vld [vmem:[#allocation2 + $0x88] sm:$0xff]  ;;  %v1088_v0 = vpop.f32.mrf.mxu0 }
 0x137   :  { %v1752_v1 = vpack.c.bf16 %v1688_v62, %v1688_v62  ;;  %v1897_v2 = vsel %vm19_vm3, %v1688_v62, 0.0  ;;  %v2016_v5 = vmul.f32 %v1688_v62, %v1688_v62  ;;  %1622 = vst.msk [vmem:[#allocation2 + $0x90] sm:$0xff] %vm19_vm3, %v1557_v61  ;;  %v1257_v6 = vpop.f32.mrf.mxu1 }
 0x138   :  { %v1898_v7 = vadd.f32 %v1897_v2, %v1896_v50  ;;  %v1258_v8 = vadd.f32 %v1257_v6, %v1088_v0  ;;  %v232_v50 = vld [vmem:[#allocation2 + $0xa0] sm:$0xff]  ;;  %v2447_v6 = vld [vmem:[%s4415_s0 + $0x1d0] sm:$0xf] }
 0x139   :  { %1817 = vst.msk [vmem:[%s4416_s2 + $0x44] sm:$0xf] %vm1799_vm4, %v1752_v1  ;;  %v2096_v12 = vsel %vm19_vm3, %v2016_v5, 0.0 }
 0x13a   :  { %v2097_v17 = vadd.f32 %v2096_v12, %v2095_v54  ;;  %v1426_v18 = vpop.f32.mrf.mxu2 }
 0x13b   :  { %v1427_v23 = vadd.f32 %v1426_v18, %v1258_v8  ;;  %v2795_v18 = vld [vmem:[%s4415_s0 + $0x2b0] sm:$0xf0] }
 0x13c   :  { %v3751_v28 = vpop.f32.mrf.mxu3 }
 0x13d   :  { %v1558_v30 = vadd.f32 %v1427_v23, %v231_v14  ;;  %v2441_v23 = vld [vmem:[%s4415_s0 + $0x1d4] sm:$0xf0] }
 0x13e   :  { %v1689_v33 = vld [vmem:[#allocation2 + $0x90] sm:$0xff]  ;;  %v1091_v36 = vpop.f32.mrf.mxu0 }
 0x13f   :  { %v1753_v38 = vpack.c.bf16 %v1689_v33, %v1689_v33  ;;  %v1899_v41 = vsel %vm19_vm3, %v1689_v33, 0.0  ;;  %v2017_v42 = vmul.f32 %v1689_v33, %v1689_v33  ;;  %1623 = vst.msk [vmem:[#allocation2 + $0x98] sm:$0xff] %vm19_vm3, %v1558_v30  ;;  %2695 = vmatmul.msk.bf16.gmra.mxu2 %vm928_vm2, %v2436_v24  ;;  %v1260_v43 = vpop.f32.mrf.mxu1  ;;  %v2556_v30 = vor.u32 %v2795_v18, %v2555_v11 }
 0x140   :  { %v1900_v45 = vadd.f32 %v1899_v41, %v1898_v7  ;;  %v1261_v46 = vadd.f32 %v1260_v43, %v1091_v36  ;;  %v2768_v7 = vld [vmem:[%s4415_s0 + $0x1d8] sm:$0xf0]  ;;  %v2444_v33 = vor.u32 %v2766_v22, %v2441_v23  ;;  %v2453_v22 = vld [vmem:[%s4415_s0 + $0x1ec] sm:$0xf0] }
 0x141   :  { %1818 = vst.msk [vmem:[%s4416_s2 + $0x48] sm:$0xf] %vm1799_vm4, %v1753_v38  ;;  %v2098_v48 = vsel %vm19_vm3, %v2017_v42, 0.0  ;;  %1130 = vmatmul.bf16.gmra.mxu0 %v2428_v31  ;;  %2704 = vmatmul.msk.bf16.gmra.mxu3 %vm928_vm2, %v2544_v32  ;;  %v2448_v21 = vor.u32 %v2768_v7, %v2447_v6  ;;  %v2771_v6 = vld [vmem:[%s4415_s0 + $0x1f0] sm:$0xf0] }
 0x142   :  { %v2099_v49 = vadd.f32 %v2098_v48, %v2097_v17  ;;  %v1429_v51 = vpop.f32.mrf.mxu2  ;;  %1299 = vmatmul.bf16.gmra.mxu1 %v2432_v37  ;;  %v2767_v17 = vld [vmem:[%s4415_s0 + $0x1d0] sm:$0xf0] }
 0x143   :  { %v1430_v52 = vadd.f32 %v1429_v51, %v1261_v46  ;;  %v2440_v27 = vor.u32 %v2767_v17, %v2439_v16  ;;  %v234_v48 = vld [vmem:[#allocation2 + $0xb0] sm:$0xff]  ;;  %v2770_v16 = vld [vmem:[%s4415_s0 + $0x1e8] sm:$0xf0] }
 0x144   :  { %v3762_v54 = vpop.f32.mrf.mxu3  ;;  %v2798_v17 = vld [vmem:[%s4415_s0 + $0x2c8] sm:$0xf0] }
 0x145   :  { %v1559_v57 = vadd.f32 %v1430_v52, %v232_v50 }
 0x146   :  { %v1690_v58 = vld [vmem:[#allocation2 + $0x98] sm:$0xff]  ;;  %v1093_v59 = vpop.f32.mrf.mxu0 }
 0x147   :  { %v1754_v61 = vpack.c.bf16 %v1690_v58, %v1690_v58  ;;  %v1901_v62 = vsel %vm19_vm3, %v1690_v58, 0.0  ;;  %v2018_v0 = vmul.f32 %v1690_v58, %v1690_v58  ;;  %1624 = vst.msk [vmem:[#allocation2 + $0xa0] sm:$0xff] %vm19_vm3, %v1559_v57  ;;  %v1262_v1 = vpop.f32.mrf.mxu1 }
 0x148   :  { %v1902_v2 = vadd.f32 %v1901_v62, %v1900_v45  ;;  %v1263_v5 = vadd.f32 %v1262_v1, %v1093_v59 }
 0x149   :  { %1819 = vst.msk [vmem:[%s4416_s2 + $0x4c] sm:$0xf] %vm1799_vm4, %v1754_v61  ;;  %v2100_v8 = vsel %vm19_vm3, %v2018_v0, 0.0 }
 0x14a   :  { %v2101_v12 = vadd.f32 %v2100_v8, %v2099_v49  ;;  %v1431_v14 = vpop.f32.mrf.mxu2  ;;  %v235_v8 = vld [vmem:[#allocation2 + $0xb8] sm:$0xff] }
 0x14b   :  { %v1432_v20 = vadd.f32 %v1431_v14, %v1263_v5  ;;  %v2459_v5 = vld [vmem:[%s4415_s0 + $0x1e8] sm:$0xf]  ;;  %v2451_v14 = vld [vmem:[%s4415_s0 + $0x1e0] sm:$0xf] }
 0x14c   :  { %v3795_v24 = vpop.f32.mrf.mxu3 }
 0x14d   :  { %v1560_v26 = vadd.f32 %v1432_v20, %v233_v9  ;;  %v2567_v9 = vld [vmem:[%s4415_s0 + $0x2c0] sm:$0xf]  ;;  %v2460_v20 = vor.u32 %v2771_v6, %v2459_v5 }
 0x14e   :  { %v1691_v31 = vld [vmem:[#allocation2 + $0xa0] sm:$0xff]  ;;  %v1096_v32 = vpop.f32.mrf.mxu0 }
 0x14f   :  { %v1755_v36 = vpack.c.bf16 %v1691_v31, %v1691_v31  ;;  %v1903_v37 = vsel %vm19_vm3, %v1691_v31, 0.0  ;;  %v2019_v38 = vmul.f32 %v1691_v31, %v1691_v31  ;;  %1625 = vst.msk [vmem:[#allocation2 + $0xa8] sm:$0xff] %vm19_vm3, %v1560_v26  ;;  %2696 = vmatmul.msk.bf16.gmra.mxu2 %vm928_vm2, %v2448_v21  ;;  %v1265_v41 = vpop.f32.mrf.mxu1  ;;  %v2769_v21 = vld [vmem:[%s4415_s0 + $0x1e4] sm:$0xf]  ;;  %v2471_v6 = vld [vmem:[%s4415_s0 + $0x200] sm:$0xf] }
 0x150   :  { %v1904_v42 = vadd.f32 %v1903_v37, %v1902_v2  ;;  %v1266_v43 = vadd.f32 %v1265_v41, %v1096_v32 }
 0x151   :  { %1820 = vst.msk [vmem:[%s4416_s2 + $0x50] sm:$0xf] %vm1799_vm4, %v1755_v36  ;;  %v2102_v45 = vsel %vm19_vm3, %v2019_v38, 0.0  ;;  %1135 = vmatmul.bf16.gmra.mxu0 %v2440_v27  ;;  %2705 = vmatmul.msk.bf16.gmra.mxu3 %vm928_vm2, %v2556_v30  ;;  %v2452_v27 = vor.u32 %v2770_v16, %v2451_v14  ;;  %v2568_v30 = vor.u32 %v2798_v17, %v2567_v9  ;;  %v237_v9 = vld [vmem:[#allocation2 + $0xc8] sm:$0xff]  ;;  %v2463_v16 = vld [vmem:[%s4415_s0 + $0x1f8] sm:$0xf] }
 0x152   :  { %v2103_v46 = vadd.f32 %v2102_v45, %v2101_v12  ;;  %v1434_v49 = vpop.f32.mrf.mxu2  ;;  %1304 = vmatmul.bf16.gmra.mxu1 %v2444_v33  ;;  %v2456_v33 = vor.u32 %v2769_v21, %v2453_v22  ;;  %v2773_v17 = vld [vmem:[%s4415_s0 + $0x200] sm:$0xf0]  ;;  %v2772_v22 = vld [vmem:[%s4415_s0 + $0x1fc] sm:$0xf] }
 0x153   :  { %v1435_v50 = vadd.f32 %v1434_v49, %v1266_v43 }
 0x154   :  { %v3806_v51 = vpop.f32.mrf.mxu3 }
 0x155   :  { %v1561_v52 = vadd.f32 %v1435_v50, %v234_v48  ;;  %v236_v48 = vld [vmem:[#allocation2 + $0xc0] sm:$0xff] }
 0x156   :  { %v1692_v57 = vld [vmem:[#allocation2 + $0xa8] sm:$0xff]  ;;  %v1098_v58 = vpop.f32.mrf.mxu0 }
 0x157   :  { %v1756_v59 = vpack.c.bf16 %v1692_v57, %v1692_v57  ;;  %v1905_v61 = vsel %vm19_vm3, %v1692_v57, 0.0  ;;  %v2020_v62 = vmul.f32 %v1692_v57, %v1692_v57  ;;  %1626 = vst.msk [vmem:[#allocation2 + $0xb0] sm:$0xff] %vm19_vm3, %v1561_v52  ;;  %v1267_v0 = vpop.f32.mrf.mxu1 }
 0x158   :  { %v1906_v1 = vadd.f32 %v1905_v61, %v1904_v42  ;;  %v1268_v2 = vadd.f32 %v1267_v0, %v1098_v58 }
 0x159   :  { %1821 = vst.msk [vmem:[%s4416_s2 + $0x54] sm:$0xf] %vm1799_vm4, %v1756_v59  ;;  %v2104_v7 = vsel %vm19_vm3, %v2020_v62, 0.0 }
 0x15a   :  { %v2105_v11 = vadd.f32 %v2104_v7, %v2103_v46  ;;  %v1436_v12 = vpop.f32.mrf.mxu2  ;;  %v2774_v7 = vld [vmem:[%s4415_s0 + $0x208] sm:$0xf0] }
 0x15b   :  { %v1437_v18 = vadd.f32 %v1436_v12, %v1268_v2  ;;  %v2472_v21 = vor.u32 %v2774_v7, %v2471_v6 }
 0x15c   :  { %v3839_v23 = vpop.f32.mrf.mxu3 }
 0x15d   :  { %v1562_v26 = vadd.f32 %v1437_v18, %v235_v8  ;;  %v2801_v18 = vld [vmem:[%s4415_s0 + $0x2e0] sm:$0xf0] }
 0x15e   :  { %v1693_v31 = vld [vmem:[#allocation2 + $0xb0] sm:$0xff]  ;;  %v1101_v32 = vpop.f32.mrf.mxu0 }
 0x15f   :  { %v1757_v36 = vpack.c.bf16 %v1693_v31, %v1693_v31  ;;  %v1907_v37 = vsel %vm19_vm3, %v1693_v31, 0.0  ;;  %v2021_v38 = vmul.f32 %v1693_v31, %v1693_v31  ;;  %1627 = vst.msk [vmem:[#allocation2 + $0xb8] sm:$0xff] %vm19_vm3, %v1562_v26  ;;  %2697 = vmatmul.msk.bf16.gmra.mxu2 %vm928_vm2, %v2460_v20  ;;  %v1270_v41 = vpop.f32.mrf.mxu1  ;;  %v2465_v26 = vld [vmem:[%s4415_s0 + $0x204] sm:$0xf0]  ;;  %v2464_v31 = vor.u32 %v2773_v17, %v2463_v16  ;;  %v2591_v16 = vld [vmem:[%s4415_s0 + $0x2f0] sm:$0xf] }
 0x160   :  { %v1908_v42 = vadd.f32 %v1907_v37, %v1906_v1  ;;  %v1271_v43 = vadd.f32 %v1270_v41, %v1101_v32  ;;  %v2468_v37 = vor.u32 %v2772_v22, %v2465_v26  ;;  %v2804_v22 = vld [vmem:[%s4415_s0 + $0x2f8] sm:$0xf0] }
 0x161   :  { %1822 = vst.msk [vmem:[%s4416_s2 + $0x58] sm:$0xf] %vm1799_vm4, %v1757_v36  ;;  %v2106_v45 = vsel %vm19_vm3, %v2021_v38, 0.0  ;;  %1140 = vmatmul.bf16.gmra.mxu0 %v2452_v27  ;;  %2706 = vmatmul.msk.bf16.gmra.mxu3 %vm928_vm2, %v2568_v30 }
 0x162   :  { %v2107_v46 = vadd.f32 %v2106_v45, %v2105_v11  ;;  %v1439_v49 = vpop.f32.mrf.mxu2  ;;  %1309 = vmatmul.bf16.gmra.mxu1 %v2456_v33  ;;  %v2579_v11 = vld [vmem:[%s4415_s0 + $0x2d8] sm:$0xf] }
 0x163   :  { %v1440_v50 = vadd.f32 %v1439_v49, %v1271_v43  ;;  %v2580_v32 = vor.u32 %v2801_v18, %v2579_v11  ;;  %v2777_v11 = vld [vmem:[%s4415_s0 + $0x220] sm:$0xf0] }
 0x164   :  { %v3850_v52 = vpop.f32.mrf.mxu3 }
 0x165   :  { %v1563_v57 = vadd.f32 %v1440_v50, %v236_v48  ;;  %v238_v50 = vld [vmem:[#allocation2 + $0xd0] sm:$0xff] }
 0x166   :  { %v1694_v58 = vld [vmem:[#allocation2 + $0xb8] sm:$0xff]  ;;  %v1103_v59 = vpop.f32.mrf.mxu0 }
 0x167   :  { %v1758_v61 = vpack.c.bf16 %v1694_v58, %v1694_v58  ;;  %v1909_v62 = vsel %vm19_vm3, %v1694_v58, 0.0  ;;  %v2022_v0 = vmul.f32 %v1694_v58, %v1694_v58  ;;  %1628 = vst.msk [vmem:[#allocation2 + $0xc0] sm:$0xff] %vm19_vm3, %v1563_v57  ;;  %v1272_v1 = vpop.f32.mrf.mxu1 }
 0x168   :  { %v1910_v2 = vadd.f32 %v1909_v62, %v1908_v42  ;;  %v1273_v5 = vadd.f32 %v1272_v1, %v1103_v59 }
 0x169   :  { %1823 = vst.msk [vmem:[%s4416_s2 + $0x5c] sm:$0xf] %vm1799_vm4, %v1758_v61  ;;  %v2108_v8 = vsel %vm19_vm3, %v2022_v0, 0.0 }
 0x16a   :  { %v2109_v12 = vadd.f32 %v2108_v8, %v2107_v46  ;;  %v1441_v14 = vpop.f32.mrf.mxu2 }
 0x16b   :  { %v1442_v20 = vadd.f32 %v1441_v14, %v1273_v5  ;;  %v239_v14 = vld [vmem:[#allocation2 + $0xd8] sm:$0xff] }
 0x16c   :  { %v3883_v27 = vpop.f32.mrf.mxu3 }
 0x16d   :  { %v1564_v30 = vadd.f32 %v1442_v20, %v237_v9  ;;  %v2483_v9 = vld [vmem:[%s4415_s0 + $0x218] sm:$0xf]  ;;  %v2475_v20 = vld [vmem:[%s4415_s0 + $0x210] sm:$0xf] }
 0x16e   :  { %v1695_v33 = vld [vmem:[#allocation2 + $0xc0] sm:$0xff]  ;;  %v1106_v36 = vpop.f32.mrf.mxu0 }
 0x16f   :  { %v1759_v38 = vpack.c.bf16 %v1695_v33, %v1695_v33  ;;  %v1911_v41 = vsel %vm19_vm3, %v1695_v33, 0.0  ;;  %v2023_v42 = vmul.f32 %v1695_v33, %v1695_v33  ;;  %1629 = vst.msk [vmem:[#allocation2 + $0xc8] sm:$0xff] %vm19_vm3, %v1564_v30  ;;  %2698 = vmatmul.msk.bf16.gmra.mxu2 %vm928_vm2, %v2472_v21  ;;  %v1275_v43 = vpop.f32.mrf.mxu1  ;;  %v2776_v21 = vld [vmem:[%s4415_s0 + $0x218] sm:$0xf0]  ;;  %v2484_v30 = vor.u32 %v2777_v11, %v2483_v9 }
 0x170   :  { %v1912_v45 = vadd.f32 %v1911_v41, %v1910_v2  ;;  %v1276_v46 = vadd.f32 %v1275_v43, %v1106_v36 }
 0x171   :  { %1824 = vst.msk [vmem:[%s4416_s2 + $0x60] sm:$0xf] %vm1799_vm4, %v1759_v38  ;;  %v2110_v48 = vsel %vm19_vm3, %v2023_v42, 0.0  ;;  %1145 = vmatmul.bf16.gmra.mxu0 %v2464_v31  ;;  %2707 = vmatmul.msk.bf16.gmra.mxu3 %vm928_vm2, %v2580_v32  ;;  %v2775_v31 = vld [vmem:[%s4415_s0 + $0x214] sm:$0xf]  ;;  %v2592_v38 = vor.u32 %v2804_v22, %v2591_v16  ;;  %v241_v22 = vld [vmem:[#allocation2 + $0xe8] sm:$0xff] }
 0x172   :  { %v2111_v49 = vadd.f32 %v2110_v48, %v2109_v12  ;;  %v1444_v57 = vpop.f32.mrf.mxu2  ;;  %1314 = vmatmul.bf16.gmra.mxu1 %v2468_v37  ;;  %v2477_v32 = vld [vmem:[%s4415_s0 + $0x21c] sm:$0xf0]  ;;  %v2476_v37 = vor.u32 %v2776_v21, %v2475_v20 }
 0x173   :  { %v1445_v58 = vadd.f32 %v1444_v57, %v1276_v46  ;;  %v2480_v43 = vor.u32 %v2775_v31, %v2477_v32  ;;  %v2779_v31 = vld [vmem:[%s4415_s0 + $0x230] sm:$0xf0] }
 0x174   :  { %v3894_v59 = vpop.f32.mrf.mxu3 }
 0x175   :  { %v1565_v61 = vadd.f32 %v1445_v58, %v238_v50 }
 0x176   :  { %v1696_v62 = vld [vmem:[#allocation2 + $0xc8] sm:$0xff]  ;;  %v1108_v0 = vpop.f32.mrf.mxu0 }
 0x177   :  { %v1760_v1 = vpack.c.bf16 %v1696_v62, %v1696_v62  ;;  %v1913_v2 = vsel %vm19_vm3, %v1696_v62, 0.0  ;;  %v2024_v5 = vmul.f32 %v1696_v62, %v1696_v62  ;;  %1630 = vst.msk [vmem:[#allocation2 + $0xd0] sm:$0xff] %vm19_vm3, %v1565_v61  ;;  %v1277_v6 = vpop.f32.mrf.mxu1  ;;  %v240_v62 = vld [vmem:[#allocation2 + $0xe0] sm:$0xff] }
 0x178   :  { %v1914_v7 = vadd.f32 %v1913_v2, %v1912_v45  ;;  %v1278_v8 = vadd.f32 %v1277_v6, %v1108_v0 }
 0x179   :  { %1825 = vst.msk [vmem:[%s4416_s2 + $0x64] sm:$0xf] %vm1799_vm4, %v1760_v1  ;;  %v2112_v12 = vsel %vm19_vm3, %v2024_v5, 0.0 }
 0x17a   :  { %v2113_v17 = vadd.f32 %v2112_v12, %v2111_v49  ;;  %v1446_v18 = vpop.f32.mrf.mxu2 }
 0x17b   :  { %v1447_v26 = vadd.f32 %v1446_v18, %v1278_v8  ;;  %v2780_v18 = vld [vmem:[%s4415_s0 + $0x238] sm:$0xf0] }
 0x17c   :  { %v3927_v33 = vpop.f32.mrf.mxu3 }
 0x17d   :  { %v1566_v36 = vadd.f32 %v1447_v26, %v239_v14 }
 0x17e   :  { %v1697_v41 = vld [vmem:[#allocation2 + $0xd0] sm:$0xff]  ;;  %v1111_v42 = vpop.f32.mrf.mxu0 }
 0x17f   :  { %v1761_v45 = vpack.c.bf16 %v1697_v41, %v1697_v41  ;;  %v1915_v46 = vsel %vm19_vm3, %v1697_v41, 0.0  ;;  %v2025_v48 = vmul.f32 %v1697_v41, %v1697_v41  ;;  %1631 = vst.msk [vmem:[#allocation2 + $0xd8] sm:$0xff] %vm19_vm3, %v1566_v36  ;;  %2699 = vmatmul.msk.bf16.gmra.mxu2 %vm928_vm2, %v2484_v30  ;;  %v1280_v49 = vpop.f32.mrf.mxu1  ;;  %v2487_v30 = vld [vmem:[%s4415_s0 + $0x228] sm:$0xf] }
 0x180   :  { %v1916_v50 = vadd.f32 %v1915_v46, %v1914_v7  ;;  %v1281_v57 = vadd.f32 %v1280_v49, %v1111_v42 }
 0x181   :  { %1826 = vst.msk [vmem:[%s4416_s2 + $0x68] sm:$0xf] %vm1799_vm4, %v1761_v45  ;;  %v2114_v58 = vsel %vm19_vm3, %v2025_v48, 0.0  ;;  %1150 = vmatmul.bf16.gmra.mxu0 %v2476_v37  ;;  %2708 = vmatmul.msk.bf16.gmra.mxu3 %vm928_vm2, %v2592_v38  ;;  %v2778_v37 = vld [vmem:[%s4415_s0 + $0x22c] sm:$0xf] }
 0x182   :  { %v2115_v61 = vadd.f32 %v2114_v58, %v2113_v17  ;;  %v1449_v0 = vpop.f32.mrf.mxu2  ;;  %1319 = vmatmul.bf16.gmra.mxu1 %v2480_v43  ;;  %v2495_v17 = vld [vmem:[%s4415_s0 + $0x230] sm:$0xf]  ;;  %v2489_v38 = vld [vmem:[%s4415_s0 + $0x234] sm:$0xf0]  ;;  %v2488_v43 = vor.u32 %v2779_v31, %v2487_v30 }
 0x183   :  { %v1450_v1 = vadd.f32 %v1449_v0, %v1281_v57  ;;  %v2496_v36 = vor.u32 %v2780_v18, %v2495_v17  ;;  %v2492_v48 = vor.u32 %v2778_v37, %v2489_v38 }
 0x184   :  { %v3938_v2 = vpop.f32.mrf.mxu3 }
 0x185   :  { %v1567_v5 = vadd.f32 %v1450_v1, %v240_v62 }
 0x186   :  { %v1698_v6 = vld [vmem:[#allocation2 + $0xd8] sm:$0xff]  ;;  %v1113_v7 = vpop.f32.mrf.mxu0 }
 0x187   :  { %v1762_v8 = vpack.c.bf16 %v1698_v6, %v1698_v6  ;;  %v1917_v9 = vsel %vm19_vm3, %v1698_v6, 0.0  ;;  %v2026_v11 = vmul.f32 %v1698_v6, %v1698_v6  ;;  %1632 = vst.msk [vmem:[#allocation2 + $0xe0] sm:$0xff] %vm19_vm3, %v1567_v5  ;;  %v1282_v12 = vpop.f32.mrf.mxu1  ;;  %v242_v5 = vld [vmem:[#allocation2 + $0xf0] sm:$0xff] }
 0x188   :  { %v1918_v14 = vadd.f32 %v1917_v9, %v1916_v50  ;;  %v1283_v16 = vadd.f32 %v1282_v12, %v1113_v7 }
 0x189   :  { %1827 = vst.msk [vmem:[%s4416_s2 + $0x6c] sm:$0xf] %vm1799_vm4, %v1762_v8  ;;  %v2116_v20 = vsel %vm19_vm3, %v2026_v11, 0.0 }
 0x18a   :  { %v2117_v21 = vadd.f32 %v2116_v20, %v2115_v61  ;;  %v1451_v26 = vpop.f32.mrf.mxu2 }
 0x18b   :  { %v1452_v32 = vadd.f32 %v1451_v26, %v1283_v16  ;;  %v2783_v26 = vld [vmem:[%s4415_s0 + $0x250] sm:$0xf0] }
 0x18c   :  { %v3965_v41 = vpop.f32.mrf.mxu3 }
 0x18d   :  { %v1568_v42 = vadd.f32 %v1452_v32, %v241_v22  ;;  %v243_v32 = vld [vmem:[#allocation2 + $0xf8] sm:$0xff] }
 0x18e   :  { %v1699_v45 = vld [vmem:[#allocation2 + $0xe0] sm:$0xff]  ;;  %v1116_v46 = vpop.f32.mrf.mxu0 }
 0x18f   :  { %v1763_v49 = vpack.c.bf16 %v1699_v45, %v1699_v45  ;;  %v1919_v50 = vsel %vm19_vm3, %v1699_v45, 0.0  ;;  %v2027_v57 = vmul.f32 %v1699_v45, %v1699_v45  ;;  %1633 = vst.msk [vmem:[#allocation2 + $0xe8] sm:$0xff] %vm19_vm3, %v1568_v42  ;;  %2700 = vmatmul.msk.bf16.gmra.mxu2 %vm928_vm2, %v2496_v36  ;;  %v1285_v58 = vpop.f32.mrf.mxu1 }
 0x190   :  { %v1920_v61 = vadd.f32 %v1919_v50, %v1918_v14  ;;  %v1286_v62 = vadd.f32 %v1285_v58, %v1116_v46 }
 0x191   :  { %1828 = vst.msk [vmem:[%s4416_s2 + $0x70] sm:$0xf] %vm1799_vm4, %v1763_v49  ;;  %v2118_v0 = vsel %vm19_vm3, %v2027_v57, 0.0  ;;  %1155 = vmatmul.bf16.gmra.mxu0 %v2488_v43 }
 0x192   :  { %v2119_v1 = vadd.f32 %v2118_v0, %v2117_v21  ;;  %v1454_v6 = vpop.f32.mrf.mxu2  ;;  %1324 = vmatmul.bf16.gmra.mxu1 %v2492_v48  ;;  %v2507_v21 = vld [vmem:[%s4415_s0 + $0x248] sm:$0xf] }
 0x193   :  { %v1455_v7 = vadd.f32 %v1454_v6, %v1286_v62  ;;  %v2508_v38 = vor.u32 %v2783_v26, %v2507_v21  ;;  %v1336_v6 = vadd.f32 %v3718_v60, %v3346_v40 }
 0x194   :  { %v3975_v8 = vpop.f32.mrf.mxu3 }
 0x195   :  { %v1569_v9 = vadd.f32 %v1455_v7, %v242_v5 }
 0x196   :  { %v1700_v11 = vld [vmem:[#allocation2 + $0xe8] sm:$0xff]  ;;  %v1118_v12 = vpop.f32.mrf.mxu0 }
 0x197   :  { %v1764_v14 = vpack.c.bf16 %v1700_v11, %v1700_v11  ;;  %v1921_v16 = vsel %vm19_vm3, %v1700_v11, 0.0  ;;  %v2028_v17 = vmul.f32 %v1700_v11, %v1700_v11  ;;  %1634 = vst.msk [vmem:[#allocation2 + $0xf0] sm:$0xff] %vm19_vm3, %v1569_v9  ;;  %v1287_v18 = vpop.f32.mrf.mxu1  ;;  %v262_v9 = vld [vmem:[#allocation2 + $0x190] sm:$0xff] }
 0x198   :  { %v1922_v20 = vadd.f32 %v1921_v16, %v1920_v61  ;;  %v1288_v22 = vadd.f32 %v1287_v18, %v1118_v12 }
 0x199   :  { %1829 = vst.msk [vmem:[%s4416_s2 + $0x74] sm:$0xf] %vm1799_vm4, %v1764_v14  ;;  %v2120_v30 = vsel %vm19_vm3, %v2028_v17, 0.0 }
 0x19a   :  { %v2121_v31 = vadd.f32 %v2120_v30, %v2119_v1  ;;  %v1456_v36 = vpop.f32.mrf.mxu2  ;;  %v244_v1 = vld [vmem:[#allocation2 + $0x100] sm:$0xff] }
 0x19b   :  { %v1457_v37 = vadd.f32 %v1456_v36, %v1288_v22 }
 0x19c   :  { %v3990_v42 = vpop.f32.mrf.mxu3 }
 0x19d   :  { %v1570_v43 = vadd.f32 %v1457_v37, %v243_v32  ;;  %v245_v32 = vld [vmem:[#allocation2 + $0x108] sm:$0xff]  ;;  %v1338_v37 = vadd.f32 %v3751_v28, %v3388_v63 }
 0x19e   :  { %v1701_v45 = vld [vmem:[#allocation2 + $0xf0] sm:$0xff]  ;;  %v1121_v46 = vpop.f32.mrf.mxu0 }
 0x19f   :  { %v1765_v48 = vpack.c.bf16 %v1701_v45, %v1701_v45  ;;  %v1923_v49 = vsel %vm19_vm3, %v1701_v45, 0.0  ;;  %v2029_v50 = vmul.f32 %v1701_v45, %v1701_v45  ;;  %1635 = vst.msk [vmem:[#allocation2 + $0xf8] sm:$0xff] %vm19_vm3, %v1570_v43  ;;  %2701 = vmatmul.msk.bf16.gmra.mxu2 %vm928_vm2, %v2508_v38  ;;  %v1290_v57 = vpop.f32.mrf.mxu1  ;;  %v263_v43 = vld [vmem:[#allocation2 + $0x198] sm:$0xff] }
 0x1a0   :  { %v1924_v58 = vadd.f32 %v1923_v49, %v1922_v20  ;;  %v1291_v61 = vadd.f32 %v1290_v57, %v1121_v46 }
 0x1a1   :  { %1830 = vst.msk [vmem:[%s4416_s2 + $0x78] sm:$0xf] %vm1799_vm4, %v1765_v48  ;;  %v2122_v62 = vsel %vm19_vm3, %v2029_v50, 0.0 }
 0x1a2   :  { %v2123_v0 = vadd.f32 %v2122_v62, %v2121_v31  ;;  %v1459_v5 = vpop.f32.mrf.mxu2 }
 0x1a3   :  { %v1460_v7 = vadd.f32 %v1459_v5, %v1291_v61 }
 0x1a4   :  { %v1504_v11 = vpop.f32.mrf.mxu3 }
 0x1a5   :  { %v1571_v12 = vadd.f32 %v1460_v7, %v244_v1  ;;  %v1505_v14 = vadd.f32 %v1504_v11, %v1336_v6 }
 0x1a6   :  { %v1702_v16 = vld [vmem:[#allocation2 + $0xf8] sm:$0xff]  ;;  %v1123_v17 = vpop.f32.mrf.mxu0 }
 0x1a7   :  { %v1766_v18 = vpack.c.bf16 %v1702_v16, %v1702_v16  ;;  %v1925_v20 = vsel %vm19_vm3, %v1702_v16, 0.0  ;;  %v2030_v22 = vmul.f32 %v1702_v16, %v1702_v16  ;;  %1636 = vst.msk [vmem:[#allocation2 + $0x100] sm:$0xff] %vm19_vm3, %v1571_v12  ;;  %v1589_v21 = vadd.f32 %v1505_v14, %v262_v9  ;;  %v1292_v26 = vpop.f32.mrf.mxu1  ;;  %v246_v9 = vld [vmem:[#allocation2 + $0x110] sm:$0xff]  ;;  %v264_v16 = vld [vmem:[#allocation2 + $0x1a0] sm:$0xff] }
 0x1a8   :  { %v1926_v30 = vadd.f32 %v1925_v20, %v1924_v58  ;;  %v1293_v31 = vadd.f32 %v1292_v26, %v1123_v17  ;;  %v1341_v12 = vadd.f32 %v3762_v54, %v3400_v10 }
 0x1a9   :  { %1831 = vst.msk [vmem:[%s4416_s2 + $0x7c] sm:$0xf] %vm1799_vm4, %v1766_v18  ;;  %v2124_v40 = vsel %vm19_vm3, %v2030_v22, 0.0 }
 0x1aa   :  { %v2125_v60 = vadd.f32 %v2124_v40, %v2123_v0  ;;  %1654 = vst.msk [vmem:[#allocation2 + $0x190] sm:$0xff] %vm19_vm3, %v1589_v21  ;;  %v1461_v36 = vpop.f32.mrf.mxu2 }
 0x1ab   :  { %v1462_v38 = vadd.f32 %v1461_v36, %v1293_v31 }
 0x1ac   :  { %v1506_v45 = vpop.f32.mrf.mxu3 }
 0x1ad   :  { %v1572_v46 = vadd.f32 %v1462_v38, %v245_v32  ;;  %v1507_v48 = vadd.f32 %v1506_v45, %v1338_v37 }
 0x1ae   :  { %v1703_v49 = vld [vmem:[#allocation2 + $0x100] sm:$0xff]  ;;  %v1126_v50 = vpop.f32.mrf.mxu0 }
 0x1af   :  { %v1767_v57 = vpack.c.bf16 %v1703_v49, %v1703_v49  ;;  %v1927_v58 = vsel %vm19_vm3, %v1703_v49, 0.0  ;;  %v2031_v61 = vmul.f32 %v1703_v49, %v1703_v49  ;;  %1637 = vst.msk [vmem:[#allocation2 + $0x108] sm:$0xff] %vm19_vm3, %v1572_v46  ;;  %v1590_v62 = vadd.f32 %v1507_v48, %v263_v43  ;;  %v1295_v0 = vpop.f32.mrf.mxu1  ;;  %v247_v43 = vld [vmem:[#allocation2 + $0x118] sm:$0xff]  ;;  %v265_v49 = vld [vmem:[#allocation2 + $0x1a8] sm:$0xff] }
 0x1b0   :  { %v1928_v1 = vadd.f32 %v1927_v58, %v1926_v30  ;;  %v1296_v5 = vadd.f32 %v1295_v0, %v1126_v50  ;;  %v1343_v46 = vadd.f32 %v3795_v24, %v3448_v53 }
 0x1b1   :  { %1832 = vst.msk [vmem:[%s4416_s2 + $0x80] sm:$0xf] %vm1799_vm4, %v1767_v57  ;;  %v2126_v63 = vsel %vm19_vm3, %v2031_v61, 0.0  ;;  %v4019_v28 = vld [vmem:[#allocation2 + $0x190] sm:$0xff] }
 0x1b2   :  { %v2127_v6 = vadd.f32 %v2126_v63, %v2125_v60  ;;  %v1785_v7 = vpack.c.bf16 %v4019_v28, %v4019_v28  ;;  %1655 = vst.msk [vmem:[#allocation2 + $0x198] sm:$0xff] %vm19_vm3, %v1590_v62  ;;  %v1464_v11 = vpop.f32.mrf.mxu2 }
 0x1b3   :  { %v1465_v14 = vadd.f32 %v1464_v11, %v1296_v5 }
 0x1b4   :  { %1850 = vst.msk [vmem:[%s4416_s2 + $0xc8] sm:$0xf] %vm1799_vm4, %v1785_v7  ;;  %v1509_v17 = vpop.f32.mrf.mxu3 }
 0x1b5   :  { %v1573_v18 = vadd.f32 %v1465_v14, %v246_v9  ;;  %v1510_v20 = vadd.f32 %v1509_v17, %v1341_v12  ;;  %v248_v14 = vld [vmem:[#allocation2 + $0x120] sm:$0xff]  ;;  %v1346_v17 = vadd.f32 %v3806_v51, %v3458_v47 }
 0x1b6   :  { %v1704_v22 = vld [vmem:[#allocation2 + $0x108] sm:$0xff]  ;;  %v1128_v21 = vpop.f32.mrf.mxu0 }
 0x1b7   :  { %v1768_v26 = vpack.c.bf16 %v1704_v22, %v1704_v22  ;;  %v1929_v30 = vsel %vm19_vm3, %v1704_v22, 0.0  ;;  %v2032_v31 = vmul.f32 %v1704_v22, %v1704_v22  ;;  %1638 = vst.msk [vmem:[#allocation2 + $0x110] sm:$0xff] %vm19_vm3, %v1573_v18  ;;  %v1591_v40 = vadd.f32 %v1510_v20, %v264_v16  ;;  %v1297_v10 = vpop.f32.mrf.mxu1  ;;  %v266_v20 = vld [vmem:[#allocation2 + $0x1b0] sm:$0xff] }
 0x1b8   :  { %v1930_v54 = vadd.f32 %v1929_v30, %v1928_v1  ;;  %v1298_v60 = vadd.f32 %v1297_v10, %v1128_v21 }
 0x1b9   :  { %1833 = vst.msk [vmem:[%s4416_s2 + $0x84] sm:$0xf] %vm1799_vm4, %v1768_v26  ;;  %v2128_v32 = vsel %vm19_vm3, %v2032_v31, 0.0  ;;  %v4037_v36 = vld [vmem:[#allocation2 + $0x198] sm:$0xff] }
 0x1ba   :  { %v2129_v37 = vadd.f32 %v2128_v32, %v2127_v6  ;;  %v1786_v38 = vpack.c.bf16 %v4037_v36, %v4037_v36  ;;  %1656 = vst.msk [vmem:[#allocation2 + $0x1a0] sm:$0xff] %vm19_vm3, %v1591_v40  ;;  %v1466_v45 = vpop.f32.mrf.mxu2 }
 0x1bb   :  { %v1467_v48 = vadd.f32 %v1466_v45, %v1298_v60 }
 0x1bc   :  { %1851 = vst.msk [vmem:[%s4416_s2 + $0xcc] sm:$0xf] %vm1799_vm4, %v1786_v38  ;;  %v1511_v50 = vpop.f32.mrf.mxu3 }
 0x1bd   :  { %v1574_v57 = vadd.f32 %v1467_v48, %v247_v43  ;;  %v1512_v58 = vadd.f32 %v1511_v50, %v1343_v46  ;;  %v249_v46 = vld [vmem:[#allocation2 + $0x128] sm:$0xff] }
 0x1be   :  { %v1705_v61 = vld [vmem:[#allocation2 + $0x110] sm:$0xff]  ;;  %v1131_v62 = vpop.f32.mrf.mxu0 }
 0x1bf   :  { %v1769_v0 = vpack.c.bf16 %v1705_v61, %v1705_v61  ;;  %v1931_v1 = vsel %vm19_vm3, %v1705_v61, 0.0  ;;  %v2033_v5 = vmul.f32 %v1705_v61, %v1705_v61  ;;  %1639 = vst.msk [vmem:[#allocation2 + $0x118] sm:$0xff] %vm19_vm3, %v1574_v57  ;;  %v1592_v63 = vadd.f32 %v1512_v58, %v265_v49  ;;  %v1300_v53 = vpop.f32.mrf.mxu1  ;;  %v267_v57 = vld [vmem:[#allocation2 + $0x1b8] sm:$0xff] }
 0x1c0   :  { %v1932_v24 = vadd.f32 %v1931_v1, %v1930_v54  ;;  %v1301_v6 = vadd.f32 %v1300_v53, %v1131_v62  ;;  %v1348_v49 = vadd.f32 %v3839_v23, %v3491_v35 }
 0x1c1   :  { %1834 = vst.msk [vmem:[%s4416_s2 + $0x88] sm:$0xf] %vm1799_vm4, %v1769_v0  ;;  %v2130_v7 = vsel %vm19_vm3, %v2033_v5, 0.0  ;;  %v4055_v9 = vld [vmem:[#allocation2 + $0x1a0] sm:$0xff] }
 0x1c2   :  { %v2131_v11 = vadd.f32 %v2130_v7, %v2129_v37  ;;  %v1787_v12 = vpack.c.bf16 %v4055_v9, %v4055_v9  ;;  %1657 = vst.msk [vmem:[#allocation2 + $0x1a8] sm:$0xff] %vm19_vm3, %v1592_v63  ;;  %v1469_v16 = vpop.f32.mrf.mxu2 }
 0x1c3   :  { %v1470_v18 = vadd.f32 %v1469_v16, %v1301_v6  ;;  %v250_v16 = vld [vmem:[#allocation2 + $0x130] sm:$0xff] }
 0x1c4   :  { %1852 = vst.msk [vmem:[%s4416_s2 + $0xd0] sm:$0xf] %vm1799_vm4, %v1787_v12  ;;  %v1514_v22 = vpop.f32.mrf.mxu3 }
 0x1c5   :  { %v1575_v21 = vadd.f32 %v1470_v18, %v248_v14  ;;  %v1515_v26 = vadd.f32 %v1514_v22, %v1346_v17  ;;  %v1351_v18 = vadd.f32 %v3850_v52, %v3501_v56  ;;  %v268_v22 = vld [vmem:[#allocation2 + $0x1c0] sm:$0xff] }
 0x1c6   :  { %v1706_v30 = vld [vmem:[#allocation2 + $0x118] sm:$0xff]  ;;  %v1133_v31 = vpop.f32.mrf.mxu0 }
 0x1c7   :  { %v1770_v40 = vpack.c.bf16 %v1706_v30, %v1706_v30  ;;  %v1933_v10 = vsel %vm19_vm3, %v1706_v30, 0.0  ;;  %v2034_v54 = vmul.f32 %v1706_v30, %v1706_v30  ;;  %1640 = vst.msk [vmem:[#allocation2 + $0x120] sm:$0xff] %vm19_vm3, %v1575_v21  ;;  %v1593_v60 = vadd.f32 %v1515_v26, %v266_v20  ;;  %v1302_v47 = vpop.f32.mrf.mxu1 }
 0x1c8   :  { %v1934_v51 = vadd.f32 %v1933_v10, %v1932_v24  ;;  %v1303_v32 = vadd.f32 %v1302_v47, %v1133_v31 }
 0x1c9   :  { %1835 = vst.msk [vmem:[%s4416_s2 + $0x8c] sm:$0xf] %vm1799_vm4, %v1770_v40  ;;  %v2132_v37 = vsel %vm19_vm3, %v2034_v54, 0.0  ;;  %v4073_v38 = vld [vmem:[#allocation2 + $0x1a8] sm:$0xff] }
 0x1ca   :  { %v2133_v43 = vadd.f32 %v2132_v37, %v2131_v11  ;;  %v1788_v45 = vpack.c.bf16 %v4073_v38, %v4073_v38  ;;  %1658 = vst.msk [vmem:[#allocation2 + $0x1b0] sm:$0xff] %vm19_vm3, %v1593_v60  ;;  %v1471_v48 = vpop.f32.mrf.mxu2 }
 0x1cb   :  { %v1472_v50 = vadd.f32 %v1471_v48, %v1303_v32 }
 0x1cc   :  { %1853 = vst.msk [vmem:[%s4416_s2 + $0xd4] sm:$0xf] %vm1799_vm4, %v1788_v45  ;;  %v1516_v58 = vpop.f32.mrf.mxu3 }
 0x1cd   :  { %v1576_v61 = vadd.f32 %v1472_v50, %v249_v46  ;;  %v1517_v62 = vadd.f32 %v1516_v58, %v1348_v49  ;;  %v251_v46 = vld [vmem:[#allocation2 + $0x138] sm:$0xff]  ;;  %v1353_v49 = vadd.f32 %v3883_v27, %v3534_v19 }
 0x1ce   :  { %v1707_v0 = vld [vmem:[#allocation2 + $0x120] sm:$0xff]  ;;  %v1136_v1 = vpop.f32.mrf.mxu0 }
 0x1cf   :  { %v1771_v5 = vpack.c.bf16 %v1707_v0, %v1707_v0  ;;  %v1935_v63 = vsel %vm19_vm3, %v1707_v0, 0.0  ;;  %v2035_v53 = vmul.f32 %v1707_v0, %v1707_v0  ;;  %1641 = vst.msk [vmem:[#allocation2 + $0x128] sm:$0xff] %vm19_vm3, %v1576_v61  ;;  %v1594_v24 = vadd.f32 %v1517_v62, %v267_v57  ;;  %v1305_v35 = vpop.f32.mrf.mxu1  ;;  %v269_v57 = vld [vmem:[#allocation2 + $0x1c8] sm:$0xff] }
 0x1d0   :  { %v1936_v23 = vadd.f32 %v1935_v63, %v1934_v51  ;;  %v1306_v6 = vadd.f32 %v1305_v35, %v1136_v1 }
 0x1d1   :  { %1836 = vst.msk [vmem:[%s4416_s2 + $0x90] sm:$0xf] %vm1799_vm4, %v1771_v5  ;;  %v2134_v7 = vsel %vm19_vm3, %v2035_v53, 0.0  ;;  %v4091_v11 = vld [vmem:[#allocation2 + $0x1b0] sm:$0xff] }
 0x1d2   :  { %v2135_v12 = vadd.f32 %v2134_v7, %v2133_v43  ;;  %v1789_v14 = vpack.c.bf16 %v4091_v11, %v4091_v11  ;;  %1659 = vst.msk [vmem:[#allocation2 + $0x1b8] sm:$0xff] %vm19_vm3, %v1594_v24  ;;  %v1474_v17 = vpop.f32.mrf.mxu2 }
 0x1d3   :  { %v1475_v20 = vadd.f32 %v1474_v17, %v1306_v6  ;;  %v1356_v17 = vadd.f32 %v3894_v59, %v3544_v39 }
 0x1d4   :  { %1854 = vst.msk [vmem:[%s4416_s2 + $0xd8] sm:$0xf] %vm1799_vm4, %v1789_v14  ;;  %v1519_v21 = vpop.f32.mrf.mxu3  ;;  %v252_v14 = vld [vmem:[#allocation2 + $0x140] sm:$0xff] }
 0x1d5   :  { %v1577_v26 = vadd.f32 %v1475_v20, %v250_v16  ;;  %v1520_v30 = vadd.f32 %v1519_v21, %v1351_v18  ;;  %v270_v20 = vld [vmem:[#allocation2 + $0x1d0] sm:$0xff] }
 0x1d6   :  { %v1708_v31 = vld [vmem:[#allocation2 + $0x128] sm:$0xff]  ;;  %v1138_v40 = vpop.f32.mrf.mxu0 }
 0x1d7   :  { %v1772_v10 = vpack.c.bf16 %v1708_v31, %v1708_v31  ;;  %v1937_v54 = vsel %vm19_vm3, %v1708_v31, 0.0  ;;  %v2036_v60 = vmul.f32 %v1708_v31, %v1708_v31  ;;  %1642 = vst.msk [vmem:[#allocation2 + $0x130] sm:$0xff] %vm19_vm3, %v1577_v26  ;;  %v1595_v47 = vadd.f32 %v1520_v30, %v268_v22  ;;  %v1307_v56 = vpop.f32.mrf.mxu1 }
 0x1d8   :  { %v1938_v52 = vadd.f32 %v1937_v54, %v1936_v23  ;;  %v1308_v51 = vadd.f32 %v1307_v56, %v1138_v40 }
 0x1d9   :  { %1837 = vst.msk [vmem:[%s4416_s2 + $0x94] sm:$0xf] %vm1799_vm4, %v1772_v10  ;;  %v2136_v32 = vsel %vm19_vm3, %v2036_v60, 0.0  ;;  %v4109_v37 = vld [vmem:[#allocation2 + $0x1b8] sm:$0xff] }
 0x1da   :  { %v2137_v43 = vadd.f32 %v2136_v32, %v2135_v12  ;;  %v1790_v45 = vpack.c.bf16 %v4109_v37, %v4109_v37  ;;  %1660 = vst.msk [vmem:[#allocation2 + $0x1c0] sm:$0xff] %vm19_vm3, %v1595_v47  ;;  %v1476_v48 = vpop.f32.mrf.mxu2  ;;  %v253_v47 = vld [vmem:[#allocation2 + $0x148] sm:$0xff]  ;;  %v271_v32 = vld [vmem:[#allocation2 + $0x1d8] sm:$0xff] }
 0x1db   :  { %v1477_v50 = vadd.f32 %v1476_v48, %v1308_v51 }
 0x1dc   :  { %1855 = vst.msk [vmem:[%s4416_s2 + $0xdc] sm:$0xf] %vm1799_vm4, %v1790_v45  ;;  %v1521_v58 = vpop.f32.mrf.mxu3 }
 0x1dd   :  { %v1578_v61 = vadd.f32 %v1477_v50, %v251_v46  ;;  %v1522_v62 = vadd.f32 %v1521_v58, %v1353_v49 }
 0x1de   :  { %v1709_v0 = vld [vmem:[#allocation2 + $0x130] sm:$0xff]  ;;  %v1141_v1 = vpop.f32.mrf.mxu0 }
 0x1df   :  { %v1773_v5 = vpack.c.bf16 %v1709_v0, %v1709_v0  ;;  %v1939_v63 = vsel %vm19_vm3, %v1709_v0, 0.0  ;;  %v2037_v53 = vmul.f32 %v1709_v0, %v1709_v0  ;;  %1643 = vst.msk [vmem:[#allocation2 + $0x138] sm:$0xff] %vm19_vm3, %v1578_v61  ;;  %v1596_v24 = vadd.f32 %v1522_v62, %v269_v57  ;;  %v1310_v19 = vpop.f32.mrf.mxu1  ;;  %v254_v62 = vld [vmem:[#allocation2 + $0x150] sm:$0xff] }
 0x1e0   :  { %v4122_v27 = vadd.f32 %v1939_v63, %v1938_v52  ;;  %v1311_v35 = vadd.f32 %v1310_v19, %v1141_v1  ;;  %v1358_v52 = vadd.f32 %v3927_v33, %v3577_v4  ;;  %v1361_v1 = vadd.f32 %v3938_v2, %v3587_v25  ;;  %v272_v63 = vld [vmem:[#allocation2 + $0x1e0] sm:$0xff] }
 0x1e1   :  { %1838 = vst.msk [vmem:[%s4416_s2 + $0x98] sm:$0xf] %vm1799_vm4, %v1773_v5  ;;  %v2138_v23 = vsel %vm19_vm3, %v2037_v53, 0.0  ;;  %v4129_v6 = vld [vmem:[#allocation2 + $0x1c0] sm:$0xff] }
 0x1e2   :  { %v4131_v7 = vadd.f32 %v2138_v23, %v2137_v43  ;;  %v1791_v12 = vpack.c.bf16 %v4129_v6, %v4129_v6  ;;  %1661 = vst.msk [vmem:[#allocation2 + $0x1c8] sm:$0xff] %vm19_vm3, %v1596_v24  ;;  %v1479_v16 = vpop.f32.mrf.mxu2 }
 0x1e3   :  { %v1480_v18 = vadd.f32 %v1479_v16, %v1311_v35 }
 0x1e4   :  { %1856 = vst.msk [vmem:[%s4416_s2 + $0xe0] sm:$0xf] %vm1799_vm4, %v1791_v12  ;;  %v1524_v22 = vpop.f32.mrf.mxu3 }
 0x1e5   :  { %v1579_v21 = vadd.f32 %v1480_v18, %v252_v14  ;;  %v1525_v26 = vadd.f32 %v1524_v22, %v1356_v17  ;;  %v255_v18 = vld [vmem:[#allocation2 + $0x158] sm:$0xff]  ;;  %v1363_v22 = vadd.f32 %v3965_v41, %v3620_v55 }
 0x1e6   :  { %v4142_v30 = vld [vmem:[#allocation2 + $0x138] sm:$0xff]  ;;  %v1143_v31 = vpop.f32.mrf.mxu0 }
 0x1e7   :  { %v1774_v40 = vpack.c.bf16 %v4142_v30, %v4142_v30  ;;  %1644 = vst.msk [vmem:[#allocation2 + $0x140] sm:$0xff] %vm19_vm3, %v1579_v21  ;;  %v1597_v10 = vadd.f32 %v1525_v26, %v270_v20  ;;  %v1312_v39 = vpop.f32.mrf.mxu1  ;;  %v273_v26 = vld [vmem:[#allocation2 + $0x1e8] sm:$0xff] }
 0x1e8   :  { %v1313_v59 = vadd.f32 %v1312_v39, %v1143_v31 }
 0x1e9   :  { %1839 = vst.msk [vmem:[%s4416_s2 + $0x9c] sm:$0xf] %vm1799_vm4, %v1774_v40  ;;  %v4151_v54 = vld [vmem:[#allocation2 + $0x1c8] sm:$0xff] }
 0x1ea   :  { %v1792_v60 = vpack.c.bf16 %v4151_v54, %v4151_v54  ;;  %1662 = vst.msk [vmem:[#allocation2 + $0x1d0] sm:$0xff] %vm19_vm3, %v1597_v10  ;;  %v1481_v56 = vpop.f32.mrf.mxu2 }
 0x1eb   :  { %v1482_v51 = vadd.f32 %v1481_v56, %v1313_v59 }
 0x1ec   :  { %1857 = vst.msk [vmem:[%s4416_s2 + $0xe4] sm:$0xf] %vm1799_vm4, %v1792_v60  ;;  %v1526_v43 = vpop.f32.mrf.mxu3 }
 0x1ed   :  { %v1580_v45 = vadd.f32 %v1482_v51, %v253_v47  ;;  %v1527_v46 = vadd.f32 %v1526_v43, %v1358_v52  ;;  %v256_v51 = vld [vmem:[#allocation2 + $0x160] sm:$0xff]  ;;  %v1366_v43 = vadd.f32 %v3975_v8, %v3630_v13 }
 0x1ee   :  { %v4162_v48 = vld [vmem:[#allocation2 + $0x140] sm:$0xff]  ;;  %v1146_v49 = vpop.f32.mrf.mxu0 }
 0x1ef   :  { %v1775_v50 = vpack.c.bf16 %v4162_v48, %v4162_v48  ;;  %1645 = vst.msk [vmem:[#allocation2 + $0x148] sm:$0xff] %vm19_vm3, %v1580_v45  ;;  %v1598_v57 = vadd.f32 %v1527_v46, %v271_v32  ;;  %v1315_v4 = vpop.f32.mrf.mxu1  ;;  %v274_v46 = vld [vmem:[#allocation2 + $0x1f0] sm:$0xff] }
 0x1f0   :  { %v1316_v33 = vadd.f32 %v1315_v4, %v1146_v49 }
 0x1f1   :  { %1840 = vst.msk [vmem:[%s4416_s2 + $0xa0] sm:$0xf] %vm1799_vm4, %v1775_v50  ;;  %v4171_v58 = vld [vmem:[#allocation2 + $0x1d0] sm:$0xff] }
 0x1f2   :  { %v1793_v61 = vpack.c.bf16 %v4171_v58, %v4171_v58  ;;  %1663 = vst.msk [vmem:[#allocation2 + $0x1d8] sm:$0xff] %vm19_vm3, %v1598_v57  ;;  %v1484_v0 = vpop.f32.mrf.mxu2 }
 0x1f3   :  { %v1485_v5 = vadd.f32 %v1484_v0, %v1316_v33 }
 0x1f4   :  { %1858 = vst.msk [vmem:[%s4416_s2 + $0xe8] sm:$0xf] %vm1799_vm4, %v1793_v61  ;;  %v1529_v53 = vpop.f32.mrf.mxu3 }
 0x1f5   :  { %v1581_v24 = vadd.f32 %v1485_v5, %v254_v62  ;;  %v1530_v19 = vadd.f32 %v1529_v53, %v1361_v1  ;;  %v257_v5 = vld [vmem:[#allocation2 + $0x168] sm:$0xff]  ;;  %v1368_v53 = vadd.f32 %v3990_v42, %v3663_v44 }
 0x1f6   :  { %v4182_v35 = vld [vmem:[#allocation2 + $0x148] sm:$0xff]  ;;  %v1148_v23 = vpop.f32.mrf.mxu0 }
 0x1f7   :  { %v1776_v12 = vpack.c.bf16 %v4182_v35, %v4182_v35  ;;  %1646 = vst.msk [vmem:[#allocation2 + $0x150] sm:$0xff] %vm19_vm3, %v1581_v24  ;;  %v1599_v14 = vadd.f32 %v1530_v19, %v272_v63  ;;  %v1317_v25 = vpop.f32.mrf.mxu1  ;;  %v275_v19 = vld [vmem:[#allocation2 + $0x1f8] sm:$0xff] }
 0x1f8   :  { %v1318_v2 = vadd.f32 %v1317_v25, %v1148_v23 }
 0x1f9   :  { %1841 = vst.msk [vmem:[%s4416_s2 + $0xa4] sm:$0xf] %vm1799_vm4, %v1776_v12  ;;  %v4191_v16 = vld [vmem:[#allocation2 + $0x1d8] sm:$0xff] }
 0x1fa   :  { %v1794_v17 = vpack.c.bf16 %v4191_v16, %v4191_v16  ;;  %1664 = vst.msk [vmem:[#allocation2 + $0x1e0] sm:$0xff] %vm19_vm3, %v1599_v14  ;;  %v1486_v20 = vpop.f32.mrf.mxu2 }
 0x1fb   :  { %v1487_v21 = vadd.f32 %v1486_v20, %v1318_v2 }
 0x1fc   :  { %1859 = vst.msk [vmem:[%s4416_s2 + $0xec] sm:$0xf] %vm1799_vm4, %v1794_v17  ;;  %v1531_v31 = vpop.f32.mrf.mxu3 }
 0x1fd   :  { %v1582_v40 = vadd.f32 %v1487_v21, %v255_v18  ;;  %v1532_v10 = vadd.f32 %v1531_v31, %v1363_v22  ;;  %v258_v21 = vld [vmem:[#allocation2 + $0x170] sm:$0xff] }
 0x1fe   :  { %v4202_v39 = vld [vmem:[#allocation2 + $0x150] sm:$0xff]  ;;  %v1151_v59 = vpop.f32.mrf.mxu0 }
 0x1ff   :  { %v1777_v60 = vpack.c.bf16 %v4202_v39, %v4202_v39  ;;  %1647 = vst.msk [vmem:[#allocation2 + $0x158] sm:$0xff] %vm19_vm3, %v1582_v40  ;;  %v1600_v47 = vadd.f32 %v1532_v10, %v273_v26  ;;  %v1320_v55 = vpop.f32.mrf.mxu1 }
 0x200   :  { %v1321_v41 = vadd.f32 %v1320_v55, %v1151_v59 }
 0x201   :  { %1842 = vst.msk [vmem:[%s4416_s2 + $0xa8] sm:$0xf] %vm1799_vm4, %v1777_v60  ;;  %v4211_v56 = vld [vmem:[#allocation2 + $0x1e0] sm:$0xff] }
 0x202   :  { %v1795_v52 = vpack.c.bf16 %v4211_v56, %v4211_v56  ;;  %1665 = vst.msk [vmem:[#allocation2 + $0x1e8] sm:$0xff] %vm19_vm3, %v1600_v47  ;;  %v1489_v32 = vpop.f32.mrf.mxu2 }
 0x203   :  { %v1490_v45 = vadd.f32 %v1489_v32, %v1321_v41 }
 0x204   :  { %1860 = vst.msk [vmem:[%s4416_s2 + $0xf0] sm:$0xf] %vm1799_vm4, %v1795_v52  ;;  %v1534_v49 = vpop.f32.mrf.mxu3 }
 0x205   :  { %v1583_v50 = vadd.f32 %v1490_v45, %v256_v51  ;;  %v1535_v57 = vadd.f32 %v1534_v49, %v1366_v43  ;;  %v259_v51 = vld [vmem:[#allocation2 + $0x178] sm:$0xff]  ;;  %v2038_v49 = vmul.f32 %v4142_v30, %v4142_v30 }
 0x206   :  { %v4222_v4 = vld [vmem:[#allocation2 + $0x158] sm:$0xff]  ;;  %v1153_v33 = vpop.f32.mrf.mxu0 }
 0x207   :  { %v1778_v61 = vpack.c.bf16 %v4222_v4, %v4222_v4  ;;  %1648 = vst.msk [vmem:[#allocation2 + $0x160] sm:$0xff] %vm19_vm3, %v1583_v50  ;;  %v1601_v62 = vadd.f32 %v1535_v57, %v274_v46  ;;  %v1322_v13 = vpop.f32.mrf.mxu1  ;;  %v1331_v57 = vadd.f32 %v3674_v3, %v3280_v15  ;;  %v2040_v15 = vmul.f32 %v4182_v35, %v4182_v35 }
 0x208   :  { %v1323_v8 = vadd.f32 %v1322_v13, %v1153_v33  ;;  %v1941_v33 = vsel %vm19_vm3, %v4142_v30, 0.0 }
 0x209   :  { %1843 = vst.msk [vmem:[%s4416_s2 + $0xac] sm:$0xf] %vm1799_vm4, %v1778_v61  ;;  %v4231_v0 = vld [vmem:[#allocation2 + $0x1e8] sm:$0xff]  ;;  %v2039_v61 = vmul.f32 %v4162_v48, %v4162_v48  ;;  %v1942_v30 = vadd.f32 %v1941_v33, %v4122_v27  ;;  %v2042_v27 = vmul.f32 %v4222_v4, %v4222_v4 }
 0x20a   :  { %v1796_v1 = vpack.c.bf16 %v4231_v0, %v4231_v0  ;;  %1666 = vst.msk [vmem:[#allocation2 + $0x1f0] sm:$0xff] %vm19_vm3, %v1601_v62  ;;  %v1491_v63 = vpop.f32.mrf.mxu2  ;;  %v260_v62 = vld [vmem:[#allocation2 + $0x180] sm:$0xff] }
 0x20b   :  { %v1492_v24 = vadd.f32 %v1491_v63, %v1323_v8  ;;  %v2140_v8 = vsel %vm19_vm3, %v2038_v49, 0.0  ;;  %v1945_v63 = vsel %vm19_vm3, %v4182_v35, 0.0 }
 0x20c   :  { %1861 = vst.msk [vmem:[%s4416_s2 + $0xf4] sm:$0xf] %vm1799_vm4, %v1796_v1  ;;  %v1536_v23 = vpop.f32.mrf.mxu3  ;;  %v1943_v1 = vsel %vm19_vm3, %v4162_v48, 0.0  ;;  %v2144_v48 = vsel %vm19_vm3, %v2040_v15, 0.0 }
 0x20d   :  { %v1584_v12 = vadd.f32 %v1492_v24, %v257_v5  ;;  %v1537_v14 = vadd.f32 %v1536_v23, %v1368_v53  ;;  %v2142_v5 = vsel %vm19_vm3, %v2039_v61, 0.0  ;;  %v2041_v53 = vmul.f32 %v4202_v39, %v4202_v39 }
 0x20e   :  { %v4242_v25 = vld [vmem:[#allocation2 + $0x160] sm:$0xff]  ;;  %v1156_v2 = vpop.f32.mrf.mxu0  ;;  %v1944_v23 = vadd.f32 %v1943_v1, %v1942_v30 }
 0x20f   :  { %v1779_v17 = vpack.c.bf16 %v4242_v25, %v4242_v25  ;;  %1649 = vst.msk [vmem:[#allocation2 + $0x168] sm:$0xff] %vm19_vm3, %v1584_v12  ;;  %v1602_v18 = vadd.f32 %v1537_v14, %v275_v19  ;;  %v1325_v44 = vpop.f32.mrf.mxu1  ;;  %v2141_v19 = vadd.f32 %v2140_v8, %v4131_v7  ;;  %v1947_v14 = vsel %vm19_vm3, %v4202_v39, 0.0 }
 0x210   :  { %v1326_v42 = vadd.f32 %v1325_v44, %v1156_v2  ;;  %v2146_v7 = vsel %vm19_vm3, %v2041_v53, 0.0  ;;  %v1949_v44 = vsel %vm19_vm3, %v4222_v4, 0.0 }
 0x211   :  { %1844 = vst.msk [vmem:[%s4416_s2 + $0xb0] sm:$0xf] %vm1799_vm4, %v1779_v17  ;;  %v4251_v20 = vld [vmem:[#allocation2 + $0x1f0] sm:$0xff]  ;;  %v2143_v35 = vadd.f32 %v2142_v5, %v2141_v19  ;;  %v1946_v17 = vadd.f32 %v1945_v63, %v1944_v23 }
 0x212   :  { %v1797_v22 = vpack.c.bf16 %v4251_v20, %v4251_v20  ;;  %1667 = vst.msk [vmem:[#allocation2 + $0x1f8] sm:$0xff] %vm19_vm3, %v1602_v18  ;;  %v1494_v26 = vpop.f32.mrf.mxu2  ;;  %v1333_v18 = vadd.f32 %v3707_v34, %v3321_v29  ;;  %v1951_v29 = vsel %vm19_vm3, %v4242_v25, 0.0 }
 0x213   :  { %v1495_v31 = vadd.f32 %v1494_v26, %v1326_v42  ;;  %v2043_v42 = vmul.f32 %v4242_v25, %v4242_v25  ;;  %v2145_v39 = vadd.f32 %v2144_v48, %v2143_v35 }
 0x214   :  { %1862 = vst.msk [vmem:[%s4416_s2 + $0xf8] sm:$0xf] %vm1799_vm4, %v1797_v22  ;;  %v1948_v22 = vadd.f32 %v1947_v14, %v1946_v17 }
 0x215   :  { %v1585_v40 = vadd.f32 %v1495_v31, %v258_v21  ;;  %v261_v21 = vld [vmem:[#allocation2 + $0x188] sm:$0xff]  ;;  %v2148_v31 = vsel %vm19_vm3, %v2042_v27, 0.0  ;;  %v2147_v4 = vadd.f32 %v2146_v7, %v2145_v39  ;;  %v1963_v27 = vsel %vm19_vm3, %v4019_v28, 0.0 }
 0x216   :  { %v1716_v10 = vld [vmem:[#allocation2 + $0x168] sm:$0xff]  ;;  %v1158_v59 = vpop.f32.mrf.mxu0 }
 0x217   :  { %v1780_v60 = vpack.c.bf16 %v1716_v10, %v1716_v10  ;;  %1650 = vst.msk [vmem:[#allocation2 + $0x170] sm:$0xff] %vm19_vm3, %v1585_v40  ;;  %v1327_v47 = vpop.f32.mrf.mxu1  ;;  %v2044_v34 = vmul.f32 %v1716_v10, %v1716_v10 }
 0x218   :  { %v1328_v55 = vadd.f32 %v1327_v47, %v1158_v59  ;;  %v1950_v59 = vadd.f32 %v1949_v44, %v1948_v22  ;;  %v1953_v47 = vsel %vm19_vm3, %v1716_v10, 0.0  ;;  %v1965_v44 = vsel %vm19_vm3, %v4037_v36, 0.0 }
 0x219   :  { %1845 = vst.msk [vmem:[%s4416_s2 + $0xb4] sm:$0xf] %vm1799_vm4, %v1780_v60  ;;  %v4265_v41 = vld [vmem:[#allocation2 + $0x1f8] sm:$0xff]  ;;  %v2150_v60 = vsel %vm19_vm3, %v2043_v42, 0.0 }
 0x21a   :  { %v1798_v52 = vpack.c.bf16 %v4265_v41, %v4265_v41  ;;  %v1496_v32 = vpop.f32.mrf.mxu2 }
 0x21b   :  { %v1497_v43 = vadd.f32 %v1496_v32, %v1328_v55  ;;  %v1952_v32 = vadd.f32 %v1951_v29, %v1950_v59 }
 0x21c   :  { %1863 = vst.msk [vmem:[%s4416_s2 + $0xfc] sm:$0xf] %vm1799_vm4, %v1798_v52 }
 0x21d   :  { %v1586_v45 = vadd.f32 %v1497_v43, %v259_v51  ;;  %v2149_v51 = vadd.f32 %v2148_v31, %v2147_v4  ;;  %v1954_v33 = vadd.f32 %v1953_v47, %v1952_v32  ;;  %v2054_v47 = vmul.f32 %v4109_v37, %v4109_v37 }
 0x21e   :  { %v1717_v46 = vld [vmem:[#allocation2 + $0x170] sm:$0xff]  ;;  %v2055_v32 = vmul.f32 %v4129_v6, %v4129_v6 }
 0x21f   :  { %v1781_v50 = vpack.c.bf16 %v1717_v46, %v1717_v46  ;;  %1651 = vst.msk [vmem:[#allocation2 + $0x178] sm:$0xff] %vm19_vm3, %v1586_v45  ;;  %v2045_v55 = vmul.f32 %v1717_v46, %v1717_v46  ;;  %v2152_v45 = vsel %vm19_vm3, %v2044_v34, 0.0  ;;  %v1955_v49 = vsel %vm19_vm3, %v1717_v46, 0.0 }
 0x220   :  { %v2151_v25 = vadd.f32 %v2150_v60, %v2149_v51  ;;  %v1956_v8 = vadd.f32 %v1955_v49, %v1954_v33  ;;  %v2172_v49 = vsel %vm19_vm3, %v2054_v47, 0.0  ;;  %v2174_v33 = vsel %vm19_vm3, %v2055_v32, 0.0 }
 0x221   :  { %1846 = vst.msk [vmem:[%s4416_s2 + $0xb8] sm:$0xf] %vm1799_vm4, %v1781_v50  ;;  %v2154_v61 = vsel %vm19_vm3, %v2045_v55, 0.0 }
 0x222   :  { %v1499_v13 = vpop.f32.mrf.mxu2 }
 0x223   :  { %v1500_v3 = vadd.f32 %v1499_v13, %v1331_v57  ;;  %v2153_v13 = vadd.f32 %v2152_v45, %v2151_v25 }
 0x225   :  { %v1587_v24 = vadd.f32 %v1500_v3, %v260_v62  ;;  %v2155_v15 = vadd.f32 %v2154_v61, %v2153_v13  ;;  %v2057_v61 = vmul.f32 %v4171_v58, %v4171_v58 }
 0x226   :  { %v1718_v12 = vld [vmem:[#allocation2 + $0x178] sm:$0xff] }
 0x227   :  { %v1782_v2 = vpack.c.bf16 %v1718_v12, %v1718_v12  ;;  %1652 = vst.msk [vmem:[#allocation2 + $0x180] sm:$0xff] %vm19_vm3, %v1587_v24  ;;  %v2046_v50 = vmul.f32 %v1718_v12, %v1718_v12  ;;  %v1957_v62 = vsel %vm19_vm3, %v1718_v12, 0.0  ;;  %v2049_v24 = vmul.f32 %v4019_v28, %v4019_v28 }
 0x228   :  { %v1958_v3 = vadd.f32 %v1957_v62, %v1956_v8  ;;  %v2051_v28 = vmul.f32 %v4055_v9, %v4055_v9  ;;  %v2058_v8 = vmul.f32 %v4191_v16, %v4191_v16 }
 0x229   :  { %1847 = vst.msk [vmem:[%s4416_s2 + $0xbc] sm:$0xf] %vm1799_vm4, %v1782_v2  ;;  %v2156_v46 = vsel %vm19_vm3, %v2046_v50, 0.0  ;;  %v2050_v2 = vmul.f32 %v4037_v36, %v4037_v36  ;;  %v2162_v7 = vsel %vm19_vm3, %v2049_v24, 0.0  ;;  %v1969_v36 = vsel %vm19_vm3, %v4073_v38, 0.0 }
 0x22a   :  { %v1501_v26 = vpop.f32.mrf.mxu2  ;;  %v2157_v5 = vadd.f32 %v2156_v46, %v2155_v15  ;;  %v2166_v34 = vsel %vm19_vm3, %v2051_v28, 0.0  ;;  %v2056_v50 = vmul.f32 %v4151_v54, %v4151_v54  ;;  %v2178_v15 = vsel %vm19_vm3, %v2057_v61, 0.0 }
 0x22b   :  { %v1502_v40 = vadd.f32 %v1501_v26, %v1333_v18  ;;  %v2164_v22 = vsel %vm19_vm3, %v2050_v2, 0.0  ;;  %v2052_v26 = vmul.f32 %v4073_v38, %v4073_v38  ;;  %v1973_v38 = vsel %vm19_vm3, %v4109_v37, 0.0 }
 0x22c   :  { %v1977_v37 = vsel %vm19_vm3, %v4151_v54, 0.0  ;;  %v2176_v13 = vsel %vm19_vm3, %v2056_v50, 0.0  ;;  %v1981_v54 = vsel %vm19_vm3, %v4191_v16, 0.0  ;;  %v1985_v16 = vsel %vm19_vm3, %v4231_v0, 0.0 }
 0x22d   :  { %v1588_v52 = vadd.f32 %v1502_v40, %v261_v21  ;;  %v1967_v21 = vsel %vm19_vm3, %v4055_v9, 0.0  ;;  %v2053_v40 = vmul.f32 %v4091_v11, %v4091_v11  ;;  %v2168_v60 = vsel %vm19_vm3, %v2052_v26, 0.0 }
 0x22e   :  { %v1719_v43 = vld [vmem:[#allocation2 + $0x180] sm:$0xff]  ;;  %v1971_v9 = vsel %vm19_vm3, %v4091_v11, 0.0  ;;  %v1975_v11 = vsel %vm19_vm3, %v4129_v6, 0.0  ;;  %v1979_v6 = vsel %vm19_vm3, %v4171_v58, 0.0  ;;  %v1983_v58 = vsel %vm19_vm3, %v4211_v56, 0.0 }
 0x22f   :  { %v1783_v57 = vpack.c.bf16 %v1719_v43, %v1719_v43  ;;  %1653 = vst.msk [vmem:[#allocation2 + $0x188] sm:$0xff] %vm19_vm3, %v1588_v52  ;;  %v2047_v10 = vmul.f32 %v1719_v43, %v1719_v43  ;;  %v1959_v1 = vsel %vm19_vm3, %v1719_v43, 0.0  ;;  %v2170_v51 = vsel %vm19_vm3, %v2053_v40, 0.0 }
 0x230   :  { %v1960_v63 = vadd.f32 %v1959_v1, %v1958_v3  ;;  %v2059_v3 = vmul.f32 %v4211_v56, %v4211_v56  ;;  %v1987_v56 = vsel %vm19_vm3, %v4251_v20, 0.0  ;;  %v2062_v2 = vmul.f32 %v4265_v41, %v4265_v41 }
 0x231   :  { %1848 = vst.msk [vmem:[%s4416_s2 + $0xc0] sm:$0xf] %vm1799_vm4, %v1783_v57  ;;  %v2158_v30 = vsel %vm19_vm3, %v2047_v10, 0.0 }
 0x232   :  { %v2159_v48 = vadd.f32 %v2158_v30, %v2157_v5  ;;  %v2188_v28 = vsel %vm19_vm3, %v2062_v2, 0.0 }
 0x236   :  { %v1720_v53 = vld [vmem:[#allocation2 + $0x188] sm:$0xff] }
 0x237   :  { %v1784_v19 = vpack.c.bf16 %v1720_v53, %v1720_v53  ;;  %v1961_v23 = vsel %vm19_vm3, %v1720_v53, 0.0  ;;  %v2048_v12 = vmul.f32 %v1720_v53, %v1720_v53  ;;  %v2060_v53 = vmul.f32 %v4231_v0, %v4231_v0 }
 0x238   :  { %v1962_v14 = vadd.f32 %v1961_v23, %v1960_v63  ;;  %v2180_v63 = vsel %vm19_vm3, %v2058_v8, 0.0  ;;  %v2182_v23 = vsel %vm19_vm3, %v2059_v3, 0.0  ;;  %v1989_v0 = vsel %vm19_vm3, %v4265_v41, 0.0 }
 0x239   :  { %1849 = vst.msk [vmem:[%s4416_s2 + $0xc4] sm:$0xf] %vm1799_vm4, %v1784_v19  ;;  %v2160_v35 = vsel %vm19_vm3, %v2048_v12, 0.0  ;;  %v2061_v12 = vmul.f32 %v4251_v20, %v4251_v20 }
 0x23a   :  { %v1964_v17 = vadd.f32 %v1963_v27, %v1962_v14  ;;  %v2161_v18 = vadd.f32 %v2160_v35, %v2159_v48  ;;  %v2184_v27 = vsel %vm19_vm3, %v2060_v53, 0.0 }
 0x23c   :  { %v1966_v42 = vadd.f32 %v1965_v44, %v1964_v17  ;;  %v2163_v39 = vadd.f32 %v2162_v7, %v2161_v18  ;;  %v2186_v18 = vsel %vm19_vm3, %v2061_v12, 0.0 }
 0x23e   :  { %v1968_v31 = vadd.f32 %v1967_v21, %v1966_v42  ;;  %v2165_v29 = vadd.f32 %v2164_v22, %v2163_v39 }
 0x240   :  { %v1970_v4 = vadd.f32 %v1969_v36, %v1968_v31  ;;  %v2167_v59 = vadd.f32 %v2166_v34, %v2165_v29 }
 0x242   :  { %v1972_v55 = vadd.f32 %v1971_v9, %v1970_v4  ;;  %v2169_v52 = vadd.f32 %v2168_v60, %v2167_v59 }
 0x244   :  { %v1974_v43 = vadd.f32 %v1973_v38, %v1972_v55  ;;  %v2171_v45 = vadd.f32 %v2170_v51, %v2169_v52 }
 0x246   :  { %v1976_v57 = vadd.f32 %v1975_v11, %v1974_v43  ;;  %v2173_v25 = vadd.f32 %v2172_v49, %v2171_v45 }
 0x248   :  { %v1978_v62 = vadd.f32 %v1977_v37, %v1976_v57  ;;  %v2175_v10 = vadd.f32 %v2174_v33, %v2173_v25 }
 0x24a   :  { %v1980_v46 = vadd.f32 %v1979_v6, %v1978_v62  ;;  %v2177_v1 = vadd.f32 %v2176_v13, %v2175_v10 }
 0x24c   :  { %v1982_v30 = vadd.f32 %v1981_v54, %v1980_v46  ;;  %v2179_v5 = vadd.f32 %v2178_v15, %v2177_v1 }
 0x24e   :  { %v1984_v24 = vadd.f32 %v1983_v58, %v1982_v30  ;;  %v2181_v19 = vadd.f32 %v2180_v63, %v2179_v5 }
 0x250   :  { %v1986_v48 = vadd.f32 %v1985_v16, %v1984_v24  ;;  %v2183_v14 = vadd.f32 %v2182_v23, %v2181_v19 }
 0x252   :  { %v1988_v35 = vadd.f32 %v1987_v56, %v1986_v48  ;;  %v2185_v17 = vadd.f32 %v2184_v27, %v2183_v14 }
 0x254   :  { %v1990_v7 = vadd.f32 %v1989_v0, %v1988_v35  ;;  %v2187_v44 = vadd.f32 %v2186_v18, %v2185_v17 }
 0x256   :  { %v1991_v42 = vrot.slane %v1990_v7, 4  ;;  %v2189_v39 = vadd.f32 %v2188_v28, %v2187_v44 }
 0x258   :  { %v1992_v22 = vadd.f32 %v1991_v42, %v1990_v7  ;;  %v2190_v21 = vrot.slane %v2189_v39, 4 }
 0x25a   :  { %v1993_v26 = vrot.slane %v1992_v22, 2  ;;  %v2191_v20 = vadd.f32 %v2190_v21, %v2189_v39 }
 0x25c   :  { %v1994_v31 = vadd.f32 %v1993_v26, %v1992_v22  ;;  %v2192_v29 = vrot.slane %v2191_v20, 2 }
 0x25e   :  { %v1995_v34 = vrot.slane %v1994_v31, 1  ;;  %v2193_v36 = vadd.f32 %v2192_v29, %v2191_v20 }
 0x260   :  { %v1996_v40 = vadd.f32 %v1995_v34, %v1994_v31  ;;  %v2194_v4 = vrot.slane %v2193_v36, 1 }
 0x262   :  { %1998 = vst.msk [vmem:[%s4417_s3] sm:$0x1] %vm1997_vm5, %v1996_v40  ;;  %v2195_v41 = vadd.f32 %v2194_v4, %v2193_v36 }
 0x264   :  { %2196 = vst.msk [vmem:[%s4418_s4] sm:$0x1] %vm1997_vm5, %v2195_v41 }

</bundles_post_ra>
